<compile_context>
chip_gen: v5e
topology: v5e:2x2
jax: 0.10.0
libtpu: 0.0.40
codegen_flags: <defaults>
</compile_context>

<pallas_src>
import functools

import jax
import jax.numpy as jnp
from jax.experimental import pallas as pl
from jax.experimental.pallas import tpu as pltpu

LANE = 128      # f32 lane width
SUBLANE = 8     # f32 sublane width

_VMEM = pl.BlockSpec(memory_space=pltpu.MemorySpace.VMEM)


def _round_up(n, m):
    return (n + m - 1) // m * m


# ------------------------------ Pallas kernel ------------------------------ #

def _fused_lstm_kernel(x_ref, wih_ref, whh_ref, b_ref, wfc_ref, bfc_ref,
                       out_ref, seq_sc, proj_sc,
                       *, n_layer, seq_len, b_pad, h_pad, d_pad):
    """Whole forward pass: all LSTM layers + last-step Linear classifier.

    x_ref:   (T*b_pad, d_pad)          time-major, padded, flattened input
    wih_ref: (L, d_pad, 4*h_pad)       W_ih^T, gate blocks (i,f,g,o) padded
    whh_ref: (L, h_pad, 4*h_pad)       W_hh^T, gate blocks padded
    b_ref:   (L, 1, 4*h_pad)           b_ih + b_hh, gate blocks padded
    wfc_ref: (h_pad, c_pad)            classifier weight^T (padded)
    bfc_ref: (1, c_pad)                classifier bias (padded)
    out_ref: (b_pad, c_pad)            logits (padded)
    seq_sc:  (T*b_pad, d_pad)          hidden sequence feeding the next layer
    proj_sc: (T*b_pad, 4*h_pad)        per-layer batched input projection
    """

    def sigmoid(z):                       # 1 EUP op instead of exp + divide
        return 0.5 * (jnp.tanh(0.5 * z) + 1.0)

    if n_layer > 1 and d_pad > h_pad:
        # Later layers read all d_pad columns (against zero-padded W_ih rows);
        # make sure the never-written tail columns cannot hold NaN garbage.
        seq_sc[...] = jnp.zeros_like(seq_sc)

    h = None
    for layer in range(n_layer):
        # --- input projection for ALL timesteps: one MXU matmul, bias folded.
        seq_in = x_ref[...] if layer == 0 else seq_sc[...]
        proj_sc[...] = (
            jnp.dot(seq_in, wih_ref[layer], preferred_element_type=jnp.float32)
            + b_ref[layer])

        last_layer = layer == n_layer - 1
        h = jnp.zeros((b_pad, h_pad), jnp.float32)
        c = jnp.zeros((b_pad, h_pad), jnp.float32)

        # --- serial recurrence; T is static so this is fully unrolled.
        for t in range(seq_len):
            row = t * b_pad
            gates = (proj_sc[row:row + b_pad, :]
                     + jnp.dot(h, whh_ref[layer],
                               preferred_element_type=jnp.float32))
            i_g = sigmoid(gates[:, 0 * h_pad:1 * h_pad])
            f_g = sigmoid(gates[:, 1 * h_pad:2 * h_pad])
            g_g = jnp.tanh(gates[:, 2 * h_pad:3 * h_pad])
            o_g = sigmoid(gates[:, 3 * h_pad:4 * h_pad])
            c = f_g * c + i_g * g_g
            h = o_g * jnp.tanh(c)
            if not last_layer:            # last layer: only final h is needed
                seq_sc[row:row + b_pad, 0:h_pad] = h

    # --- fused classifier on the last hidden state of the last layer.
    out_ref[...] = (jnp.dot(h, wfc_ref[...], preferred_element_type=jnp.float32)
                    + bfc_ref[...])


# ------------------------------ JAX wrappers ------------------------------- #

def init_params(key, in_dim, hidden_dim, n_layer, n_class):
    """PyTorch-style U(-1/sqrt(H), 1/sqrt(H)) init, pre-packed for the kernel:
    transposed, biases summed, gate blocks padded to 128 lanes, layers stacked.
    Done once -> zero per-forward-call transpose/pad work on parameters."""
    k = 1.0 / float(hidden_dim) ** 0.5
    h_pad = _round_up(hidden_dim, LANE)
    d_pad = _round_up(max(in_dim, hidden_dim), LANE)
    c_pad = _round_up(n_class, LANE)

    def pack_gate_cols(w_t, rows_pad):
        # w_t: (rows, 4*hidden), PyTorch gate order (i, f, g, o)
        out = jnp.zeros((rows_pad, 4 * h_pad), jnp.float32)
        for g in range(4):
            blk = w_t[:, g * hidden_dim:(g + 1) * hidden_dim]
            out = out.at[:blk.shape[0],
                         g * h_pad:g * h_pad + hidden_dim].set(blk)
        return out

    wih_l, whh_l, b_l = [], [], []
    for layer in range(n_layer):
        d = in_dim if layer == 0 else hidden_dim
        key, k1, k2, k3, k4 = jax.random.split(key, 5)
        w_ih = jax.random.uniform(k1, (4 * hidden_dim, d), jnp.float32, -k, k)
        w_hh = jax.random.uniform(k2, (4 * hidden_dim, hidden_dim),
                                  jnp.float32, -k, k)
        b_ih = jax.random.uniform(k3, (4 * hidden_dim,), jnp.float32, -k, k)
        b_hh = jax.random.uniform(k4, (4 * hidden_dim,), jnp.float32, -k, k)
        wih_l.append(pack_gate_cols(w_ih.T, d_pad))                 # (d_pad,4H_p)
        whh_l.append(pack_gate_cols(w_hh.T, h_pad))                 # (h_pad,4H_p)
        b_l.append(pack_gate_cols((b_ih + b_hh).reshape(1, -1), 1))  # (1,4H_p)

    key, k1, k2 = jax.random.split(key, 3)
    fc_w = jax.random.uniform(k1, (n_class, hidden_dim), jnp.float32, -k, k)
    fc_b = jax.random.uniform(k2, (n_class,), jnp.float32, -k, k)
    wfc = jnp.zeros((h_pad, c_pad), jnp.float32)
    wfc = wfc.at[:hidden_dim, :n_class].set(fc_w.T)
    bfc = jnp.zeros((1, c_pad), jnp.float32).at[0, :n_class].set(fc_b)

    return dict(
        w_ih=jnp.stack(wih_l),   # (L, d_pad, 4*h_pad)
        w_hh=jnp.stack(whh_l),   # (L, h_pad, 4*h_pad)
        bias=jnp.stack(b_l),     # (L, 1, 4*h_pad)
        fc_w=wfc,                # (h_pad, c_pad)
        fc_b=bfc,                # (1, c_pad)
    )


@functools.partial(jax.jit, static_argnames=("n_class",))
def rnn_forward(x, params, *, n_class):
    """Matches RNN.forward: out, _ = lstm(x); out[:, -1, :]; classifier."""
    B, T, in_dim = x.shape
    n_layer, d_pad, _ = params["w_ih"].shape
    h_pad = params["w_hh"].shape[1]
    c_pad = params["fc_w"].shape[1]
    b_pad = _round_up(B, SUBLANE)

    # batch-first -> time-major, pad batch/feature, flatten time into rows.
    x_tm = jnp.transpose(x, (1, 0, 2))                        # (T, B, D)
    x_pad = jnp.zeros((T, b_pad, d_pad), jnp.float32)
    x_pad = x_pad.at[:, :B, :in_dim].set(x_tm)
    x_flat = x_pad.reshape(T * b_pad, d_pad)

    kernel = functools.partial(
        _fused_lstm_kernel, n_layer=n_layer, seq_len=T,
        b_pad=b_pad, h_pad=h_pad, d_pad=d_pad)

    out = pl.pallas_call(
        kernel,
        out_shape=jax.ShapeDtypeStruct((b_pad, c_pad), jnp.float32),
        in_specs=[_VMEM] * 6,
        out_specs=_VMEM,
        scratch_shapes=[
            pltpu.VMEM((T * b_pad, d_pad), jnp.float32),       # layer input seq
            pltpu.VMEM((T * b_pad, 4 * h_pad), jnp.float32),   # input projection
        ],
    )(x_flat, params["w_ih"], params["w_hh"], params["bias"],
      params["fc_w"], params["fc_b"])

    return out[:B, :n_class]


# ---------------------------------- main ----------------------------------- #

if __name__ == "__main__":
    B, T, IN_DIM, HIDDEN, N_LAYER, N_CLASS = 2, 8, 16, 32, 2, 10

    key = jax.random.PRNGKey(0)
    key, kx, kp = jax.random.split(key, 3)
    x = jax.random.normal(kx, (B, T, IN_DIM), jnp.float32)  # (batch, seq, in)
    params = init_params(kp, IN_DIM, HIDDEN, N_LAYER, N_CLASS)

    out = rnn_forward(x, params, n_class=N_CLASS)
    jax.block_until_ready(out)
    assert out.shape == (B, N_CLASS) and out.dtype == jnp.float32
    print("KERNEL_OK")
</pallas_src>

<mosaic_0001>
module attributes {stable_mosaic.version = 11 : i64} {
  func.func @_fused_lstm_kernel(%arg0: memref<64x128xf32, #tpu.memory_space<vmem>>, %arg1: memref<2x128x512xf32, #tpu.memory_space<vmem>>, %arg2: memref<2x128x512xf32, #tpu.memory_space<vmem>>, %arg3: memref<2x1x512xf32, #tpu.memory_space<vmem>>, %arg4: memref<128x128xf32, #tpu.memory_space<vmem>>, %arg5: memref<1x128xf32, #tpu.memory_space<vmem>>, %arg6: memref<8x128xf32, #tpu.memory_space<vmem>>, %arg7: memref<64x128xf32, #tpu.memory_space<vmem>>, %arg8: memref<64x512xf32, #tpu.memory_space<vmem>>) attributes {dimension_semantics = [], scalar_prefetch = 0 : i64, scratch_operands = 2 : i64, tpu.core_type = #tpu.core_type<tc>} {
    %c0 = arith.constant 0 : index
    %c0_0 = arith.constant 0 : index
    %0 = vector.load %arg0[%c0, %c0_0] : memref<64x128xf32, #tpu.memory_space<vmem>>, vector<64x128xf32>
    %c0_1 = arith.constant 0 : index
    %c0_2 = arith.constant 0 : index
    %c0_3 = arith.constant 0 : index
    %1 = vector.load %arg1[%c0_1, %c0_2, %c0_3] : memref<2x128x512xf32, #tpu.memory_space<vmem>>, vector<1x128x512xf32>
    %2 = vector.shape_cast %1 : vector<1x128x512xf32> to vector<128x512xf32>
    %cst = arith.constant dense<0.000000e+00> : vector<64x512xf32>
    %3 = tpu.matmul %0, %2, %cst {dimension_numbers = #tpu.dot_dimension_numbers<[1], [0], [0], [1], [0, 0, 1, 1], [], []>} : vector<64x128xf32>, vector<128x512xf32>, vector<64x512xf32> -> vector<64x512xf32>
    %c0_4 = arith.constant 0 : index
    %c0_5 = arith.constant 0 : index
    %c0_6 = arith.constant 0 : index
    %4 = vector.load %arg3[%c0_4, %c0_5, %c0_6] : memref<2x1x512xf32, #tpu.memory_space<vmem>>, vector<1x1x512xf32>
    %5 = vector.shape_cast %4 : vector<1x1x512xf32> to vector<1x512xf32>
    %6 = vector.broadcast %5 : vector<1x512xf32> to vector<64x512xf32>
    %7 = arith.addf %3, %6 : vector<64x512xf32>
    %c0_7 = arith.constant 0 : index
    %c0_8 = arith.constant 0 : index
    %8 = vector.load %arg8[%c0_7, %c0_8] : memref<64x512xf32, #tpu.memory_space<vmem>>, vector<64x512xf32>
    tpu.vector_store %arg8[%c0_7, %c0_8], %7 {strides = array<i32>} : memref<64x512xf32, #tpu.memory_space<vmem>>, vector<64x512xf32>,
    %cst_9 = arith.constant 0.000000e+00 : f32
    %9 = vector.broadcast %cst_9 : f32 to vector<8x128xf32>
    %cst_10 = arith.constant 0.000000e+00 : f32
    %10 = vector.broadcast %cst_10 : f32 to vector<8x128xf32>
    %c0_11 = arith.constant 0 : index
    %c0_12 = arith.constant 0 : index
    %11 = vector.load %arg8[%c0_11, %c0_12] : memref<64x512xf32, #tpu.memory_space<vmem>>, vector<8x512xf32>
    %c0_13 = arith.constant 0 : index
    %c0_14 = arith.constant 0 : index
    %c0_15 = arith.constant 0 : index
    %12 = vector.load %arg2[%c0_13, %c0_14, %c0_15] : memref<2x128x512xf32, #tpu.memory_space<vmem>>, vector<1x128x512xf32>
    %13 = vector.shape_cast %12 : vector<1x128x512xf32> to vector<128x512xf32>
    %cst_16 = arith.constant dense<0.000000e+00> : vector<8x512xf32>
    %14 = tpu.matmul %9, %13, %cst_16 {dimension_numbers = #tpu.dot_dimension_numbers<[1], [0], [0], [1], [0, 0, 1, 1], [], []>} : vector<8x128xf32>, vector<128x512xf32>, vector<8x512xf32> -> vector<8x512xf32>
    %15 = arith.addf %11, %14 : vector<8x512xf32>
    %16 = vector.extract_strided_slice %15 {offsets = [0, 0], sizes = [8, 128], strides = [1, 1]} : vector<8x512xf32> to vector<8x128xf32>
    %cst_17 = arith.constant 5.000000e-01 : f32
    %17 = vector.broadcast %cst_17 : f32 to vector<8x128xf32>
    %18 = arith.mulf %17, %16 : vector<8x128xf32>
    %19 = math.tanh %18 : vector<8x128xf32>
    %cst_18 = arith.constant 1.000000e+00 : f32
    %20 = vector.broadcast %cst_18 : f32 to vector<8x128xf32>
    %21 = arith.addf %19, %20 : vector<8x128xf32>
    %cst_19 = arith.constant 5.000000e-01 : f32
    %22 = vector.broadcast %cst_19 : f32 to vector<8x128xf32>
    %23 = arith.mulf %22, %21 : vector<8x128xf32>
    %24 = vector.extract_strided_slice %15 {offsets = [0, 128], sizes = [8, 128], strides = [1, 1]} : vector<8x512xf32> to vector<8x128xf32>
    %cst_20 = arith.constant 5.000000e-01 : f32
    %25 = vector.broadcast %cst_20 : f32 to vector<8x128xf32>
    %26 = arith.mulf %25, %24 : vector<8x128xf32>
    %27 = math.tanh %26 : vector<8x128xf32>
    %cst_21 = arith.constant 1.000000e+00 : f32
    %28 = vector.broadcast %cst_21 : f32 to vector<8x128xf32>
    %29 = arith.addf %27, %28 : vector<8x128xf32>
    %cst_22 = arith.constant 5.000000e-01 : f32
    %30 = vector.broadcast %cst_22 : f32 to vector<8x128xf32>
    %31 = arith.mulf %30, %29 : vector<8x128xf32>
    %32 = vector.extract_strided_slice %15 {offsets = [0, 256], sizes = [8, 128], strides = [1, 1]} : vector<8x512xf32> to vector<8x128xf32>
    %33 = math.tanh %32 : vector<8x128xf32>
    %34 = vector.extract_strided_slice %15 {offsets = [0, 384], sizes = [8, 128], strides = [1, 1]} : vector<8x512xf32> to vector<8x128xf32>
    %cst_23 = arith.constant 5.000000e-01 : f32
    %35 = vector.broadcast %cst_23 : f32 to vector<8x128xf32>
    %36 = arith.mulf %35, %34 : vector<8x128xf32>
    %37 = math.tanh %36 : vector<8x128xf32>
    %cst_24 = arith.constant 1.000000e+00 : f32
    %38 = vector.broadcast %cst_24 : f32 to vector<8x128xf32>
    %39 = arith.addf %37, %38 : vector<8x128xf32>
    %cst_25 = arith.constant 5.000000e-01 : f32
    %40 = vector.broadcast %cst_25 : f32 to vector<8x128xf32>
    %41 = arith.mulf %40, %39 : vector<8x128xf32>
    %42 = arith.mulf %31, %10 : vector<8x128xf32>
    %43 = arith.mulf %23, %33 : vector<8x128xf32>
    %44 = arith.addf %42, %43 : vector<8x128xf32>
    %45 = math.tanh %44 : vector<8x128xf32>
    %46 = arith.mulf %41, %45 : vector<8x128xf32>
    %c0_26 = arith.constant 0 : index
    %c0_27 = arith.constant 0 : index
    %47 = vector.load %arg7[%c0_26, %c0_27] : memref<64x128xf32, #tpu.memory_space<vmem>>, vector<8x128xf32>
    tpu.vector_store %arg7[%c0_26, %c0_27], %46 {strides = array<i32>} : memref<64x128xf32, #tpu.memory_space<vmem>>, vector<8x128xf32>,
    %c8 = arith.constant 8 : index
    %c0_28 = arith.constant 0 : index
    %48 = vector.load %arg8[%c8, %c0_28] : memref<64x512xf32, #tpu.memory_space<vmem>>, vector<8x512xf32>
    %c0_29 = arith.constant 0 : index
    %c0_30 = arith.constant 0 : index
    %c0_31 = arith.constant 0 : index
    %49 = vector.load %arg2[%c0_29, %c0_30, %c0_31] : memref<2x128x512xf32, #tpu.memory_space<vmem>>, vector<1x128x512xf32>
    %50 = vector.shape_cast %49 : vector<1x128x512xf32> to vector<128x512xf32>
    %cst_32 = arith.constant dense<0.000000e+00> : vector<8x512xf32>
    %51 = tpu.matmul %46, %50, %cst_32 {dimension_numbers = #tpu.dot_dimension_numbers<[1], [0], [0], [1], [0, 0, 1, 1], [], []>} : vector<8x128xf32>, vector<128x512xf32>, vector<8x512xf32> -> vector<8x512xf32>
    %52 = arith.addf %48, %51 : vector<8x512xf32>
    %53 = vector.extract_strided_slice %52 {offsets = [0, 0], sizes = [8, 128], strides = [1, 1]} : vector<8x512xf32> to vector<8x128xf32>
    %cst_33 = arith.constant 5.000000e-01 : f32
    %54 = vector.broadcast %cst_33 : f32 to vector<8x128xf32>
    %55 = arith.mulf %54, %53 : vector<8x128xf32>
    %56 = math.tanh %55 : vector<8x128xf32>
    %cst_34 = arith.constant 1.000000e+00 : f32
    %57 = vector.broadcast %cst_34 : f32 to vector<8x128xf32>
    %58 = arith.addf %56, %57 : vector<8x128xf32>
    %cst_35 = arith.constant 5.000000e-01 : f32
    %59 = vector.broadcast %cst_35 : f32 to vector<8x128xf32>
    %60 = arith.mulf %59, %58 : vector<8x128xf32>
    %61 = vector.extract_strided_slice %52 {offsets = [0, 128], sizes = [8, 128], strides = [1, 1]} : vector<8x512xf32> to vector<8x128xf32>
    %cst_36 = arith.constant 5.000000e-01 : f32
    %62 = vector.broadcast %cst_36 : f32 to vector<8x128xf32>
    %63 = arith.mulf %62, %61 : vector<8x128xf32>
    %64 = math.tanh %63 : vector<8x128xf32>
    %cst_37 = arith.constant 1.000000e+00 : f32
    %65 = vector.broadcast %cst_37 : f32 to vector<8x128xf32>
    %66 = arith.addf %64, %65 : vector<8x128xf32>
    %cst_38 = arith.constant 5.000000e-01 : f32
    %67 = vector.broadcast %cst_38 : f32 to vector<8x128xf32>
    %68 = arith.mulf %67, %66 : vector<8x128xf32>
    %69 = vector.extract_strided_slice %52 {offsets = [0, 256], sizes = [8, 128], strides = [1, 1]} : vector<8x512xf32> to vector<8x128xf32>
    %70 = math.tanh %69 : vector<8x128xf32>
    %71 = vector.extract_strided_slice %52 {offsets = [0, 384], sizes = [8, 128], strides = [1, 1]} : vector<8x512xf32> to vector<8x128xf32>
    %cst_39 = arith.constant 5.000000e-01 : f32
    %72 = vector.broadcast %cst_39 : f32 to vector<8x128xf32>
    %73 = arith.mulf %72, %71 : vector<8x128xf32>
    %74 = math.tanh %73 : vector<8x128xf32>
    %cst_40 = arith.constant 1.000000e+00 : f32
    %75 = vector.broadcast %cst_40 : f32 to vector<8x128xf32>
    %76 = arith.addf %74, %75 : vector<8x128xf32>
    %cst_41 = arith.constant 5.000000e-01 : f32
    %77 = vector.broadcast %cst_41 : f32 to vector<8x128xf32>
    %78 = arith.mulf %77, %76 : vector<8x128xf32>
    %79 = arith.mulf %68, %44 : vector<8x128xf32>
    %80 = arith.mulf %60, %70 : vector<8x128xf32>
    %81 = arith.addf %79, %80 : vector<8x128xf32>
    %82 = math.tanh %81 : vector<8x128xf32>
    %83 = arith.mulf %78, %82 : vector<8x128xf32>
    %c8_42 = arith.constant 8 : index
    %c0_43 = arith.constant 0 : index
    %84 = vector.load %arg7[%c8_42, %c0_43] : memref<64x128xf32, #tpu.memory_space<vmem>>, vector<8x128xf32>
    tpu.vector_store %arg7[%c8_42, %c0_43], %83 {strides = array<i32>} : memref<64x128xf32, #tpu.memory_space<vmem>>, vector<8x128xf32>,
    %c16 = arith.constant 16 : index
    %c0_44 = arith.constant 0 : index
    %85 = vector.load %arg8[%c16, %c0_44] : memref<64x512xf32, #tpu.memory_space<vmem>>, vector<8x512xf32>
    %c0_45 = arith.constant 0 : index
    %c0_46 = arith.constant 0 : index
    %c0_47 = arith.constant 0 : index
    %86 = vector.load %arg2[%c0_45, %c0_46, %c0_47] : memref<2x128x512xf32, #tpu.memory_space<vmem>>, vector<1x128x512xf32>
    %87 = vector.shape_cast %86 : vector<1x128x512xf32> to vector<128x512xf32>
    %cst_48 = arith.constant dense<0.000000e+00> : vector<8x512xf32>
    %88 = tpu.matmul %83, %87, %cst_48 {dimension_numbers = #tpu.dot_dimension_numbers<[1], [0], [0], [1], [0, 0, 1, 1], [], []>} : vector<8x128xf32>, vector<128x512xf32>, vector<8x512xf32> -> vector<8x512xf32>
    %89 = arith.addf %85, %88 : vector<8x512xf32>
    %90 = vector.extract_strided_slice %89 {offsets = [0, 0], sizes = [8, 128], strides = [1, 1]} : vector<8x512xf32> to vector<8x128xf32>
    %cst_49 = arith.constant 5.000000e-01 : f32
    %91 = vector.broadcast %cst_49 : f32 to vector<8x128xf32>
    %92 = arith.mulf %91, %90 : vector<8x128xf32>
    %93 = math.tanh %92 : vector<8x128xf32>
    %cst_50 = arith.constant 1.000000e+00 : f32
    %94 = vector.broadcast %cst_50 : f32 to vector<8x128xf32>
    %95 = arith.addf %93, %94 : vector<8x128xf32>
    %cst_51 = arith.constant 5.000000e-01 : f32
    %96 = vector.broadcast %cst_51 : f32 to vector<8x128xf32>
    %97 = arith.mulf %96, %95 : vector<8x128xf32>
    %98 = vector.extract_strided_slice %89 {offsets = [0, 128], sizes = [8, 128], strides = [1, 1]} : vector<8x512xf32> to vector<8x128xf32>
    %cst_52 = arith.constant 5.000000e-01 : f32
    %99 = vector.broadcast %cst_52 : f32 to vector<8x128xf32>
    %100 = arith.mulf %99, %98 : vector<8x128xf32>
    %101 = math.tanh %100 : vector<8x128xf32>
    %cst_53 = arith.constant 1.000000e+00 : f32
    %102 = vector.broadcast %cst_53 : f32 to vector<8x128xf32>
    %103 = arith.addf %101, %102 : vector<8x128xf32>
    %cst_54 = arith.constant 5.000000e-01 : f32
    %104 = vector.broadcast %cst_54 : f32 to vector<8x128xf32>
    %105 = arith.mulf %104, %103 : vector<8x128xf32>
    %106 = vector.extract_strided_slice %89 {offsets = [0, 256], sizes = [8, 128], strides = [1, 1]} : vector<8x512xf32> to vector<8x128xf32>
    %107 = math.tanh %106 : vector<8x128xf32>
    %108 = vector.extract_strided_slice %89 {offsets = [0, 384], sizes = [8, 128], strides = [1, 1]} : vector<8x512xf32> to vector<8x128xf32>
    %cst_55 = arith.constant 5.000000e-01 : f32
    %109 = vector.broadcast %cst_55 : f32 to vector<8x128xf32>
    %110 = arith.mulf %109, %108 : vector<8x128xf32>
    %111 = math.tanh %110 : vector<8x128xf32>
    %cst_56 = arith.constant 1.000000e+00 : f32
    %112 = vector.broadcast %cst_56 : f32 to vector<8x128xf32>
    %113 = arith.addf %111, %112 : vector<8x128xf32>
    %cst_57 = arith.constant 5.000000e-01 : f32
    %114 = vector.broadcast %cst_57 : f32 to vector<8x128xf32>
    %115 = arith.mulf %114, %113 : vector<8x128xf32>
    %116 = arith.mulf %105, %81 : vector<8x128xf32>
    %117 = arith.mulf %97, %107 : vector<8x128xf32>
    %118 = arith.addf %116, %117 : vector<8x128xf32>
    %119 = math.tanh %118 : vector<8x128xf32>
    %120 = arith.mulf %115, %119 : vector<8x128xf32>
    %c16_58 = arith.constant 16 : index
    %c0_59 = arith.constant 0 : index
    %121 = vector.load %arg7[%c16_58, %c0_59] : memref<64x128xf32, #tpu.memory_space<vmem>>, vector<8x128xf32>
    tpu.vector_store %arg7[%c16_58, %c0_59], %120 {strides = array<i32>} : memref<64x128xf32, #tpu.memory_space<vmem>>, vector<8x128xf32>,
    %c24 = arith.constant 24 : index
    %c0_60 = arith.constant 0 : index
    %122 = vector.load %arg8[%c24, %c0_60] : memref<64x512xf32, #tpu.memory_space<vmem>>, vector<8x512xf32>
    %c0_61 = arith.constant 0 : index
    %c0_62 = arith.constant 0 : index
    %c0_63 = arith.constant 0 : index
    %123 = vector.load %arg2[%c0_61, %c0_62, %c0_63] : memref<2x128x512xf32, #tpu.memory_space<vmem>>, vector<1x128x512xf32>
    %124 = vector.shape_cast %123 : vector<1x128x512xf32> to vector<128x512xf32>
    %cst_64 = arith.constant dense<0.000000e+00> : vector<8x512xf32>
    %125 = tpu.matmul %120, %124, %cst_64 {dimension_numbers = #tpu.dot_dimension_numbers<[1], [0], [0], [1], [0, 0, 1, 1], [], []>} : vector<8x128xf32>, vector<128x512xf32>, vector<8x512xf32> -> vector<8x512xf32>
    %126 = arith.addf %122, %125 : vector<8x512xf32>
    %127 = vector.extract_strided_slice %126 {offsets = [0, 0], sizes = [8, 128], strides = [1, 1]} : vector<8x512xf32> to vector<8x128xf32>
    %cst_65 = arith.constant 5.000000e-01 : f32
    %128 = vector.broadcast %cst_65 : f32 to vector<8x128xf32>
    %129 = arith.mulf %128, %127 : vector<8x128xf32>
    %130 = math.tanh %129 : vector<8x128xf32>
    %cst_66 = arith.constant 1.000000e+00 : f32
    %131 = vector.broadcast %cst_66 : f32 to vector<8x128xf32>
    %132 = arith.addf %130, %131 : vector<8x128xf32>
    %cst_67 = arith.constant 5.000000e-01 : f32
    %133 = vector.broadcast %cst_67 : f32 to vector<8x128xf32>
    %134 = arith.mulf %133, %132 : vector<8x128xf32>
    %135 = vector.extract_strided_slice %126 {offsets = [0, 128], sizes = [8, 128], strides = [1, 1]} : vector<8x512xf32> to vector<8x128xf32>
    %cst_68 = arith.constant 5.000000e-01 : f32
    %136 = vector.broadcast %cst_68 : f32 to vector<8x128xf32>
    %137 = arith.mulf %136, %135 : vector<8x128xf32>
    %138 = math.tanh %137 : vector<8x128xf32>
    %cst_69 = arith.constant 1.000000e+00 : f32
    %139 = vector.broadcast %cst_69 : f32 to vector<8x128xf32>
    %140 = arith.addf %138, %139 : vector<8x128xf32>
    %cst_70 = arith.constant 5.000000e-01 : f32
    %141 = vector.broadcast %cst_70 : f32 to vector<8x128xf32>
    %142 = arith.mulf %141, %140 : vector<8x128xf32>
    %143 = vector.extract_strided_slice %126 {offsets = [0, 256], sizes = [8, 128], strides = [1, 1]} : vector<8x512xf32> to vector<8x128xf32>
    %144 = math.tanh %143 : vector<8x128xf32>
    %145 = vector.extract_strided_slice %126 {offsets = [0, 384], sizes = [8, 128], strides = [1, 1]} : vector<8x512xf32> to vector<8x128xf32>
    %cst_71 = arith.constant 5.000000e-01 : f32
    %146 = vector.broadcast %cst_71 : f32 to vector<8x128xf32>
    %147 = arith.mulf %146, %145 : vector<8x128xf32>
    %148 = math.tanh %147 : vector<8x128xf32>
    %cst_72 = arith.constant 1.000000e+00 : f32
    %149 = vector.broadcast %cst_72 : f32 to vector<8x128xf32>
    %150 = arith.addf %148, %149 : vector<8x128xf32>
    %cst_73 = arith.constant 5.000000e-01 : f32
    %151 = vector.broadcast %cst_73 : f32 to vector<8x128xf32>
    %152 = arith.mulf %151, %150 : vector<8x128xf32>
    %153 = arith.mulf %142, %118 : vector<8x128xf32>
    %154 = arith.mulf %134, %144 : vector<8x128xf32>
    %155 = arith.addf %153, %154 : vector<8x128xf32>
    %156 = math.tanh %155 : vector<8x128xf32>
    %157 = arith.mulf %152, %156 : vector<8x128xf32>
    %c24_74 = arith.constant 24 : index
    %c0_75 = arith.constant 0 : index
    %158 = vector.load %arg7[%c24_74, %c0_75] : memref<64x128xf32, #tpu.memory_space<vmem>>, vector<8x128xf32>
    tpu.vector_store %arg7[%c24_74, %c0_75], %157 {strides = array<i32>} : memref<64x128xf32, #tpu.memory_space<vmem>>, vector<8x128xf32>,
    %c32 = arith.constant 32 : index
    %c0_76 = arith.constant 0 : index
    %159 = vector.load %arg8[%c32, %c0_76] : memref<64x512xf32, #tpu.memory_space<vmem>>, vector<8x512xf32>
    %c0_77 = arith.constant 0 : index
    %c0_78 = arith.constant 0 : index
    %c0_79 = arith.constant 0 : index
    %160 = vector.load %arg2[%c0_77, %c0_78, %c0_79] : memref<2x128x512xf32, #tpu.memory_space<vmem>>, vector<1x128x512xf32>
    %161 = vector.shape_cast %160 : vector<1x128x512xf32> to vector<128x512xf32>
    %cst_80 = arith.constant dense<0.000000e+00> : vector<8x512xf32>
    %162 = tpu.matmul %157, %161, %cst_80 {dimension_numbers = #tpu.dot_dimension_numbers<[1], [0], [0], [1], [0, 0, 1, 1], [], []>} : vector<8x128xf32>, vector<128x512xf32>, vector<8x512xf32> -> vector<8x512xf32>
    %163 = arith.addf %159, %162 : vector<8x512xf32>
    %164 = vector.extract_strided_slice %163 {offsets = [0, 0], sizes = [8, 128], strides = [1, 1]} : vector<8x512xf32> to vector<8x128xf32>
    %cst_81 = arith.constant 5.000000e-01 : f32
    %165 = vector.broadcast %cst_81 : f32 to vector<8x128xf32>
    %166 = arith.mulf %165, %164 : vector<8x128xf32>
    %167 = math.tanh %166 : vector<8x128xf32>
    %cst_82 = arith.constant 1.000000e+00 : f32
    %168 = vector.broadcast %cst_82 : f32 to vector<8x128xf32>
    %169 = arith.addf %167, %168 : vector<8x128xf32>
    %cst_83 = arith.constant 5.000000e-01 : f32
    %170 = vector.broadcast %cst_83 : f32 to vector<8x128xf32>
    %171 = arith.mulf %170, %169 : vector<8x128xf32>
    %172 = vector.extract_strided_slice %163 {offsets = [0, 128], sizes = [8, 128], strides = [1, 1]} : vector<8x512xf32> to vector<8x128xf32>
    %cst_84 = arith.constant 5.000000e-01 : f32
    %173 = vector.broadcast %cst_84 : f32 to vector<8x128xf32>
    %174 = arith.mulf %173, %172 : vector<8x128xf32>
    %175 = math.tanh %174 : vector<8x128xf32>
    %cst_85 = arith.constant 1.000000e+00 : f32
    %176 = vector.broadcast %cst_85 : f32 to vector<8x128xf32>
    %177 = arith.addf %175, %176 : vector<8x128xf32>
    %cst_86 = arith.constant 5.000000e-01 : f32
    %178 = vector.broadcast %cst_86 : f32 to vector<8x128xf32>
    %179 = arith.mulf %178, %177 : vector<8x128xf32>
    %180 = vector.extract_strided_slice %163 {offsets = [0, 256], sizes = [8, 128], strides = [1, 1]} : vector<8x512xf32> to vector<8x128xf32>
    %181 = math.tanh %180 : vector<8x128xf32>
    %182 = vector.extract_strided_slice %163 {offsets = [0, 384], sizes = [8, 128], strides = [1, 1]} : vector<8x512xf32> to vector<8x128xf32>
    %cst_87 = arith.constant 5.000000e-01 : f32
    %183 = vector.broadcast %cst_87 : f32 to vector<8x128xf32>
    %184 = arith.mulf %183, %182 : vector<8x128xf32>
    %185 = math.tanh %184 : vector<8x128xf32>
    %cst_88 = arith.constant 1.000000e+00 : f32
    %186 = vector.broadcast %cst_88 : f32 to vector<8x128xf32>
    %187 = arith.addf %185, %186 : vector<8x128xf32>
    %cst_89 = arith.constant 5.000000e-01 : f32
    %188 = vector.broadcast %cst_89 : f32 to vector<8x128xf32>
    %189 = arith.mulf %188, %187 : vector<8x128xf32>
    %190 = arith.mulf %179, %155 : vector<8x128xf32>
    %191 = arith.mulf %171, %181 : vector<8x128xf32>
    %192 = arith.addf %190, %191 : vector<8x128xf32>
    %193 = math.tanh %192 : vector<8x128xf32>
    %194 = arith.mulf %189, %193 : vector<8x128xf32>
    %c32_90 = arith.constant 32 : index
    %c0_91 = arith.constant 0 : index
    %195 = vector.load %arg7[%c32_90, %c0_91] : memref<64x128xf32, #tpu.memory_space<vmem>>, vector<8x128xf32>
    tpu.vector_store %arg7[%c32_90, %c0_91], %194 {strides = array<i32>} : memref<64x128xf32, #tpu.memory_space<vmem>>, vector<8x128xf32>,
    %c40 = arith.constant 40 : index
    %c0_92 = arith.constant 0 : index
    %196 = vector.load %arg8[%c40, %c0_92] : memref<64x512xf32, #tpu.memory_space<vmem>>, vector<8x512xf32>
    %c0_93 = arith.constant 0 : index
    %c0_94 = arith.constant 0 : index
    %c0_95 = arith.constant 0 : index
    %197 = vector.load %arg2[%c0_93, %c0_94, %c0_95] : memref<2x128x512xf32, #tpu.memory_space<vmem>>, vector<1x128x512xf32>
    %198 = vector.shape_cast %197 : vector<1x128x512xf32> to vector<128x512xf32>
    %cst_96 = arith.constant dense<0.000000e+00> : vector<8x512xf32>
    %199 = tpu.matmul %194, %198, %cst_96 {dimension_numbers = #tpu.dot_dimension_numbers<[1], [0], [0], [1], [0, 0, 1, 1], [], []>} : vector<8x128xf32>, vector<128x512xf32>, vector<8x512xf32> -> vector<8x512xf32>
    %200 = arith.addf %196, %199 : vector<8x512xf32>
    %201 = vector.extract_strided_slice %200 {offsets = [0, 0], sizes = [8, 128], strides = [1, 1]} : vector<8x512xf32> to vector<8x128xf32>
    %cst_97 = arith.constant 5.000000e-01 : f32
    %202 = vector.broadcast %cst_97 : f32 to vector<8x128xf32>
    %203 = arith.mulf %202, %201 : vector<8x128xf32>
    %204 = math.tanh %203 : vector<8x128xf32>
    %cst_98 = arith.constant 1.000000e+00 : f32
    %205 = vector.broadcast %cst_98 : f32 to vector<8x128xf32>
    %206 = arith.addf %204, %205 : vector<8x128xf32>
    %cst_99 = arith.constant 5.000000e-01 : f32
    %207 = vector.broadcast %cst_99 : f32 to vector<8x128xf32>
    %208 = arith.mulf %207, %206 : vector<8x128xf32>
    %209 = vector.extract_strided_slice %200 {offsets = [0, 128], sizes = [8, 128], strides = [1, 1]} : vector<8x512xf32> to vector<8x128xf32>
    %cst_100 = arith.constant 5.000000e-01 : f32
    %210 = vector.broadcast %cst_100 : f32 to vector<8x128xf32>
    %211 = arith.mulf %210, %209 : vector<8x128xf32>
    %212 = math.tanh %211 : vector<8x128xf32>
    %cst_101 = arith.constant 1.000000e+00 : f32
    %213 = vector.broadcast %cst_101 : f32 to vector<8x128xf32>
    %214 = arith.addf %212, %213 : vector<8x128xf32>
    %cst_102 = arith.constant 5.000000e-01 : f32
    %215 = vector.broadcast %cst_102 : f32 to vector<8x128xf32>
    %216 = arith.mulf %215, %214 : vector<8x128xf32>
    %217 = vector.extract_strided_slice %200 {offsets = [0, 256], sizes = [8, 128], strides = [1, 1]} : vector<8x512xf32> to vector<8x128xf32>
    %218 = math.tanh %217 : vector<8x128xf32>
    %219 = vector.extract_strided_slice %200 {offsets = [0, 384], sizes = [8, 128], strides = [1, 1]} : vector<8x512xf32> to vector<8x128xf32>
    %cst_103 = arith.constant 5.000000e-01 : f32
    %220 = vector.broadcast %cst_103 : f32 to vector<8x128xf32>
    %221 = arith.mulf %220, %219 : vector<8x128xf32>
    %222 = math.tanh %221 : vector<8x128xf32>
    %cst_104 = arith.constant 1.000000e+00 : f32
    %223 = vector.broadcast %cst_104 : f32 to vector<8x128xf32>
    %224 = arith.addf %222, %223 : vector<8x128xf32>
    %cst_105 = arith.constant 5.000000e-01 : f32
    %225 = vector.broadcast %cst_105 : f32 to vector<8x128xf32>
    %226 = arith.mulf %225, %224 : vector<8x128xf32>
    %227 = arith.mulf %216, %192 : vector<8x128xf32>
    %228 = arith.mulf %208, %218 : vector<8x128xf32>
    %229 = arith.addf %227, %228 : vector<8x128xf32>
    %230 = math.tanh %229 : vector<8x128xf32>
    %231 = arith.mulf %226, %230 : vector<8x128xf32>
    %c40_106 = arith.constant 40 : index
    %c0_107 = arith.constant 0 : index
    %232 = vector.load %arg7[%c40_106, %c0_107] : memref<64x128xf32, #tpu.memory_space<vmem>>, vector<8x128xf32>
    tpu.vector_store %arg7[%c40_106, %c0_107], %231 {strides = array<i32>} : memref<64x128xf32, #tpu.memory_space<vmem>>, vector<8x128xf32>,
    %c48 = arith.constant 48 : index
    %c0_108 = arith.constant 0 : index
    %233 = vector.load %arg8[%c48, %c0_108] : memref<64x512xf32, #tpu.memory_space<vmem>>, vector<8x512xf32>
    %c0_109 = arith.constant 0 : index
    %c0_110 = arith.constant 0 : index
    %c0_111 = arith.constant 0 : index
    %234 = vector.load %arg2[%c0_109, %c0_110, %c0_111] : memref<2x128x512xf32, #tpu.memory_space<vmem>>, vector<1x128x512xf32>
    %235 = vector.shape_cast %234 : vector<1x128x512xf32> to vector<128x512xf32>
    %cst_112 = arith.constant dense<0.000000e+00> : vector<8x512xf32>
    %236 = tpu.matmul %231, %235, %cst_112 {dimension_numbers = #tpu.dot_dimension_numbers<[1], [0], [0], [1], [0, 0, 1, 1], [], []>} : vector<8x128xf32>, vector<128x512xf32>, vector<8x512xf32> -> vector<8x512xf32>
    %237 = arith.addf %233, %236 : vector<8x512xf32>
    %238 = vector.extract_strided_slice %237 {offsets = [0, 0], sizes = [8, 128], strides = [1, 1]} : vector<8x512xf32> to vector<8x128xf32>
    %cst_113 = arith.constant 5.000000e-01 : f32
    %239 = vector.broadcast %cst_113 : f32 to vector<8x128xf32>
    %240 = arith.mulf %239, %238 : vector<8x128xf32>
    %241 = math.tanh %240 : vector<8x128xf32>
    %cst_114 = arith.constant 1.000000e+00 : f32
    %242 = vector.broadcast %cst_114 : f32 to vector<8x128xf32>
    %243 = arith.addf %241, %242 : vector<8x128xf32>
    %cst_115 = arith.constant 5.000000e-01 : f32
    %244 = vector.broadcast %cst_115 : f32 to vector<8x128xf32>
    %245 = arith.mulf %244, %243 : vector<8x128xf32>
    %246 = vector.extract_strided_slice %237 {offsets = [0, 128], sizes = [8, 128], strides = [1, 1]} : vector<8x512xf32> to vector<8x128xf32>
    %cst_116 = arith.constant 5.000000e-01 : f32
    %247 = vector.broadcast %cst_116 : f32 to vector<8x128xf32>
    %248 = arith.mulf %247, %246 : vector<8x128xf32>
    %249 = math.tanh %248 : vector<8x128xf32>
    %cst_117 = arith.constant 1.000000e+00 : f32
    %250 = vector.broadcast %cst_117 : f32 to vector<8x128xf32>
    %251 = arith.addf %249, %250 : vector<8x128xf32>
    %cst_118 = arith.constant 5.000000e-01 : f32
    %252 = vector.broadcast %cst_118 : f32 to vector<8x128xf32>
    %253 = arith.mulf %252, %251 : vector<8x128xf32>
    %254 = vector.extract_strided_slice %237 {offsets = [0, 256], sizes = [8, 128], strides = [1, 1]} : vector<8x512xf32> to vector<8x128xf32>
    %255 = math.tanh %254 : vector<8x128xf32>
    %256 = vector.extract_strided_slice %237 {offsets = [0, 384], sizes = [8, 128], strides = [1, 1]} : vector<8x512xf32> to vector<8x128xf32>
    %cst_119 = arith.constant 5.000000e-01 : f32
    %257 = vector.broadcast %cst_119 : f32 to vector<8x128xf32>
    %258 = arith.mulf %257, %256 : vector<8x128xf32>
    %259 = math.tanh %258 : vector<8x128xf32>
    %cst_120 = arith.constant 1.000000e+00 : f32
    %260 = vector.broadcast %cst_120 : f32 to vector<8x128xf32>
    %261 = arith.addf %259, %260 : vector<8x128xf32>
    %cst_121 = arith.constant 5.000000e-01 : f32
    %262 = vector.broadcast %cst_121 : f32 to vector<8x128xf32>
    %263 = arith.mulf %262, %261 : vector<8x128xf32>
    %264 = arith.mulf %253, %229 : vector<8x128xf32>
    %265 = arith.mulf %245, %255 : vector<8x128xf32>
    %266 = arith.addf %264, %265 : vector<8x128xf32>
    %267 = math.tanh %266 : vector<8x128xf32>
    %268 = arith.mulf %263, %267 : vector<8x128xf32>
    %c48_122 = arith.constant 48 : index
    %c0_123 = arith.constant 0 : index
    %269 = vector.load %arg7[%c48_122, %c0_123] : memref<64x128xf32, #tpu.memory_space<vmem>>, vector<8x128xf32>
    tpu.vector_store %arg7[%c48_122, %c0_123], %268 {strides = array<i32>} : memref<64x128xf32, #tpu.memory_space<vmem>>, vector<8x128xf32>,
    %c56 = arith.constant 56 : index
    %c0_124 = arith.constant 0 : index
    %270 = vector.load %arg8[%c56, %c0_124] : memref<64x512xf32, #tpu.memory_space<vmem>>, vector<8x512xf32>
    %c0_125 = arith.constant 0 : index
    %c0_126 = arith.constant 0 : index
    %c0_127 = arith.constant 0 : index
    %271 = vector.load %arg2[%c0_125, %c0_126, %c0_127] : memref<2x128x512xf32, #tpu.memory_space<vmem>>, vector<1x128x512xf32>
    %272 = vector.shape_cast %271 : vector<1x128x512xf32> to vector<128x512xf32>
    %cst_128 = arith.constant dense<0.000000e+00> : vector<8x512xf32>
    %273 = tpu.matmul %268, %272, %cst_128 {dimension_numbers = #tpu.dot_dimension_numbers<[1], [0], [0], [1], [0, 0, 1, 1], [], []>} : vector<8x128xf32>, vector<128x512xf32>, vector<8x512xf32> -> vector<8x512xf32>
    %274 = arith.addf %270, %273 : vector<8x512xf32>
    %275 = vector.extract_strided_slice %274 {offsets = [0, 0], sizes = [8, 128], strides = [1, 1]} : vector<8x512xf32> to vector<8x128xf32>
    %cst_129 = arith.constant 5.000000e-01 : f32
    %276 = vector.broadcast %cst_129 : f32 to vector<8x128xf32>
    %277 = arith.mulf %276, %275 : vector<8x128xf32>
    %278 = math.tanh %277 : vector<8x128xf32>
    %cst_130 = arith.constant 1.000000e+00 : f32
    %279 = vector.broadcast %cst_130 : f32 to vector<8x128xf32>
    %280 = arith.addf %278, %279 : vector<8x128xf32>
    %cst_131 = arith.constant 5.000000e-01 : f32
    %281 = vector.broadcast %cst_131 : f32 to vector<8x128xf32>
    %282 = arith.mulf %281, %280 : vector<8x128xf32>
    %283 = vector.extract_strided_slice %274 {offsets = [0, 128], sizes = [8, 128], strides = [1, 1]} : vector<8x512xf32> to vector<8x128xf32>
    %cst_132 = arith.constant 5.000000e-01 : f32
    %284 = vector.broadcast %cst_132 : f32 to vector<8x128xf32>
    %285 = arith.mulf %284, %283 : vector<8x128xf32>
    %286 = math.tanh %285 : vector<8x128xf32>
    %cst_133 = arith.constant 1.000000e+00 : f32
    %287 = vector.broadcast %cst_133 : f32 to vector<8x128xf32>
    %288 = arith.addf %286, %287 : vector<8x128xf32>
    %cst_134 = arith.constant 5.000000e-01 : f32
    %289 = vector.broadcast %cst_134 : f32 to vector<8x128xf32>
    %290 = arith.mulf %289, %288 : vector<8x128xf32>
    %291 = vector.extract_strided_slice %274 {offsets = [0, 256], sizes = [8, 128], strides = [1, 1]} : vector<8x512xf32> to vector<8x128xf32>
    %292 = math.tanh %291 : vector<8x128xf32>
    %293 = vector.extract_strided_slice %274 {offsets = [0, 384], sizes = [8, 128], strides = [1, 1]} : vector<8x512xf32> to vector<8x128xf32>
    %cst_135 = arith.constant 5.000000e-01 : f32
    %294 = vector.broadcast %cst_135 : f32 to vector<8x128xf32>
    %295 = arith.mulf %294, %293 : vector<8x128xf32>
    %296 = math.tanh %295 : vector<8x128xf32>
    %cst_136 = arith.constant 1.000000e+00 : f32
    %297 = vector.broadcast %cst_136 : f32 to vector<8x128xf32>
    %298 = arith.addf %296, %297 : vector<8x128xf32>
    %cst_137 = arith.constant 5.000000e-01 : f32
    %299 = vector.broadcast %cst_137 : f32 to vector<8x128xf32>
    %300 = arith.mulf %299, %298 : vector<8x128xf32>
    %301 = arith.mulf %290, %266 : vector<8x128xf32>
    %302 = arith.mulf %282, %292 : vector<8x128xf32>
    %303 = arith.addf %301, %302 : vector<8x128xf32>
    %304 = math.tanh %303 : vector<8x128xf32>
    %305 = arith.mulf %300, %304 : vector<8x128xf32>
    %c56_138 = arith.constant 56 : index
    %c0_139 = arith.constant 0 : index
    %306 = vector.load %arg7[%c56_138, %c0_139] : memref<64x128xf32, #tpu.memory_space<vmem>>, vector<8x128xf32>
    tpu.vector_store %arg7[%c56_138, %c0_139], %305 {strides = array<i32>} : memref<64x128xf32, #tpu.memory_space<vmem>>, vector<8x128xf32>,
    %c0_140 = arith.constant 0 : index
    %c0_141 = arith.constant 0 : index
    %307 = vector.load %arg7[%c0_140, %c0_141] : memref<64x128xf32, #tpu.memory_space<vmem>>, vector<64x128xf32>
    %c1 = arith.constant 1 : index
    %c0_142 = arith.constant 0 : index
    %c0_143 = arith.constant 0 : index
    %308 = vector.load %arg1[%c1, %c0_142, %c0_143] : memref<2x128x512xf32, #tpu.memory_space<vmem>>, vector<1x128x512xf32>
    %309 = vector.shape_cast %308 : vector<1x128x512xf32> to vector<128x512xf32>
    %cst_144 = arith.constant dense<0.000000e+00> : vector<64x512xf32>
    %310 = tpu.matmul %307, %309, %cst_144 {dimension_numbers = #tpu.dot_dimension_numbers<[1], [0], [0], [1], [0, 0, 1, 1], [], []>} : vector<64x128xf32>, vector<128x512xf32>, vector<64x512xf32> -> vector<64x512xf32>
    %c1_145 = arith.constant 1 : index
    %c0_146 = arith.constant 0 : index
    %c0_147 = arith.constant 0 : index
    %311 = vector.load %arg3[%c1_145, %c0_146, %c0_147] : memref<2x1x512xf32, #tpu.memory_space<vmem>>, vector<1x1x512xf32>
    %312 = vector.shape_cast %311 : vector<1x1x512xf32> to vector<1x512xf32>
    %313 = vector.broadcast %312 : vector<1x512xf32> to vector<64x512xf32>
    %314 = arith.addf %310, %313 : vector<64x512xf32>
    %c0_148 = arith.constant 0 : index
    %c0_149 = arith.constant 0 : index
    %315 = vector.load %arg8[%c0_148, %c0_149] : memref<64x512xf32, #tpu.memory_space<vmem>>, vector<64x512xf32>
    tpu.vector_store %arg8[%c0_148, %c0_149], %314 {strides = array<i32>} : memref<64x512xf32, #tpu.memory_space<vmem>>, vector<64x512xf32>,
    %cst_150 = arith.constant 0.000000e+00 : f32
    %316 = vector.broadcast %cst_150 : f32 to vector<8x128xf32>
    %cst_151 = arith.constant 0.000000e+00 : f32
    %317 = vector.broadcast %cst_151 : f32 to vector<8x128xf32>
    %c0_152 = arith.constant 0 : index
    %c0_153 = arith.constant 0 : index
    %318 = vector.load %arg8[%c0_152, %c0_153] : memref<64x512xf32, #tpu.memory_space<vmem>>, vector<8x512xf32>
    %c1_154 = arith.constant 1 : index
    %c0_155 = arith.constant 0 : index
    %c0_156 = arith.constant 0 : index
    %319 = vector.load %arg2[%c1_154, %c0_155, %c0_156] : memref<2x128x512xf32, #tpu.memory_space<vmem>>, vector<1x128x512xf32>
    %320 = vector.shape_cast %319 : vector<1x128x512xf32> to vector<128x512xf32>
    %cst_157 = arith.constant dense<0.000000e+00> : vector<8x512xf32>
    %321 = tpu.matmul %316, %320, %cst_157 {dimension_numbers = #tpu.dot_dimension_numbers<[1], [0], [0], [1], [0, 0, 1, 1], [], []>} : vector<8x128xf32>, vector<128x512xf32>, vector<8x512xf32> -> vector<8x512xf32>
    %322 = arith.addf %318, %321 : vector<8x512xf32>
    %323 = vector.extract_strided_slice %322 {offsets = [0, 0], sizes = [8, 128], strides = [1, 1]} : vector<8x512xf32> to vector<8x128xf32>
    %cst_158 = arith.constant 5.000000e-01 : f32
    %324 = vector.broadcast %cst_158 : f32 to vector<8x128xf32>
    %325 = arith.mulf %324, %323 : vector<8x128xf32>
    %326 = math.tanh %325 : vector<8x128xf32>
    %cst_159 = arith.constant 1.000000e+00 : f32
    %327 = vector.broadcast %cst_159 : f32 to vector<8x128xf32>
    %328 = arith.addf %326, %327 : vector<8x128xf32>
    %cst_160 = arith.constant 5.000000e-01 : f32
    %329 = vector.broadcast %cst_160 : f32 to vector<8x128xf32>
    %330 = arith.mulf %329, %328 : vector<8x128xf32>
    %331 = vector.extract_strided_slice %322 {offsets = [0, 128], sizes = [8, 128], strides = [1, 1]} : vector<8x512xf32> to vector<8x128xf32>
    %cst_161 = arith.constant 5.000000e-01 : f32
    %332 = vector.broadcast %cst_161 : f32 to vector<8x128xf32>
    %333 = arith.mulf %332, %331 : vector<8x128xf32>
    %334 = math.tanh %333 : vector<8x128xf32>
    %cst_162 = arith.constant 1.000000e+00 : f32
    %335 = vector.broadcast %cst_162 : f32 to vector<8x128xf32>
    %336 = arith.addf %334, %335 : vector<8x128xf32>
    %cst_163 = arith.constant 5.000000e-01 : f32
    %337 = vector.broadcast %cst_163 : f32 to vector<8x128xf32>
    %338 = arith.mulf %337, %336 : vector<8x128xf32>
    %339 = vector.extract_strided_slice %322 {offsets = [0, 256], sizes = [8, 128], strides = [1, 1]} : vector<8x512xf32> to vector<8x128xf32>
    %340 = math.tanh %339 : vector<8x128xf32>
    %341 = vector.extract_strided_slice %322 {offsets = [0, 384], sizes = [8, 128], strides = [1, 1]} : vector<8x512xf32> to vector<8x128xf32>
    %cst_164 = arith.constant 5.000000e-01 : f32
    %342 = vector.broadcast %cst_164 : f32 to vector<8x128xf32>
    %343 = arith.mulf %342, %341 : vector<8x128xf32>
    %344 = math.tanh %343 : vector<8x128xf32>
    %cst_165 = arith.constant 1.000000e+00 : f32
    %345 = vector.broadcast %cst_165 : f32 to vector<8x128xf32>
    %346 = arith.addf %344, %345 : vector<8x128xf32>
    %cst_166 = arith.constant 5.000000e-01 : f32
    %347 = vector.broadcast %cst_166 : f32 to vector<8x128xf32>
    %348 = arith.mulf %347, %346 : vector<8x128xf32>
    %349 = arith.mulf %338, %317 : vector<8x128xf32>
    %350 = arith.mulf %330, %340 : vector<8x128xf32>
    %351 = arith.addf %349, %350 : vector<8x128xf32>
    %352 = math.tanh %351 : vector<8x128xf32>
    %353 = arith.mulf %348, %352 : vector<8x128xf32>
    %c8_167 = arith.constant 8 : index
    %c0_168 = arith.constant 0 : index
    %354 = vector.load %arg8[%c8_167, %c0_168] : memref<64x512xf32, #tpu.memory_space<vmem>>, vector<8x512xf32>
    %c1_169 = arith.constant 1 : index
    %c0_170 = arith.constant 0 : index
    %c0_171 = arith.constant 0 : index
    %355 = vector.load %arg2[%c1_169, %c0_170, %c0_171] : memref<2x128x512xf32, #tpu.memory_space<vmem>>, vector<1x128x512xf32>
    %356 = vector.shape_cast %355 : vector<1x128x512xf32> to vector<128x512xf32>
    %cst_172 = arith.constant dense<0.000000e+00> : vector<8x512xf32>
    %357 = tpu.matmul %353, %356, %cst_172 {dimension_numbers = #tpu.dot_dimension_numbers<[1], [0], [0], [1], [0, 0, 1, 1], [], []>} : vector<8x128xf32>, vector<128x512xf32>, vector<8x512xf32> -> vector<8x512xf32>
    %358 = arith.addf %354, %357 : vector<8x512xf32>
    %359 = vector.extract_strided_slice %358 {offsets = [0, 0], sizes = [8, 128], strides = [1, 1]} : vector<8x512xf32> to vector<8x128xf32>
    %cst_173 = arith.constant 5.000000e-01 : f32
    %360 = vector.broadcast %cst_173 : f32 to vector<8x128xf32>
    %361 = arith.mulf %360, %359 : vector<8x128xf32>
    %362 = math.tanh %361 : vector<8x128xf32>
    %cst_174 = arith.constant 1.000000e+00 : f32
    %363 = vector.broadcast %cst_174 : f32 to vector<8x128xf32>
    %364 = arith.addf %362, %363 : vector<8x128xf32>
    %cst_175 = arith.constant 5.000000e-01 : f32
    %365 = vector.broadcast %cst_175 : f32 to vector<8x128xf32>
    %366 = arith.mulf %365, %364 : vector<8x128xf32>
    %367 = vector.extract_strided_slice %358 {offsets = [0, 128], sizes = [8, 128], strides = [1, 1]} : vector<8x512xf32> to vector<8x128xf32>
    %cst_176 = arith.constant 5.000000e-01 : f32
    %368 = vector.broadcast %cst_176 : f32 to vector<8x128xf32>
    %369 = arith.mulf %368, %367 : vector<8x128xf32>
    %370 = math.tanh %369 : vector<8x128xf32>
    %cst_177 = arith.constant 1.000000e+00 : f32
    %371 = vector.broadcast %cst_177 : f32 to vector<8x128xf32>
    %372 = arith.addf %370, %371 : vector<8x128xf32>
    %cst_178 = arith.constant 5.000000e-01 : f32
    %373 = vector.broadcast %cst_178 : f32 to vector<8x128xf32>
    %374 = arith.mulf %373, %372 : vector<8x128xf32>
    %375 = vector.extract_strided_slice %358 {offsets = [0, 256], sizes = [8, 128], strides = [1, 1]} : vector<8x512xf32> to vector<8x128xf32>
    %376 = math.tanh %375 : vector<8x128xf32>
    %377 = vector.extract_strided_slice %358 {offsets = [0, 384], sizes = [8, 128], strides = [1, 1]} : vector<8x512xf32> to vector<8x128xf32>
    %cst_179 = arith.constant 5.000000e-01 : f32
    %378 = vector.broadcast %cst_179 : f32 to vector<8x128xf32>
    %379 = arith.mulf %378, %377 : vector<8x128xf32>
    %380 = math.tanh %379 : vector<8x128xf32>
    %cst_180 = arith.constant 1.000000e+00 : f32
    %381 = vector.broadcast %cst_180 : f32 to vector<8x128xf32>
    %382 = arith.addf %380, %381 : vector<8x128xf32>
    %cst_181 = arith.constant 5.000000e-01 : f32
    %383 = vector.broadcast %cst_181 : f32 to vector<8x128xf32>
    %384 = arith.mulf %383, %382 : vector<8x128xf32>
    %385 = arith.mulf %374, %351 : vector<8x128xf32>
    %386 = arith.mulf %366, %376 : vector<8x128xf32>
    %387 = arith.addf %385, %386 : vector<8x128xf32>
    %388 = math.tanh %387 : vector<8x128xf32>
    %389 = arith.mulf %384, %388 : vector<8x128xf32>
    %c16_182 = arith.constant 16 : index
    %c0_183 = arith.constant 0 : index
    %390 = vector.load %arg8[%c16_182, %c0_183] : memref<64x512xf32, #tpu.memory_space<vmem>>, vector<8x512xf32>
    %c1_184 = arith.constant 1 : index
    %c0_185 = arith.constant 0 : index
    %c0_186 = arith.constant 0 : index
    %391 = vector.load %arg2[%c1_184, %c0_185, %c0_186] : memref<2x128x512xf32, #tpu.memory_space<vmem>>, vector<1x128x512xf32>
    %392 = vector.shape_cast %391 : vector<1x128x512xf32> to vector<128x512xf32>
    %cst_187 = arith.constant dense<0.000000e+00> : vector<8x512xf32>
    %393 = tpu.matmul %389, %392, %cst_187 {dimension_numbers = #tpu.dot_dimension_numbers<[1], [0], [0], [1], [0, 0, 1, 1], [], []>} : vector<8x128xf32>, vector<128x512xf32>, vector<8x512xf32> -> vector<8x512xf32>
    %394 = arith.addf %390, %393 : vector<8x512xf32>
    %395 = vector.extract_strided_slice %394 {offsets = [0, 0], sizes = [8, 128], strides = [1, 1]} : vector<8x512xf32> to vector<8x128xf32>
    %cst_188 = arith.constant 5.000000e-01 : f32
    %396 = vector.broadcast %cst_188 : f32 to vector<8x128xf32>
    %397 = arith.mulf %396, %395 : vector<8x128xf32>
    %398 = math.tanh %397 : vector<8x128xf32>
    %cst_189 = arith.constant 1.000000e+00 : f32
    %399 = vector.broadcast %cst_189 : f32 to vector<8x128xf32>
    %400 = arith.addf %398, %399 : vector<8x128xf32>
    %cst_190 = arith.constant 5.000000e-01 : f32
    %401 = vector.broadcast %cst_190 : f32 to vector<8x128xf32>
    %402 = arith.mulf %401, %400 : vector<8x128xf32>
    %403 = vector.extract_strided_slice %394 {offsets = [0, 128], sizes = [8, 128], strides = [1, 1]} : vector<8x512xf32> to vector<8x128xf32>
    %cst_191 = arith.constant 5.000000e-01 : f32
    %404 = vector.broadcast %cst_191 : f32 to vector<8x128xf32>
    %405 = arith.mulf %404, %403 : vector<8x128xf32>
    %406 = math.tanh %405 : vector<8x128xf32>
    %cst_192 = arith.constant 1.000000e+00 : f32
    %407 = vector.broadcast %cst_192 : f32 to vector<8x128xf32>
    %408 = arith.addf %406, %407 : vector<8x128xf32>
    %cst_193 = arith.constant 5.000000e-01 : f32
    %409 = vector.broadcast %cst_193 : f32 to vector<8x128xf32>
    %410 = arith.mulf %409, %408 : vector<8x128xf32>
    %411 = vector.extract_strided_slice %394 {offsets = [0, 256], sizes = [8, 128], strides = [1, 1]} : vector<8x512xf32> to vector<8x128xf32>
    %412 = math.tanh %411 : vector<8x128xf32>
    %413 = vector.extract_strided_slice %394 {offsets = [0, 384], sizes = [8, 128], strides = [1, 1]} : vector<8x512xf32> to vector<8x128xf32>
    %cst_194 = arith.constant 5.000000e-01 : f32
    %414 = vector.broadcast %cst_194 : f32 to vector<8x128xf32>
    %415 = arith.mulf %414, %413 : vector<8x128xf32>
    %416 = math.tanh %415 : vector<8x128xf32>
    %cst_195 = arith.constant 1.000000e+00 : f32
    %417 = vector.broadcast %cst_195 : f32 to vector<8x128xf32>
    %418 = arith.addf %416, %417 : vector<8x128xf32>
    %cst_196 = arith.constant 5.000000e-01 : f32
    %419 = vector.broadcast %cst_196 : f32 to vector<8x128xf32>
    %420 = arith.mulf %419, %418 : vector<8x128xf32>
    %421 = arith.mulf %410, %387 : vector<8x128xf32>
    %422 = arith.mulf %402, %412 : vector<8x128xf32>
    %423 = arith.addf %421, %422 : vector<8x128xf32>
    %424 = math.tanh %423 : vector<8x128xf32>
    %425 = arith.mulf %420, %424 : vector<8x128xf32>
    %c24_197 = arith.constant 24 : index
    %c0_198 = arith.constant 0 : index
    %426 = vector.load %arg8[%c24_197, %c0_198] : memref<64x512xf32, #tpu.memory_space<vmem>>, vector<8x512xf32>
    %c1_199 = arith.constant 1 : index
    %c0_200 = arith.constant 0 : index
    %c0_201 = arith.constant 0 : index
    %427 = vector.load %arg2[%c1_199, %c0_200, %c0_201] : memref<2x128x512xf32, #tpu.memory_space<vmem>>, vector<1x128x512xf32>
    %428 = vector.shape_cast %427 : vector<1x128x512xf32> to vector<128x512xf32>
    %cst_202 = arith.constant dense<0.000000e+00> : vector<8x512xf32>
    %429 = tpu.matmul %425, %428, %cst_202 {dimension_numbers = #tpu.dot_dimension_numbers<[1], [0], [0], [1], [0, 0, 1, 1], [], []>} : vector<8x128xf32>, vector<128x512xf32>, vector<8x512xf32> -> vector<8x512xf32>
    %430 = arith.addf %426, %429 : vector<8x512xf32>
    %431 = vector.extract_strided_slice %430 {offsets = [0, 0], sizes = [8, 128], strides = [1, 1]} : vector<8x512xf32> to vector<8x128xf32>
    %cst_203 = arith.constant 5.000000e-01 : f32
    %432 = vector.broadcast %cst_203 : f32 to vector<8x128xf32>
    %433 = arith.mulf %432, %431 : vector<8x128xf32>
    %434 = math.tanh %433 : vector<8x128xf32>
    %cst_204 = arith.constant 1.000000e+00 : f32
    %435 = vector.broadcast %cst_204 : f32 to vector<8x128xf32>
    %436 = arith.addf %434, %435 : vector<8x128xf32>
    %cst_205 = arith.constant 5.000000e-01 : f32
    %437 = vector.broadcast %cst_205 : f32 to vector<8x128xf32>
    %438 = arith.mulf %437, %436 : vector<8x128xf32>
    %439 = vector.extract_strided_slice %430 {offsets = [0, 128], sizes = [8, 128], strides = [1, 1]} : vector<8x512xf32> to vector<8x128xf32>
    %cst_206 = arith.constant 5.000000e-01 : f32
    %440 = vector.broadcast %cst_206 : f32 to vector<8x128xf32>
    %441 = arith.mulf %440, %439 : vector<8x128xf32>
    %442 = math.tanh %441 : vector<8x128xf32>
    %cst_207 = arith.constant 1.000000e+00 : f32
    %443 = vector.broadcast %cst_207 : f32 to vector<8x128xf32>
    %444 = arith.addf %442, %443 : vector<8x128xf32>
    %cst_208 = arith.constant 5.000000e-01 : f32
    %445 = vector.broadcast %cst_208 : f32 to vector<8x128xf32>
    %446 = arith.mulf %445, %444 : vector<8x128xf32>
    %447 = vector.extract_strided_slice %430 {offsets = [0, 256], sizes = [8, 128], strides = [1, 1]} : vector<8x512xf32> to vector<8x128xf32>
    %448 = math.tanh %447 : vector<8x128xf32>
    %449 = vector.extract_strided_slice %430 {offsets = [0, 384], sizes = [8, 128], strides = [1, 1]} : vector<8x512xf32> to vector<8x128xf32>
    %cst_209 = arith.constant 5.000000e-01 : f32
    %450 = vector.broadcast %cst_209 : f32 to vector<8x128xf32>
    %451 = arith.mulf %450, %449 : vector<8x128xf32>
    %452 = math.tanh %451 : vector<8x128xf32>
    %cst_210 = arith.constant 1.000000e+00 : f32
    %453 = vector.broadcast %cst_210 : f32 to vector<8x128xf32>
    %454 = arith.addf %452, %453 : vector<8x128xf32>
    %cst_211 = arith.constant 5.000000e-01 : f32
    %455 = vector.broadcast %cst_211 : f32 to vector<8x128xf32>
    %456 = arith.mulf %455, %454 : vector<8x128xf32>
    %457 = arith.mulf %446, %423 : vector<8x128xf32>
    %458 = arith.mulf %438, %448 : vector<8x128xf32>
    %459 = arith.addf %457, %458 : vector<8x128xf32>
    %460 = math.tanh %459 : vector<8x128xf32>
    %461 = arith.mulf %456, %460 : vector<8x128xf32>
    %c32_212 = arith.constant 32 : index
    %c0_213 = arith.constant 0 : index
    %462 = vector.load %arg8[%c32_212, %c0_213] : memref<64x512xf32, #tpu.memory_space<vmem>>, vector<8x512xf32>
    %c1_214 = arith.constant 1 : index
    %c0_215 = arith.constant 0 : index
    %c0_216 = arith.constant 0 : index
    %463 = vector.load %arg2[%c1_214, %c0_215, %c0_216] : memref<2x128x512xf32, #tpu.memory_space<vmem>>, vector<1x128x512xf32>
    %464 = vector.shape_cast %463 : vector<1x128x512xf32> to vector<128x512xf32>
    %cst_217 = arith.constant dense<0.000000e+00> : vector<8x512xf32>
    %465 = tpu.matmul %461, %464, %cst_217 {dimension_numbers = #tpu.dot_dimension_numbers<[1], [0], [0], [1], [0, 0, 1, 1], [], []>} : vector<8x128xf32>, vector<128x512xf32>, vector<8x512xf32> -> vector<8x512xf32>
    %466 = arith.addf %462, %465 : vector<8x512xf32>
    %467 = vector.extract_strided_slice %466 {offsets = [0, 0], sizes = [8, 128], strides = [1, 1]} : vector<8x512xf32> to vector<8x128xf32>
    %cst_218 = arith.constant 5.000000e-01 : f32
    %468 = vector.broadcast %cst_218 : f32 to vector<8x128xf32>
    %469 = arith.mulf %468, %467 : vector<8x128xf32>
    %470 = math.tanh %469 : vector<8x128xf32>
    %cst_219 = arith.constant 1.000000e+00 : f32
    %471 = vector.broadcast %cst_219 : f32 to vector<8x128xf32>
    %472 = arith.addf %470, %471 : vector<8x128xf32>
    %cst_220 = arith.constant 5.000000e-01 : f32
    %473 = vector.broadcast %cst_220 : f32 to vector<8x128xf32>
    %474 = arith.mulf %473, %472 : vector<8x128xf32>
    %475 = vector.extract_strided_slice %466 {offsets = [0, 128], sizes = [8, 128], strides = [1, 1]} : vector<8x512xf32> to vector<8x128xf32>
    %cst_221 = arith.constant 5.000000e-01 : f32
    %476 = vector.broadcast %cst_221 : f32 to vector<8x128xf32>
    %477 = arith.mulf %476, %475 : vector<8x128xf32>
    %478 = math.tanh %477 : vector<8x128xf32>
    %cst_222 = arith.constant 1.000000e+00 : f32
    %479 = vector.broadcast %cst_222 : f32 to vector<8x128xf32>
    %480 = arith.addf %478, %479 : vector<8x128xf32>
    %cst_223 = arith.constant 5.000000e-01 : f32
    %481 = vector.broadcast %cst_223 : f32 to vector<8x128xf32>
    %482 = arith.mulf %481, %480 : vector<8x128xf32>
    %483 = vector.extract_strided_slice %466 {offsets = [0, 256], sizes = [8, 128], strides = [1, 1]} : vector<8x512xf32> to vector<8x128xf32>
    %484 = math.tanh %483 : vector<8x128xf32>
    %485 = vector.extract_strided_slice %466 {offsets = [0, 384], sizes = [8, 128], strides = [1, 1]} : vector<8x512xf32> to vector<8x128xf32>
    %cst_224 = arith.constant 5.000000e-01 : f32
    %486 = vector.broadcast %cst_224 : f32 to vector<8x128xf32>
    %487 = arith.mulf %486, %485 : vector<8x128xf32>
    %488 = math.tanh %487 : vector<8x128xf32>
    %cst_225 = arith.constant 1.000000e+00 : f32
    %489 = vector.broadcast %cst_225 : f32 to vector<8x128xf32>
    %490 = arith.addf %488, %489 : vector<8x128xf32>
    %cst_226 = arith.constant 5.000000e-01 : f32
    %491 = vector.broadcast %cst_226 : f32 to vector<8x128xf32>
    %492 = arith.mulf %491, %490 : vector<8x128xf32>
    %493 = arith.mulf %482, %459 : vector<8x128xf32>
    %494 = arith.mulf %474, %484 : vector<8x128xf32>
    %495 = arith.addf %493, %494 : vector<8x128xf32>
    %496 = math.tanh %495 : vector<8x128xf32>
    %497 = arith.mulf %492, %496 : vector<8x128xf32>
    %c40_227 = arith.constant 40 : index
    %c0_228 = arith.constant 0 : index
    %498 = vector.load %arg8[%c40_227, %c0_228] : memref<64x512xf32, #tpu.memory_space<vmem>>, vector<8x512xf32>
    %c1_229 = arith.constant 1 : index
    %c0_230 = arith.constant 0 : index
    %c0_231 = arith.constant 0 : index
    %499 = vector.load %arg2[%c1_229, %c0_230, %c0_231] : memref<2x128x512xf32, #tpu.memory_space<vmem>>, vector<1x128x512xf32>
    %500 = vector.shape_cast %499 : vector<1x128x512xf32> to vector<128x512xf32>
    %cst_232 = arith.constant dense<0.000000e+00> : vector<8x512xf32>
    %501 = tpu.matmul %497, %500, %cst_232 {dimension_numbers = #tpu.dot_dimension_numbers<[1], [0], [0], [1], [0, 0, 1, 1], [], []>} : vector<8x128xf32>, vector<128x512xf32>, vector<8x512xf32> -> vector<8x512xf32>
    %502 = arith.addf %498, %501 : vector<8x512xf32>
    %503 = vector.extract_strided_slice %502 {offsets = [0, 0], sizes = [8, 128], strides = [1, 1]} : vector<8x512xf32> to vector<8x128xf32>
    %cst_233 = arith.constant 5.000000e-01 : f32
    %504 = vector.broadcast %cst_233 : f32 to vector<8x128xf32>
    %505 = arith.mulf %504, %503 : vector<8x128xf32>
    %506 = math.tanh %505 : vector<8x128xf32>
    %cst_234 = arith.constant 1.000000e+00 : f32
    %507 = vector.broadcast %cst_234 : f32 to vector<8x128xf32>
    %508 = arith.addf %506, %507 : vector<8x128xf32>
    %cst_235 = arith.constant 5.000000e-01 : f32
    %509 = vector.broadcast %cst_235 : f32 to vector<8x128xf32>
    %510 = arith.mulf %509, %508 : vector<8x128xf32>
    %511 = vector.extract_strided_slice %502 {offsets = [0, 128], sizes = [8, 128], strides = [1, 1]} : vector<8x512xf32> to vector<8x128xf32>
    %cst_236 = arith.constant 5.000000e-01 : f32
    %512 = vector.broadcast %cst_236 : f32 to vector<8x128xf32>
    %513 = arith.mulf %512, %511 : vector<8x128xf32>
    %514 = math.tanh %513 : vector<8x128xf32>
    %cst_237 = arith.constant 1.000000e+00 : f32
    %515 = vector.broadcast %cst_237 : f32 to vector<8x128xf32>
    %516 = arith.addf %514, %515 : vector<8x128xf32>
    %cst_238 = arith.constant 5.000000e-01 : f32
    %517 = vector.broadcast %cst_238 : f32 to vector<8x128xf32>
    %518 = arith.mulf %517, %516 : vector<8x128xf32>
    %519 = vector.extract_strided_slice %502 {offsets = [0, 256], sizes = [8, 128], strides = [1, 1]} : vector<8x512xf32> to vector<8x128xf32>
    %520 = math.tanh %519 : vector<8x128xf32>
    %521 = vector.extract_strided_slice %502 {offsets = [0, 384], sizes = [8, 128], strides = [1, 1]} : vector<8x512xf32> to vector<8x128xf32>
    %cst_239 = arith.constant 5.000000e-01 : f32
    %522 = vector.broadcast %cst_239 : f32 to vector<8x128xf32>
    %523 = arith.mulf %522, %521 : vector<8x128xf32>
    %524 = math.tanh %523 : vector<8x128xf32>
    %cst_240 = arith.constant 1.000000e+00 : f32
    %525 = vector.broadcast %cst_240 : f32 to vector<8x128xf32>
    %526 = arith.addf %524, %525 : vector<8x128xf32>
    %cst_241 = arith.constant 5.000000e-01 : f32
    %527 = vector.broadcast %cst_241 : f32 to vector<8x128xf32>
    %528 = arith.mulf %527, %526 : vector<8x128xf32>
    %529 = arith.mulf %518, %495 : vector<8x128xf32>
    %530 = arith.mulf %510, %520 : vector<8x128xf32>
    %531 = arith.addf %529, %530 : vector<8x128xf32>
    %532 = math.tanh %531 : vector<8x128xf32>
    %533 = arith.mulf %528, %532 : vector<8x128xf32>
    %c48_242 = arith.constant 48 : index
    %c0_243 = arith.constant 0 : index
    %534 = vector.load %arg8[%c48_242, %c0_243] : memref<64x512xf32, #tpu.memory_space<vmem>>, vector<8x512xf32>
    %c1_244 = arith.constant 1 : index
    %c0_245 = arith.constant 0 : index
    %c0_246 = arith.constant 0 : index
    %535 = vector.load %arg2[%c1_244, %c0_245, %c0_246] : memref<2x128x512xf32, #tpu.memory_space<vmem>>, vector<1x128x512xf32>
    %536 = vector.shape_cast %535 : vector<1x128x512xf32> to vector<128x512xf32>
    %cst_247 = arith.constant dense<0.000000e+00> : vector<8x512xf32>
    %537 = tpu.matmul %533, %536, %cst_247 {dimension_numbers = #tpu.dot_dimension_numbers<[1], [0], [0], [1], [0, 0, 1, 1], [], []>} : vector<8x128xf32>, vector<128x512xf32>, vector<8x512xf32> -> vector<8x512xf32>
    %538 = arith.addf %534, %537 : vector<8x512xf32>
    %539 = vector.extract_strided_slice %538 {offsets = [0, 0], sizes = [8, 128], strides = [1, 1]} : vector<8x512xf32> to vector<8x128xf32>
    %cst_248 = arith.constant 5.000000e-01 : f32
    %540 = vector.broadcast %cst_248 : f32 to vector<8x128xf32>
    %541 = arith.mulf %540, %539 : vector<8x128xf32>
    %542 = math.tanh %541 : vector<8x128xf32>
    %cst_249 = arith.constant 1.000000e+00 : f32
    %543 = vector.broadcast %cst_249 : f32 to vector<8x128xf32>
    %544 = arith.addf %542, %543 : vector<8x128xf32>
    %cst_250 = arith.constant 5.000000e-01 : f32
    %545 = vector.broadcast %cst_250 : f32 to vector<8x128xf32>
    %546 = arith.mulf %545, %544 : vector<8x128xf32>
    %547 = vector.extract_strided_slice %538 {offsets = [0, 128], sizes = [8, 128], strides = [1, 1]} : vector<8x512xf32> to vector<8x128xf32>
    %cst_251 = arith.constant 5.000000e-01 : f32
    %548 = vector.broadcast %cst_251 : f32 to vector<8x128xf32>
    %549 = arith.mulf %548, %547 : vector<8x128xf32>
    %550 = math.tanh %549 : vector<8x128xf32>
    %cst_252 = arith.constant 1.000000e+00 : f32
    %551 = vector.broadcast %cst_252 : f32 to vector<8x128xf32>
    %552 = arith.addf %550, %551 : vector<8x128xf32>
    %cst_253 = arith.constant 5.000000e-01 : f32
    %553 = vector.broadcast %cst_253 : f32 to vector<8x128xf32>
    %554 = arith.mulf %553, %552 : vector<8x128xf32>
    %555 = vector.extract_strided_slice %538 {offsets = [0, 256], sizes = [8, 128], strides = [1, 1]} : vector<8x512xf32> to vector<8x128xf32>
    %556 = math.tanh %555 : vector<8x128xf32>
    %557 = vector.extract_strided_slice %538 {offsets = [0, 384], sizes = [8, 128], strides = [1, 1]} : vector<8x512xf32> to vector<8x128xf32>
    %cst_254 = arith.constant 5.000000e-01 : f32
    %558 = vector.broadcast %cst_254 : f32 to vector<8x128xf32>
    %559 = arith.mulf %558, %557 : vector<8x128xf32>
    %560 = math.tanh %559 : vector<8x128xf32>
    %cst_255 = arith.constant 1.000000e+00 : f32
    %561 = vector.broadcast %cst_255 : f32 to vector<8x128xf32>
    %562 = arith.addf %560, %561 : vector<8x128xf32>
    %cst_256 = arith.constant 5.000000e-01 : f32
    %563 = vector.broadcast %cst_256 : f32 to vector<8x128xf32>
    %564 = arith.mulf %563, %562 : vector<8x128xf32>
    %565 = arith.mulf %554, %531 : vector<8x128xf32>
    %566 = arith.mulf %546, %556 : vector<8x128xf32>
    %567 = arith.addf %565, %566 : vector<8x128xf32>
    %568 = math.tanh %567 : vector<8x128xf32>
    %569 = arith.mulf %564, %568 : vector<8x128xf32>
    %c56_257 = arith.constant 56 : index
    %c0_258 = arith.constant 0 : index
    %570 = vector.load %arg8[%c56_257, %c0_258] : memref<64x512xf32, #tpu.memory_space<vmem>>, vector<8x512xf32>
    %c1_259 = arith.constant 1 : index
    %c0_260 = arith.constant 0 : index
    %c0_261 = arith.constant 0 : index
    %571 = vector.load %arg2[%c1_259, %c0_260, %c0_261] : memref<2x128x512xf32, #tpu.memory_space<vmem>>, vector<1x128x512xf32>
    %572 = vector.shape_cast %571 : vector<1x128x512xf32> to vector<128x512xf32>
    %cst_262 = arith.constant dense<0.000000e+00> : vector<8x512xf32>
    %573 = tpu.matmul %569, %572, %cst_262 {dimension_numbers = #tpu.dot_dimension_numbers<[1], [0], [0], [1], [0, 0, 1, 1], [], []>} : vector<8x128xf32>, vector<128x512xf32>, vector<8x512xf32> -> vector<8x512xf32>
    %574 = arith.addf %570, %573 : vector<8x512xf32>
    %575 = vector.extract_strided_slice %574 {offsets = [0, 0], sizes = [8, 128], strides = [1, 1]} : vector<8x512xf32> to vector<8x128xf32>
    %cst_263 = arith.constant 5.000000e-01 : f32
    %576 = vector.broadcast %cst_263 : f32 to vector<8x128xf32>
    %577 = arith.mulf %576, %575 : vector<8x128xf32>
    %578 = math.tanh %577 : vector<8x128xf32>
    %cst_264 = arith.constant 1.000000e+00 : f32
    %579 = vector.broadcast %cst_264 : f32 to vector<8x128xf32>
    %580 = arith.addf %578, %579 : vector<8x128xf32>
    %cst_265 = arith.constant 5.000000e-01 : f32
    %581 = vector.broadcast %cst_265 : f32 to vector<8x128xf32>
    %582 = arith.mulf %581, %580 : vector<8x128xf32>
    %583 = vector.extract_strided_slice %574 {offsets = [0, 128], sizes = [8, 128], strides = [1, 1]} : vector<8x512xf32> to vector<8x128xf32>
    %cst_266 = arith.constant 5.000000e-01 : f32
    %584 = vector.broadcast %cst_266 : f32 to vector<8x128xf32>
    %585 = arith.mulf %584, %583 : vector<8x128xf32>
    %586 = math.tanh %585 : vector<8x128xf32>
    %cst_267 = arith.constant 1.000000e+00 : f32
    %587 = vector.broadcast %cst_267 : f32 to vector<8x128xf32>
    %588 = arith.addf %586, %587 : vector<8x128xf32>
    %cst_268 = arith.constant 5.000000e-01 : f32
    %589 = vector.broadcast %cst_268 : f32 to vector<8x128xf32>
    %590 = arith.mulf %589, %588 : vector<8x128xf32>
    %591 = vector.extract_strided_slice %574 {offsets = [0, 256], sizes = [8, 128], strides = [1, 1]} : vector<8x512xf32> to vector<8x128xf32>
    %592 = math.tanh %591 : vector<8x128xf32>
    %593 = vector.extract_strided_slice %574 {offsets = [0, 384], sizes = [8, 128], strides = [1, 1]} : vector<8x512xf32> to vector<8x128xf32>
    %cst_269 = arith.constant 5.000000e-01 : f32
    %594 = vector.broadcast %cst_269 : f32 to vector<8x128xf32>
    %595 = arith.mulf %594, %593 : vector<8x128xf32>
    %596 = math.tanh %595 : vector<8x128xf32>
    %cst_270 = arith.constant 1.000000e+00 : f32
    %597 = vector.broadcast %cst_270 : f32 to vector<8x128xf32>
    %598 = arith.addf %596, %597 : vector<8x128xf32>
    %cst_271 = arith.constant 5.000000e-01 : f32
    %599 = vector.broadcast %cst_271 : f32 to vector<8x128xf32>
    %600 = arith.mulf %599, %598 : vector<8x128xf32>
    %601 = arith.mulf %590, %567 : vector<8x128xf32>
    %602 = arith.mulf %582, %592 : vector<8x128xf32>
    %603 = arith.addf %601, %602 : vector<8x128xf32>
    %604 = math.tanh %603 : vector<8x128xf32>
    %605 = arith.mulf %600, %604 : vector<8x128xf32>
    %c0_272 = arith.constant 0 : index
    %c0_273 = arith.constant 0 : index
    %606 = vector.load %arg4[%c0_272, %c0_273] : memref<128x128xf32, #tpu.memory_space<vmem>>, vector<128x128xf32>
    %cst_274 = arith.constant dense<0.000000e+00> : vector<8x128xf32>
    %607 = tpu.matmul %605, %606, %cst_274 {dimension_numbers = #tpu.dot_dimension_numbers<[1], [0], [0], [1], [0, 0, 1, 1], [], []>} : vector<8x128xf32>, vector<128x128xf32>, vector<8x128xf32> -> vector<8x128xf32>
    %c0_275 = arith.constant 0 : index
    %c0_276 = arith.constant 0 : index
    %608 = vector.load %arg5[%c0_275, %c0_276] : memref<1x128xf32, #tpu.memory_space<vmem>>, vector<1x128xf32>
    %609 = vector.broadcast %608 : vector<1x128xf32> to vector<8x128xf32>
    %610 = arith.addf %607, %609 : vector<8x128xf32>
    %c0_277 = arith.constant 0 : index
    %c0_278 = arith.constant 0 : index
    %611 = vector.load %arg6[%c0_277, %c0_278] : memref<8x128xf32, #tpu.memory_space<vmem>>, vector<8x128xf32>
    tpu.vector_store %arg6[%c0_277, %c0_278], %610 {strides = array<i32>} : memref<8x128xf32, #tpu.memory_space<vmem>>, vector<8x128xf32>,
    return
  }
}

</mosaic_0001>

<bundles_post_ra>
// kernel: rnn_forward.1
= control target key start
LH: loop header
LB: loop body
LE: loop exit
PB: predicated region body
PF: predicated region fallthrough
CT: control target
= control target key end

     0   :  { %11 = vsyncpa [#allocation5], 0  ;;  %s5200_s0 = inlined_call_operand.vmem [shape: f32[64,128], index: 0, kind: input, shape index: {}]   ;;  %s5201_s1 = inlined_call_operand.hbm [shape: f32[2,128,512], index: 1, kind: input, shape index: {}]   ;;  %s5202_s2 = inlined_call_operand.hbm [shape: f32[2,128,512], index: 2, kind: input, shape index: {}]   ;;  %s5203_s3 = inlined_call_operand.vmem [shape: f32[2,1,512], index: 3, kind: input, shape index: {}]   ;;  %s5204_s4 = inlined_call_operand.hbm [shape: f32[128,128], index: 4, kind: input, shape index: {}]   ;;  %s5205_s5 = inlined_call_operand.vmem [shape: f32[1,128], index: 5, kind: input, shape index: {}]   ;;  %s5206_s6 = inlined_call_operand.vmem [shape: f32[8,128], index: 6, kind: output, shape index: {}]  }
   0x1   :  { %12 = vsyncpa [#allocation7], 0  ;;  %s32_s23 = sshll.u32 %s5202_s2, 4  ;;  %s3266_s24 = smov [#allocation6]   ;;  %s33_s23 = int_to_ptr.hbm [resolvable:$true] %s32_s23 }
   0x2   :  { %s34_s25 = sshll.u32 %s3266_s24, 4  ;;  %s19_s28 = sshll.u32 %s5201_s1, 4  ;;  %s35_s25 = int_to_ptr.vmem [resolvable:$true] %s34_s25  ;;  %s20_s28 = int_to_ptr.hbm [resolvable:$true] %s19_s28 }
   0x3   :  { %s3267_s29 = smov 512   ;;  %s3268_s30 = smov 32  }
   0x4   :  { %40 = dma.hbm_to_vmem [thread:$0]  %s33_s23, 16384, %s35_s25, [#allocation7], %s3267_s29, %s3267_s29, %s3268_s30  }
   0x5   :  { %s3269_s7 = smov [#allocation4]   ;;  %s47_s11 = sshll.u32 %s5204_s4, 4  ;;  %s48_s11 = int_to_ptr.hbm [resolvable:$true] %s47_s11 }
   0x6   :  { %s21_s8 = sshll.u32 %s3269_s7, 4  ;;  %s3270_s2 = smov [#allocation8]   ;;  %s22_s8 = int_to_ptr.vmem [resolvable:$true] %s21_s8 }
   0x7   :  { %27 = dma.hbm_to_vmem [thread:$0]  %s20_s28, 16384, %s22_s8, [#allocation5], %s3267_s29, %s3267_s29, %s3268_s30  }
   0x8   :  { %s49_s12 = sshll.u32 %s3270_s2, 4  ;;  %s3271_s13 = smov 128   ;;  %s50_s12 = int_to_ptr.vmem [resolvable:$true] %s49_s12 }
   0x9   :  { %s3272_s14 = smov 8  }
   0xa   :  { %55 = dma.hbm_to_vmem [thread:$0]  %s48_s11, 2048, %s50_s12, [#allocation7], %s3271_s13, %s3271_s13, %s3272_s14  }
   0xb   :  { %3262 = dma.done.wait [#allocation5], 16384  }
   0xc   :  { %3263 = vsyncadd [#allocation5], 4294950912 }
   0xd   :  { %3264 = dma.done.wait [#allocation7], 18432  }
   0xe   :  { %3265 = vsyncadd [#allocation7], 4294948864  ;;  %v138_v0 = vld [vmem:[#allocation4 + $0x1e0] sm:$0xff]  ;;  %v139_v1 = vld [vmem:[#allocation4 + $0x1e8] sm:$0xff] }
   0xf   :  { %v140_v2 = vld [vmem:[#allocation4 + $0x1f0] sm:$0xff]  ;;  %152 = vmatpush.msra.mxu0 %v138_v0  ;;  %193 = vmatpush.msra.mxu1 %v139_v1  ;;  %v141_v3 = vld [vmem:[#allocation4 + $0x1f8] sm:$0xff]  ;;  %v134_v4 = vld [vmem:[#allocation4 + $0x1c0] sm:$0xff] }
  0x10   :  { %v135_v5 = vld [vmem:[#allocation4 + $0x1c8] sm:$0xff]  ;;  %234 = vmatpush.msra.mxu2 %v140_v2  ;;  %275 = vmatpush.msra.mxu3 %v141_v3  ;;  %v136_v6 = vld [vmem:[#allocation4 + $0x1d0] sm:$0xff]  ;;  %v137_v7 = vld [vmem:[#allocation4 + $0x1d8] sm:$0xff] }
  0x11   :  { %v130_v8 = vld [vmem:[#allocation4 + $0x1a0] sm:$0xff]  ;;  %153 = vmatpush.msra.mxu0 %v134_v4  ;;  %194 = vmatpush.msra.mxu1 %v135_v5  ;;  %v131_v9 = vld [vmem:[#allocation4 + $0x1a8] sm:$0xff]  ;;  %v132_v10 = vld [vmem:[#allocation4 + $0x1b0] sm:$0xff] }
  0x12   :  { %v133_v11 = vld [vmem:[#allocation4 + $0x1b8] sm:$0xff]  ;;  %235 = vmatpush.msra.mxu2 %v136_v6  ;;  %276 = vmatpush.msra.mxu3 %v137_v7  ;;  %v126_v12 = vld [vmem:[#allocation4 + $0x180] sm:$0xff]  ;;  %v127_v13 = vld [vmem:[#allocation4 + $0x188] sm:$0xff] }
  0x13   :  { %154 = vmatpush.msra.mxu0 %v130_v8  ;;  %195 = vmatpush.msra.mxu1 %v131_v9  ;;  %v128_v14 = vld [vmem:[#allocation4 + $0x190] sm:$0xff]  ;;  %v129_v15 = vld [vmem:[#allocation4 + $0x198] sm:$0xff]  ;;  %v122_v16 = vld [vmem:[#allocation4 + $0x160] sm:$0xff] }
  0x14   :  { %236 = vmatpush.msra.mxu2 %v132_v10  ;;  %277 = vmatpush.msra.mxu3 %v133_v11  ;;  %v123_v17 = vld [vmem:[#allocation4 + $0x168] sm:$0xff]  ;;  %v124_v18 = vld [vmem:[#allocation4 + $0x170] sm:$0xff]  ;;  %v125_v19 = vld [vmem:[#allocation4 + $0x178] sm:$0xff] }
  0x15   :  { %155 = vmatpush.msra.mxu0 %v126_v12  ;;  %196 = vmatpush.msra.mxu1 %v127_v13  ;;  %v118_v20 = vld [vmem:[#allocation4 + $0x140] sm:$0xff]  ;;  %v119_v21 = vld [vmem:[#allocation4 + $0x148] sm:$0xff]  ;;  %v120_v22 = vld [vmem:[#allocation4 + $0x150] sm:$0xff] }
  0x16   :  { %237 = vmatpush.msra.mxu2 %v128_v14  ;;  %278 = vmatpush.msra.mxu3 %v129_v15  ;;  %v121_v23 = vld [vmem:[#allocation4 + $0x158] sm:$0xff]  ;;  %v114_v24 = vld [vmem:[#allocation4 + $0x120] sm:$0xff]  ;;  %v115_v25 = vld [vmem:[#allocation4 + $0x128] sm:$0xff] }
  0x17   :  { %156 = vmatpush.msra.mxu0 %v122_v16  ;;  %197 = vmatpush.msra.mxu1 %v123_v17  ;;  %v116_v26 = vld [vmem:[#allocation4 + $0x130] sm:$0xff]  ;;  %v117_v27 = vld [vmem:[#allocation4 + $0x138] sm:$0xff]  ;;  %v110_v28 = vld [vmem:[#allocation4 + $0x100] sm:$0xff] }
  0x18   :  { %238 = vmatpush.msra.mxu2 %v124_v18  ;;  %279 = vmatpush.msra.mxu3 %v125_v19  ;;  %v111_v29 = vld [vmem:[#allocation4 + $0x108] sm:$0xff]  ;;  %v112_v30 = vld [vmem:[#allocation4 + $0x110] sm:$0xff]  ;;  %v113_v31 = vld [vmem:[#allocation4 + $0x118] sm:$0xff] }
  0x19   :  { %157 = vmatpush.msra.mxu0 %v118_v20  ;;  %198 = vmatpush.msra.mxu1 %v119_v21  ;;  %v106_v32 = vld [vmem:[#allocation4 + $0xe0] sm:$0xff]  ;;  %v107_v33 = vld [vmem:[#allocation4 + $0xe8] sm:$0xff]  ;;  %v108_v34 = vld [vmem:[#allocation4 + $0xf0] sm:$0xff] }
  0x1a   :  { %239 = vmatpush.msra.mxu2 %v120_v22  ;;  %280 = vmatpush.msra.mxu3 %v121_v23  ;;  %v109_v35 = vld [vmem:[#allocation4 + $0xf8] sm:$0xff]  ;;  %v102_v36 = vld [vmem:[#allocation4 + $0xc0] sm:$0xff]  ;;  %v103_v37 = vld [vmem:[#allocation4 + $0xc8] sm:$0xff] }
  0x1b   :  { %158 = vmatpush.msra.mxu0 %v114_v24  ;;  %199 = vmatpush.msra.mxu1 %v115_v25  ;;  %v104_v38 = vld [vmem:[#allocation4 + $0xd0] sm:$0xff]  ;;  %v105_v39 = vld [vmem:[#allocation4 + $0xd8] sm:$0xff]  ;;  %v98_v40 = vld [vmem:[#allocation4 + $0xa0] sm:$0xff] }
  0x1c   :  { %240 = vmatpush.msra.mxu2 %v116_v26  ;;  %281 = vmatpush.msra.mxu3 %v117_v27  ;;  %v99_v41 = vld [vmem:[#allocation4 + $0xa8] sm:$0xff]  ;;  %v100_v42 = vld [vmem:[#allocation4 + $0xb0] sm:$0xff]  ;;  %v101_v43 = vld [vmem:[#allocation4 + $0xb8] sm:$0xff] }
  0x1d   :  { %159 = vmatpush.msra.mxu0 %v110_v28  ;;  %200 = vmatpush.msra.mxu1 %v111_v29  ;;  %v94_v44 = vld [vmem:[#allocation4 + $0x80] sm:$0xff]  ;;  %v95_v45 = vld [vmem:[#allocation4 + $0x88] sm:$0xff]  ;;  %v96_v46 = vld [vmem:[#allocation4 + $0x90] sm:$0xff] }
  0x1e   :  { %241 = vmatpush.msra.mxu2 %v112_v30  ;;  %282 = vmatpush.msra.mxu3 %v113_v31  ;;  %v97_v47 = vld [vmem:[#allocation4 + $0x98] sm:$0xff]  ;;  %v90_v48 = vld [vmem:[#allocation4 + $0x60] sm:$0xff]  ;;  %v91_v49 = vld [vmem:[#allocation4 + $0x68] sm:$0xff] }
  0x1f   :  { %160 = vmatpush.msra.mxu0 %v106_v32  ;;  %201 = vmatpush.msra.mxu1 %v107_v33  ;;  %v92_v50 = vld [vmem:[#allocation4 + $0x70] sm:$0xff]  ;;  %v93_v51 = vld [vmem:[#allocation4 + $0x78] sm:$0xff]  ;;  %v86_v52 = vld [vmem:[#allocation4 + $0x40] sm:$0xff] }
  0x20   :  { %242 = vmatpush.msra.mxu2 %v108_v34  ;;  %283 = vmatpush.msra.mxu3 %v109_v35  ;;  %v87_v53 = vld [vmem:[#allocation4 + $0x48] sm:$0xff]  ;;  %v88_v54 = vld [vmem:[#allocation4 + $0x50] sm:$0xff]  ;;  %v89_v55 = vld [vmem:[#allocation4 + $0x58] sm:$0xff] }
  0x21   :  { %161 = vmatpush.msra.mxu0 %v102_v36  ;;  %202 = vmatpush.msra.mxu1 %v103_v37  ;;  %v82_v56 = vld [vmem:[#allocation4 + $0x20] sm:$0xff]  ;;  %v83_v57 = vld [vmem:[#allocation4 + $0x28] sm:$0xff]  ;;  %v84_v58 = vld [vmem:[#allocation4 + $0x30] sm:$0xff] }
  0x22   :  { %243 = vmatpush.msra.mxu2 %v104_v38  ;;  %284 = vmatpush.msra.mxu3 %v105_v39  ;;  %v85_v59 = vld [vmem:[#allocation4 + $0x38] sm:$0xff]  ;;  %v78_v60 = vld [vmem:[#allocation4] sm:$0xff]  ;;  %v79_v61 = vld [vmem:[#allocation4 + $0x8] sm:$0xff] }
  0x23   :  { %162 = vmatpush.msra.mxu0 %v98_v40  ;;  %203 = vmatpush.msra.mxu1 %v99_v41  ;;  %v80_v62 = vld [vmem:[#allocation4 + $0x10] sm:$0xff]  ;;  %v81_v63 = vld [vmem:[#allocation4 + $0x18] sm:$0xff]  ;;  %v70_v0 = vld [vmem:[%s5200_s0] sm:$0xff] }
  0x24   :  { %244 = vmatpush.msra.mxu2 %v100_v42  ;;  %285 = vmatpush.msra.mxu3 %v101_v43  ;;  %v3321_v1 = vld [vmem:[#allocation6 + $0x1e0] sm:$0xff]  ;;  %v3323_v2 = vld [vmem:[#allocation6 + $0x1e8] sm:$0xff]  ;;  %v3325_v3 = vld [vmem:[#allocation6 + $0x1f0] sm:$0xff] }
  0x25   :  { %163 = vmatpush.msra.mxu0 %v94_v44  ;;  %204 = vmatpush.msra.mxu1 %v95_v45  ;;  %v3327_v4 = vld [vmem:[#allocation6 + $0x1f8] sm:$0xff]  ;;  %v3329_v5 = vld [vmem:[#allocation6 + $0x1c0] sm:$0xff]  ;;  %v3331_v6 = vld [vmem:[#allocation6 + $0x1c8] sm:$0xff] }
  0x26   :  { %245 = vmatpush.msra.mxu2 %v96_v46  ;;  %286 = vmatpush.msra.mxu3 %v97_v47  ;;  %v3335_v7 = vld [vmem:[#allocation6 + $0x1d0] sm:$0xff]  ;;  %v3337_v8 = vld [vmem:[#allocation6 + $0x1d8] sm:$0xff]  ;;  %v3341_v9 = vld [vmem:[#allocation6 + $0x1a0] sm:$0xff] }
  0x27   :  { %164 = vmatpush.msra.mxu0 %v90_v48  ;;  %205 = vmatpush.msra.mxu1 %v91_v49  ;;  %v3343_v10 = vld [vmem:[#allocation6 + $0x1a8] sm:$0xff]  ;;  %v3347_v11 = vld [vmem:[#allocation6 + $0x1b0] sm:$0xff]  ;;  %v3349_v12 = vld [vmem:[#allocation6 + $0x1b8] sm:$0xff] }
  0x28   :  { %246 = vmatpush.msra.mxu2 %v92_v50  ;;  %287 = vmatpush.msra.mxu3 %v93_v51  ;;  %v71_v13 = vld [vmem:[%s5200_s0 + $0x8] sm:$0xff]  ;;  %v3359_v14 = vld [vmem:[#allocation6 + $0x180] sm:$0xff]  ;;  %v3364_v16 = vld [vmem:[#allocation6 + $0x190] sm:$0xff] }
  0x29   :  { %165 = vmatpush.msra.mxu0 %v86_v52  ;;  %206 = vmatpush.msra.mxu1 %v87_v53  ;;  %v3361_v15 = vld [vmem:[#allocation6 + $0x188] sm:$0xff]  ;;  %v3366_v17 = vld [vmem:[#allocation6 + $0x198] sm:$0xff]  ;;  %v3368_v18 = vld [vmem:[#allocation6 + $0x160] sm:$0xff] }
  0x2a   :  { %247 = vmatpush.msra.mxu2 %v88_v54  ;;  %288 = vmatpush.msra.mxu3 %v89_v55  ;;  %v3370_v19 = vld [vmem:[#allocation6 + $0x168] sm:$0xff]  ;;  %v3374_v20 = vld [vmem:[#allocation6 + $0x170] sm:$0xff]  ;;  %v3376_v21 = vld [vmem:[#allocation6 + $0x178] sm:$0xff] }
  0x2b   :  { %166 = vmatpush.msra.mxu0 %v82_v56  ;;  %207 = vmatpush.msra.mxu1 %v83_v57  ;;  %v3380_v22 = vld [vmem:[#allocation6 + $0x140] sm:$0xff]  ;;  %v3382_v23 = vld [vmem:[#allocation6 + $0x148] sm:$0xff]  ;;  %v3386_v24 = vld [vmem:[#allocation6 + $0x150] sm:$0xff] }
  0x2c   :  { %248 = vmatpush.msra.mxu2 %v84_v58  ;;  %289 = vmatpush.msra.mxu3 %v85_v59  ;;  %v3388_v25 = vld [vmem:[#allocation6 + $0x158] sm:$0xff]  ;;  %v72_v26 = vld [vmem:[%s5200_s0 + $0x10] sm:$0xff]  ;;  %v3398_v27 = vld [vmem:[#allocation6 + $0x120] sm:$0xff] }
  0x2d   :  { %167 = vmatpush.msra.mxu0 %v78_v60  ;;  %208 = vmatpush.msra.mxu1 %v79_v61  ;;  %v3400_v28 = vld [vmem:[#allocation6 + $0x128] sm:$0xff]  ;;  %v3403_v29 = vld [vmem:[#allocation6 + $0x130] sm:$0xff]  ;;  %v3405_v30 = vld [vmem:[#allocation6 + $0x138] sm:$0xff] }
  0x2e   :  { %249 = vmatpush.msra.mxu2 %v80_v62  ;;  %290 = vmatpush.msra.mxu3 %v81_v63  ;;  %v3407_v31 = vld [vmem:[#allocation6 + $0x100] sm:$0xff]  ;;  %v3409_v32 = vld [vmem:[#allocation6 + $0x108] sm:$0xff]  ;;  %v3413_v33 = vld [vmem:[#allocation6 + $0x110] sm:$0xff] }
  0x2f   :  { %168 = vmatmul.f32.vlgmr.msra.gmra.mxu0 %v70_v0  ;;  %209 = vmatmul.f32.vlgmr.msra.gmra.mxu1 %v70_v0  ;;  %v3415_v34 = vld [vmem:[#allocation6 + $0x118] sm:$0xff]  ;;  %v3419_v35 = vld [vmem:[#allocation6 + $0xe0] sm:$0xff]  ;;  %v3421_v36 = vld [vmem:[#allocation6 + $0xe8] sm:$0xff] }
  0x30   :  { %250 = vmatmul.f32.vlgmr.msra.gmra.mxu2 %v70_v0  ;;  %291 = vmatmul.f32.vlgmr.msra.gmra.mxu3 %v70_v0  ;;  %v3425_v37 = vld [vmem:[#allocation6 + $0xf0] sm:$0xff]  ;;  %v3427_v38 = vld [vmem:[#allocation6 + $0xf8] sm:$0xff]  ;;  %v3437_v40 = vld [vmem:[#allocation6 + $0xc0] sm:$0xff] }
  0x31   :  { %416 = vmatpush.msrb.mxu0 %v3321_v1  ;;  %436 = vmatpush.msrb.mxu1 %v3323_v2  ;;  %v73_v39 = vld [vmem:[%s5200_s0 + $0x18] sm:$0xff]  ;;  %v3439_v41 = vld [vmem:[#allocation6 + $0xc8] sm:$0xff]  ;;  %v3442_v42 = vld [vmem:[#allocation6 + $0xd0] sm:$0xff] }
  0x32   :  { %456 = vmatpush.msrb.mxu2 %v3325_v3  ;;  %476 = vmatpush.msrb.mxu3 %v3327_v4  ;;  %v3444_v43 = vld [vmem:[#allocation6 + $0xd8] sm:$0xff]  ;;  %v3446_v44 = vld [vmem:[#allocation6 + $0xa0] sm:$0xff]  ;;  %v3448_v45 = vld [vmem:[#allocation6 + $0xa8] sm:$0xff] }
  0x33   :  { %417 = vmatpush.msrb.mxu0 %v3329_v5  ;;  %437 = vmatpush.msrb.mxu1 %v3331_v6  ;;  %v3452_v46 = vld [vmem:[#allocation6 + $0xb0] sm:$0xff]  ;;  %v3454_v47 = vld [vmem:[#allocation6 + $0xb8] sm:$0xff]  ;;  %v3458_v48 = vld [vmem:[#allocation6 + $0x80] sm:$0xff] }
  0x34   :  { %457 = vmatpush.msrb.mxu2 %v3335_v7  ;;  %477 = vmatpush.msrb.mxu3 %v3337_v8  ;;  %v3460_v49 = vld [vmem:[#allocation6 + $0x88] sm:$0xff]  ;;  %v3464_v50 = vld [vmem:[#allocation6 + $0x90] sm:$0xff]  ;;  %v3466_v51 = vld [vmem:[#allocation6 + $0x98] sm:$0xff] }
  0x35   :  { %418 = vmatpush.msrb.mxu0 %v3341_v9  ;;  %438 = vmatpush.msrb.mxu1 %v3343_v10  ;;  %v74_v52 = vld [vmem:[%s5200_s0 + $0x20] sm:$0xff]  ;;  %v3478_v54 = vld [vmem:[#allocation6 + $0x68] sm:$0xff]  ;;  %v3481_v55 = vld [vmem:[#allocation6 + $0x70] sm:$0xff] }
  0x36   :  { %458 = vmatpush.msrb.mxu2 %v3347_v11  ;;  %478 = vmatpush.msrb.mxu3 %v3349_v12  ;;  %v3476_v53 = vld [vmem:[#allocation6 + $0x60] sm:$0xff]  ;;  %v3483_v56 = vld [vmem:[#allocation6 + $0x78] sm:$0xff]  ;;  %v3487_v58 = vld [vmem:[#allocation6 + $0x48] sm:$0xff] }
  0x37   :  { %171 = vmatmul.f32.gmra.mxu0 %v71_v13  ;;  %212 = vmatmul.f32.gmra.mxu1 %v71_v13  ;;  %v3485_v57 = vld [vmem:[#allocation6 + $0x40] sm:$0xff]  ;;  %5382 = vst [vmem:[#allocation11_spill] sm:$0xff] %v3487_v58  ;;  %v3491_v59 = vld [vmem:[#allocation6 + $0x50] sm:$0xff]  ;;  %v3493_v60 = vld [vmem:[#allocation6 + $0x58] sm:$0xff] }
  0x38   :  { %253 = vmatmul.f32.gmra.mxu2 %v71_v13  ;;  %294 = vmatmul.f32.gmra.mxu3 %v71_v13  ;;  %v3497_v61 = vld [vmem:[#allocation6 + $0x20] sm:$0xff]  ;;  %v3499_v62 = vld [vmem:[#allocation6 + $0x28] sm:$0xff]  ;;  %v3503_v63 = vld [vmem:[#allocation6 + $0x30] sm:$0xff] }
  0x39   :  { %419 = vmatpush.msrb.mxu0 %v3359_v14  ;;  %439 = vmatpush.msrb.mxu1 %v3361_v15  ;;  %v3505_v0 = vld [vmem:[#allocation6 + $0x38] sm:$0xff]  ;;  %v75_v13 = vld [vmem:[%s5200_s0 + $0x28] sm:$0xff] }
  0x3a   :  { %459 = vmatpush.msrb.mxu2 %v3364_v16  ;;  %479 = vmatpush.msrb.mxu3 %v3366_v17  ;;  %5383 = vst [vmem:[#allocation12_spill] sm:$0xff] %v3505_v0 }
  0x3b   :  { %420 = vmatpush.msrb.mxu0 %v3368_v18  ;;  %440 = vmatpush.msrb.mxu1 %v3370_v19 }
  0x3c   :  { %460 = vmatpush.msrb.mxu2 %v3374_v20  ;;  %480 = vmatpush.msrb.mxu3 %v3376_v21 }
  0x3d   :  { %421 = vmatpush.msrb.mxu0 %v3380_v22  ;;  %441 = vmatpush.msrb.mxu1 %v3382_v23 }
  0x3e   :  { %461 = vmatpush.msrb.mxu2 %v3386_v24  ;;  %481 = vmatpush.msrb.mxu3 %v3388_v25 }
  0x3f   :  { %174 = vmatmul.f32.gmra.mxu0 %v72_v26  ;;  %215 = vmatmul.f32.gmra.mxu1 %v72_v26 }
  0x40   :  { %256 = vmatmul.f32.gmra.mxu2 %v72_v26  ;;  %297 = vmatmul.f32.gmra.mxu3 %v72_v26  ;;  %v3515_v26 = vld [vmem:[#allocation6] sm:$0xff] }
  0x41   :  { %422 = vmatpush.msrb.mxu0 %v3398_v27  ;;  %442 = vmatpush.msrb.mxu1 %v3400_v28 }
  0x42   :  { %462 = vmatpush.msrb.mxu2 %v3403_v29  ;;  %482 = vmatpush.msrb.mxu3 %v3405_v30 }
  0x43   :  { %423 = vmatpush.msrb.mxu0 %v3407_v31  ;;  %443 = vmatpush.msrb.mxu1 %v3409_v32 }
  0x44   :  { %463 = vmatpush.msrb.mxu2 %v3413_v33  ;;  %483 = vmatpush.msrb.mxu3 %v3415_v34 }
  0x45   :  { %424 = vmatpush.msrb.mxu0 %v3419_v35  ;;  %444 = vmatpush.msrb.mxu1 %v3421_v36 }
  0x46   :  { %464 = vmatpush.msrb.mxu2 %v3425_v37  ;;  %484 = vmatpush.msrb.mxu3 %v3427_v38 }
  0x47   :  { %177 = vmatmul.f32.gmra.mxu0 %v73_v39  ;;  %218 = vmatmul.f32.gmra.mxu1 %v73_v39 }
  0x48   :  { %259 = vmatmul.f32.gmra.mxu2 %v73_v39  ;;  %300 = vmatmul.f32.gmra.mxu3 %v73_v39  ;;  %v3517_v39 = vld [vmem:[#allocation6 + $0x8] sm:$0xff] }
  0x49   :  { %425 = vmatpush.msrb.mxu0 %v3437_v40  ;;  %445 = vmatpush.msrb.mxu1 %v3439_v41 }
  0x4a   :  { %465 = vmatpush.msrb.mxu2 %v3442_v42  ;;  %485 = vmatpush.msrb.mxu3 %v3444_v43 }
  0x4b   :  { %426 = vmatpush.msrb.mxu0 %v3446_v44  ;;  %446 = vmatpush.msrb.mxu1 %v3448_v45 }
  0x4c   :  { %466 = vmatpush.msrb.mxu2 %v3452_v46  ;;  %486 = vmatpush.msrb.mxu3 %v3454_v47 }
  0x4d   :  { %427 = vmatpush.msrb.mxu0 %v3458_v48  ;;  %447 = vmatpush.msrb.mxu1 %v3460_v49 }
  0x4e   :  { %467 = vmatpush.msrb.mxu2 %v3464_v50  ;;  %487 = vmatpush.msrb.mxu3 %v3466_v51 }
  0x4f   :  { %180 = vmatmul.f32.gmra.mxu0 %v74_v52  ;;  %221 = vmatmul.f32.gmra.mxu1 %v74_v52 }
  0x50   :  { %262 = vmatmul.f32.gmra.mxu2 %v74_v52  ;;  %303 = vmatmul.f32.gmra.mxu3 %v74_v52  ;;  %v3520_v52 = vld [vmem:[#allocation6 + $0x10] sm:$0xff] }
  0x51   :  { %428 = vmatpush.msrb.mxu0 %v3476_v53  ;;  %448 = vmatpush.msrb.mxu1 %v3478_v54 }
  0x52   :  { %468 = vmatpush.msrb.mxu2 %v3481_v55  ;;  %488 = vmatpush.msrb.mxu3 %v3483_v56 }
  0x53   :  { %429 = vmatpush.msrb.mxu0 %v3485_v57  ;;  %449 = vmatpush.msrb.mxu1 %v3487_v58  ;;  %v3522_v58 = vld [vmem:[#allocation6 + $0x18] sm:$0xff] }
  0x54   :  { %469 = vmatpush.msrb.mxu2 %v3491_v59  ;;  %489 = vmatpush.msrb.mxu3 %v3493_v60 }
  0x55   :  { %430 = vmatpush.msrb.mxu0 %v3497_v61  ;;  %450 = vmatpush.msrb.mxu1 %v3499_v62 }
  0x56   :  { %470 = vmatpush.msrb.mxu2 %v3503_v63  ;;  %490 = vmatpush.msrb.mxu3 %v3505_v0  ;;  %v76_v0 = vld [vmem:[%s5200_s0 + $0x30] sm:$0xff] }
  0x57   :  { %183 = vmatmul.f32.gmra.mxu0 %v75_v13  ;;  %224 = vmatmul.f32.gmra.mxu1 %v75_v13 }
  0x58   :  { %265 = vmatmul.f32.gmra.mxu2 %v75_v13  ;;  %306 = vmatmul.f32.gmra.mxu3 %v75_v13  ;;  %v77_v13 = vld [vmem:[%s5200_s0 + $0x38] sm:$0xff] }
  0x59   :  { %431 = vmatpush.msrb.mxu0 %v3515_v26  ;;  %451 = vmatpush.msrb.mxu1 %v3517_v39 }
  0x5a   :  { %471 = vmatpush.msrb.mxu2 %v3520_v52  ;;  %491 = vmatpush.msrb.mxu3 %v3522_v58 }
  0x5b   :  { %587 = vmatpush.msra.mxu0 %v3321_v1  ;;  %607 = vmatpush.msra.mxu1 %v3323_v2 }
  0x5c   :  { %627 = vmatpush.msra.mxu2 %v3325_v3  ;;  %647 = vmatpush.msra.mxu3 %v3327_v4 }
  0x5d   :  { %588 = vmatpush.msra.mxu0 %v3329_v5  ;;  %608 = vmatpush.msra.mxu1 %v3331_v6 }
  0x5e   :  { %628 = vmatpush.msra.mxu2 %v3335_v7  ;;  %648 = vmatpush.msra.mxu3 %v3337_v8 }
  0x5f   :  { %186 = vmatmul.f32.gmra.mxu0 %v76_v0  ;;  %227 = vmatmul.f32.gmra.mxu1 %v76_v0 }
  0x60   :  { %268 = vmatmul.f32.gmra.mxu2 %v76_v0  ;;  %309 = vmatmul.f32.gmra.mxu3 %v76_v0  ;;  %v5211_v0 = vmov 0.0  }
  0x61   :  { %589 = vmatpush.msra.mxu0 %v3341_v9  ;;  %609 = vmatpush.msra.mxu1 %v3343_v10 }
  0x62   :  { %629 = vmatpush.msra.mxu2 %v3347_v11  ;;  %649 = vmatpush.msra.mxu3 %v3349_v12 }
  0x63   :  { %590 = vmatpush.msra.mxu0 %v3359_v14  ;;  %610 = vmatpush.msra.mxu1 %v3361_v15 }
  0x64   :  { %630 = vmatpush.msra.mxu2 %v3364_v16  ;;  %650 = vmatpush.msra.mxu3 %v3366_v17 }
  0x65   :  { %591 = vmatpush.msra.mxu0 %v3368_v18  ;;  %611 = vmatpush.msra.mxu1 %v3370_v19 }
  0x66   :  { %631 = vmatpush.msra.mxu2 %v3374_v20  ;;  %651 = vmatpush.msra.mxu3 %v3376_v21 }
  0x67   :  { %189 = vmatmul.f32.gmra.mxu0 %v77_v13  ;;  %230 = vmatmul.f32.gmra.mxu1 %v77_v13 }
  0x68   :  { %271 = vmatmul.f32.gmra.mxu2 %v77_v13  ;;  %312 = vmatmul.f32.gmra.mxu3 %v77_v13  ;;  %v5384_v13 = vld [vmem:[#allocation11_spill] sm:$0xff] }
  0x69   :  { %592 = vmatpush.msra.mxu0 %v3380_v22  ;;  %612 = vmatpush.msra.mxu1 %v3382_v23 }
  0x6a   :  { %632 = vmatpush.msra.mxu2 %v3386_v24  ;;  %652 = vmatpush.msra.mxu3 %v3388_v25 }
  0x6b   :  { %593 = vmatpush.msra.mxu0 %v3398_v27  ;;  %613 = vmatpush.msra.mxu1 %v3400_v28 }
  0x6c   :  { %633 = vmatpush.msra.mxu2 %v3403_v29  ;;  %653 = vmatpush.msra.mxu3 %v3405_v30 }
  0x6d   :  { %594 = vmatpush.msra.mxu0 %v3407_v31  ;;  %614 = vmatpush.msra.mxu1 %v3409_v32 }
  0x6e   :  { %634 = vmatpush.msra.mxu2 %v3413_v33  ;;  %654 = vmatpush.msra.mxu3 %v3415_v34 }
  0x6f   :  { %432 = vmatmul.f32.vlgmr.msrb.gmra.mxu0 %v5211_v0  ;;  %452 = vmatmul.f32.vlgmr.msrb.gmra.mxu1 %v5211_v0 }
  0x70   :  { %472 = vmatmul.f32.vlgmr.msrb.gmra.mxu2 %v5211_v0  ;;  %492 = vmatmul.f32.vlgmr.msrb.gmra.mxu3 %v5211_v0  ;;  %v5385_v0 = vld [vmem:[#allocation12_spill] sm:$0xff] }
  0x71   :  { %595 = vmatpush.msra.mxu0 %v3419_v35  ;;  %615 = vmatpush.msra.mxu1 %v3421_v36 }
  0x72   :  { %635 = vmatpush.msra.mxu2 %v3425_v37  ;;  %655 = vmatpush.msra.mxu3 %v3427_v38 }
  0x73   :  { %596 = vmatpush.msra.mxu0 %v3437_v40  ;;  %616 = vmatpush.msra.mxu1 %v3439_v41 }
  0x74   :  { %636 = vmatpush.msra.mxu2 %v3442_v42  ;;  %656 = vmatpush.msra.mxu3 %v3444_v43 }
  0x75   :  { %597 = vmatpush.msra.mxu0 %v3446_v44  ;;  %617 = vmatpush.msra.mxu1 %v3448_v45 }
  0x76   :  { %637 = vmatpush.msra.mxu2 %v3452_v46  ;;  %657 = vmatpush.msra.mxu3 %v3454_v47 }
  0x77   :  { %598 = vmatpush.msra.mxu0 %v3458_v48  ;;  %618 = vmatpush.msra.mxu1 %v3460_v49 }
  0x78   :  { %638 = vmatpush.msra.mxu2 %v3464_v50  ;;  %658 = vmatpush.msra.mxu3 %v3466_v51 }
  0x79   :  { %599 = vmatpush.msra.mxu0 %v3476_v53  ;;  %619 = vmatpush.msra.mxu1 %v3478_v54 }
  0x7a   :  { %639 = vmatpush.msra.mxu2 %v3481_v55  ;;  %659 = vmatpush.msra.mxu3 %v3483_v56 }
  0x7b   :  { %600 = vmatpush.msra.mxu0 %v3485_v57  ;;  %620 = vmatpush.msra.mxu1 %v5384_v13 }
  0x7c   :  { %640 = vmatpush.msra.mxu2 %v3491_v59  ;;  %660 = vmatpush.msra.mxu3 %v3493_v60 }
  0x7d   :  { %601 = vmatpush.msra.mxu0 %v3497_v61  ;;  %621 = vmatpush.msra.mxu1 %v3499_v62 }
  0x7e   :  { %641 = vmatpush.msra.mxu2 %v3503_v63  ;;  %661 = vmatpush.msra.mxu3 %v5385_v0 }
  0x7f   :  { %602 = vmatpush.msra.mxu0 %v3515_v26  ;;  %622 = vmatpush.msra.mxu1 %v3517_v39 }
  0x80   :  { %642 = vmatpush.msra.mxu2 %v3520_v52  ;;  %662 = vmatpush.msra.mxu3 %v3522_v58 }
  0x81   :  { %758 = vmatpush.msrb.mxu0 %v3321_v1  ;;  %778 = vmatpush.msrb.mxu1 %v3323_v2 }
  0x82   :  { %798 = vmatpush.msrb.mxu2 %v3325_v3  ;;  %818 = vmatpush.msrb.mxu3 %v3327_v4 }
  0x83   :  { %759 = vmatpush.msrb.mxu0 %v3329_v5  ;;  %779 = vmatpush.msrb.mxu1 %v3331_v6 }
  0x84   :  { %799 = vmatpush.msrb.mxu2 %v3335_v7  ;;  %819 = vmatpush.msrb.mxu3 %v3337_v8 }
  0x85   :  { %760 = vmatpush.msrb.mxu0 %v3341_v9  ;;  %780 = vmatpush.msrb.mxu1 %v3343_v10 }
  0x86   :  { %800 = vmatpush.msrb.mxu2 %v3347_v11  ;;  %820 = vmatpush.msrb.mxu3 %v3349_v12 }
  0x87   :  { %761 = vmatpush.msrb.mxu0 %v3359_v14  ;;  %781 = vmatpush.msrb.mxu1 %v3361_v15 }
  0x88   :  { %801 = vmatpush.msrb.mxu2 %v3364_v16  ;;  %821 = vmatpush.msrb.mxu3 %v3366_v17 }
  0x89   :  { %762 = vmatpush.msrb.mxu0 %v3368_v18  ;;  %782 = vmatpush.msrb.mxu1 %v3370_v19 }
  0x8a   :  { %802 = vmatpush.msrb.mxu2 %v3374_v20  ;;  %822 = vmatpush.msrb.mxu3 %v3376_v21 }
  0x8b   :  { %763 = vmatpush.msrb.mxu0 %v3380_v22  ;;  %783 = vmatpush.msrb.mxu1 %v3382_v23 }
  0x8c   :  { %803 = vmatpush.msrb.mxu2 %v3386_v24  ;;  %823 = vmatpush.msrb.mxu3 %v3388_v25 }
  0x8d   :  { %764 = vmatpush.msrb.mxu0 %v3398_v27  ;;  %784 = vmatpush.msrb.mxu1 %v3400_v28 }
  0x8e   :  { %804 = vmatpush.msrb.mxu2 %v3403_v29  ;;  %824 = vmatpush.msrb.mxu3 %v3405_v30 }
  0x8f   :  { %765 = vmatpush.msrb.mxu0 %v3407_v31  ;;  %785 = vmatpush.msrb.mxu1 %v3409_v32  ;;  %v142_v31 = vld [vmem:[%s5203_s3] sm:$0xf] }
  0x90   :  { %805 = vmatpush.msrb.mxu2 %v3413_v33  ;;  %825 = vmatpush.msrb.mxu3 %v3415_v34  ;;  %v3721_v34 = vperm.slane %v142_v31, 0 }
  0x91   :  { %766 = vmatpush.msrb.mxu0 %v3419_v35  ;;  %786 = vmatpush.msrb.mxu1 %v3421_v36  ;;  %v3723_v35 = vperm.slane %v142_v31, 1 }
  0x92   :  { %806 = vmatpush.msrb.mxu2 %v3425_v37  ;;  %826 = vmatpush.msrb.mxu3 %v3427_v38  ;;  %5404 = vst [vmem:[#allocation29_spill] sm:$0xff] %v3721_v34 }
  0x93   :  { %767 = vmatpush.msrb.mxu0 %v3437_v40  ;;  %787 = vmatpush.msrb.mxu1 %v3439_v41  ;;  %5405 = vst [vmem:[#allocation30_spill] sm:$0xff] %v3723_v35 }
  0x94   :  { %807 = vmatpush.msrb.mxu2 %v3442_v42  ;;  %827 = vmatpush.msrb.mxu3 %v3444_v43 }
  0x95   :  { %768 = vmatpush.msrb.mxu0 %v3446_v44  ;;  %788 = vmatpush.msrb.mxu1 %v3448_v45  ;;  %v3731_v45 = vperm.slane %v142_v31, 2 }
  0x96   :  { %808 = vmatpush.msrb.mxu2 %v3452_v46  ;;  %828 = vmatpush.msrb.mxu3 %v3454_v47  ;;  %v3733_v46 = vperm.slane %v142_v31, 3 }
  0x97   :  { %769 = vmatpush.msrb.mxu0 %v3458_v48  ;;  %789 = vmatpush.msrb.mxu1 %v3460_v49  ;;  %5408 = vst [vmem:[#allocation33_spill] sm:$0xff] %v3731_v45 }
  0x98   :  { %809 = vmatpush.msrb.mxu2 %v3464_v50  ;;  %829 = vmatpush.msrb.mxu3 %v3466_v51  ;;  %5409 = vst [vmem:[#allocation34_spill] sm:$0xff] %v3733_v46 }
  0x99   :  { %770 = vmatpush.msrb.mxu0 %v3476_v53  ;;  %790 = vmatpush.msrb.mxu1 %v3478_v54 }
  0x9a   :  { %810 = vmatpush.msrb.mxu2 %v3481_v55  ;;  %830 = vmatpush.msrb.mxu3 %v3483_v56 }
  0x9b   :  { %771 = vmatpush.msrb.mxu0 %v3485_v57  ;;  %791 = vmatpush.msrb.mxu1 %v5384_v13 }
  0x9c   :  { %811 = vmatpush.msrb.mxu2 %v3491_v59  ;;  %831 = vmatpush.msrb.mxu3 %v3493_v60 }
  0x9d   :  { %772 = vmatpush.msrb.mxu0 %v3497_v61  ;;  %792 = vmatpush.msrb.mxu1 %v3499_v62 }
  0x9e   :  { %812 = vmatpush.msrb.mxu2 %v3503_v63  ;;  %832 = vmatpush.msrb.mxu3 %v5385_v0 }
  0x9f   :  { %773 = vmatpush.msrb.mxu0 %v3515_v26  ;;  %793 = vmatpush.msrb.mxu1 %v3517_v39 }
  0xa0   :  { %813 = vmatpush.msrb.mxu2 %v3520_v52  ;;  %833 = vmatpush.msrb.mxu3 %v3522_v58 }
  0xac   :  { %v169_v1 = vpop.f32.mrf.mxu0  ;;  %v210_v2 = vpop.f32.mrf.mxu1 }
  0xad   :  { %v170_v36 = vadd.f32 %v169_v1, %v3721_v34  ;;  %v211_v37 = vadd.f32 %v210_v2, %v3723_v35 }
  0xb3   :  { %v251_v3 = vpop.f32.mrf.mxu2  ;;  %v292_v4 = vpop.f32.mrf.mxu3 }
  0xb4   :  { %v3666_v5 = vpop.f32.mrf.mxu0  ;;  %v3668_v6 = vpop.f32.mrf.mxu1  ;;  %v252_v49 = vadd.f32 %v251_v3, %v3731_v45  ;;  %v293_v50 = vadd.f32 %v292_v4, %v3733_v46 }
  0xb5   :  { %v173_v4 = vadd.f32 %v3666_v5, %v3721_v34  ;;  %v214_v31 = vadd.f32 %v3668_v6, %v3723_v35 }
  0xbb   :  { %v3670_v7 = vpop.f32.mrf.mxu2  ;;  %v3672_v8 = vpop.f32.mrf.mxu3 }
  0xbc   :  { %v3674_v9 = vpop.f32.mrf.mxu0  ;;  %v3676_v10 = vpop.f32.mrf.mxu1 }
  0xc3   :  { %v3678_v11 = vpop.f32.mrf.mxu2  ;;  %v3680_v12 = vpop.f32.mrf.mxu3 }
  0xc4   :  { %v3682_v14 = vpop.f32.mrf.mxu0  ;;  %v3684_v15 = vpop.f32.mrf.mxu1 }
  0xc5   :  { %5386 = vst [vmem:[#allocation11_spill] sm:$0xff] %v3682_v14  ;;  %v3920_v14 = vld [vmem:[#allocation6 + $0x50] sm:$0xff] }
  0xc6   :  { %5387 = vst [vmem:[#allocation12_spill] sm:$0xff] %v3684_v15  ;;  %v3918_v15 = vld [vmem:[#allocation6 + $0x48] sm:$0xff] }
  0xc7   :  { %5422 = vst [vmem:[#allocation47_spill] sm:$0xff] %v3918_v15 }
  0xc8   :  { %5423 = vst [vmem:[#allocation48_spill] sm:$0xff] %v3920_v14 }
  0xcb   :  { %v3686_v16 = vpop.f32.mrf.mxu2  ;;  %v3688_v17 = vpop.f32.mrf.mxu3 }
  0xcc   :  { %5388 = vst [vmem:[#allocation13_spill] sm:$0xff] %v3686_v16  ;;  %v3690_v18 = vpop.f32.mrf.mxu0  ;;  %v3692_v19 = vpop.f32.mrf.mxu1  ;;  %v3916_v16 = vld [vmem:[#allocation6 + $0x40] sm:$0xff] }
  0xcd   :  { %5389 = vst [vmem:[#allocation14_spill] sm:$0xff] %v3688_v17  ;;  %v3912_v17 = vld [vmem:[#allocation6 + $0x78] sm:$0xff] }
  0xce   :  { %5390 = vst [vmem:[#allocation15_spill] sm:$0xff] %v3690_v18  ;;  %v3908_v18 = vld [vmem:[#allocation6 + $0x70] sm:$0xff] }
  0xcf   :  { %5391 = vst [vmem:[#allocation16_spill] sm:$0xff] %v3692_v19  ;;  %v3906_v19 = vld [vmem:[#allocation6 + $0x68] sm:$0xff] }
  0xd0   :  { %5418 = vst [vmem:[#allocation43_spill] sm:$0xff] %v3906_v19 }
  0xd1   :  { %5419 = vst [vmem:[#allocation44_spill] sm:$0xff] %v3908_v18 }
  0xd2   :  { %5420 = vst [vmem:[#allocation45_spill] sm:$0xff] %v3912_v17 }
  0xd3   :  { %v3694_v20 = vpop.f32.mrf.mxu2  ;;  %v3696_v21 = vpop.f32.mrf.mxu3  ;;  %5421 = vst [vmem:[#allocation46_spill] sm:$0xff] %v3916_v16 }
  0xd4   :  { %5392 = vst [vmem:[#allocation17_spill] sm:$0xff] %v3694_v20  ;;  %v3698_v22 = vpop.f32.mrf.mxu0  ;;  %v3700_v23 = vpop.f32.mrf.mxu1  ;;  %v3904_v20 = vld [vmem:[#allocation6 + $0x60] sm:$0xff] }
  0xd5   :  { %5393 = vst [vmem:[#allocation18_spill] sm:$0xff] %v3696_v21  ;;  %v3900_v21 = vld [vmem:[#allocation6 + $0x98] sm:$0xff] }
  0xd6   :  { %5394 = vst [vmem:[#allocation19_spill] sm:$0xff] %v3698_v22  ;;  %v3896_v22 = vld [vmem:[#allocation6 + $0x90] sm:$0xff] }
  0xd7   :  { %5395 = vst [vmem:[#allocation20_spill] sm:$0xff] %v3700_v23  ;;  %v3894_v23 = vld [vmem:[#allocation6 + $0x88] sm:$0xff] }
  0xd8   :  { %5414 = vst [vmem:[#allocation39_spill] sm:$0xff] %v3894_v23 }
  0xd9   :  { %5415 = vst [vmem:[#allocation40_spill] sm:$0xff] %v3896_v22 }
  0xda   :  { %5416 = vst [vmem:[#allocation41_spill] sm:$0xff] %v3900_v21 }
  0xdb   :  { %v3702_v24 = vpop.f32.mrf.mxu2  ;;  %v3704_v25 = vpop.f32.mrf.mxu3  ;;  %5417 = vst [vmem:[#allocation42_spill] sm:$0xff] %v3904_v20 }
  0xdc   :  { %5396 = vst [vmem:[#allocation21_spill] sm:$0xff] %v3702_v24  ;;  %v3706_v27 = vpop.f32.mrf.mxu0  ;;  %v3708_v28 = vpop.f32.mrf.mxu1  ;;  %v3892_v24 = vld [vmem:[#allocation6 + $0x80] sm:$0xff] }
  0xdd   :  { %5397 = vst [vmem:[#allocation22_spill] sm:$0xff] %v3704_v25  ;;  %v3888_v25 = vld [vmem:[#allocation6 + $0xb8] sm:$0xff] }
  0xde   :  { %5398 = vst [vmem:[#allocation23_spill] sm:$0xff] %v3706_v27  ;;  %v3884_v27 = vld [vmem:[#allocation6 + $0xb0] sm:$0xff] }
  0xdf   :  { %5399 = vst [vmem:[#allocation24_spill] sm:$0xff] %v3708_v28  ;;  %v3882_v28 = vld [vmem:[#allocation6 + $0xa8] sm:$0xff] }
  0xe0   :  { %5412 = vst [vmem:[#allocation37_spill] sm:$0xff] %v3888_v25 }
  0xe1   :  { %5413 = vst [vmem:[#allocation38_spill] sm:$0xff] %v3892_v24 }
  0xe3   :  { %v3710_v29 = vpop.f32.mrf.mxu2  ;;  %v3712_v30 = vpop.f32.mrf.mxu3 }
  0xe4   :  { %5400 = vst [vmem:[#allocation25_spill] sm:$0xff] %v3710_v29  ;;  %v3717_v32 = vpop.f32.mrf.mxu0  ;;  %v3719_v33 = vpop.f32.mrf.mxu1  ;;  %v3880_v29 = vld [vmem:[#allocation6 + $0xa0] sm:$0xff] }
  0xe5   :  { %5401 = vst [vmem:[#allocation26_spill] sm:$0xff] %v3712_v30  ;;  %v3876_v30 = vld [vmem:[#allocation6 + $0xd8] sm:$0xff] }
  0xe6   :  { %5402 = vst [vmem:[#allocation27_spill] sm:$0xff] %v3717_v32  ;;  %v3868_v32 = vld [vmem:[#allocation6 + $0xc0] sm:$0xff] }
  0xe7   :  { %5403 = vst [vmem:[#allocation28_spill] sm:$0xff] %v3719_v33  ;;  %v3864_v33 = vld [vmem:[#allocation6 + $0xf8] sm:$0xff] }
  0xeb   :  { %v3727_v38 = vpop.f32.mrf.mxu2  ;;  %v3729_v40 = vpop.f32.mrf.mxu3 }
  0xec   :  { %5406 = vst [vmem:[#allocation31_spill] sm:$0xff] %v3727_v38  ;;  %v433_v41 = vpop.f32.mrf.mxu0  ;;  %v453_v42 = vpop.f32.mrf.mxu1  ;;  %v3860_v38 = vld [vmem:[#allocation6 + $0xf0] sm:$0xff] }
  0xed   :  { %5407 = vst [vmem:[#allocation32_spill] sm:$0xff] %v3729_v40  ;;  %v496_v43 = vadd.f32 %v433_v41, %v170_v36  ;;  %v497_v44 = vadd.f32 %v453_v42, %v211_v37  ;;  %v3747_v36 = vld [vmem:[#allocation6 + $0x1e0] sm:$0xff]  ;;  %v3749_v37 = vld [vmem:[#allocation6 + $0x1e8] sm:$0xff]  ;;  %v3751_v41 = vld [vmem:[#allocation6 + $0x1f0] sm:$0xff] }
  0xee   :  { %v3858_v40 = vld [vmem:[#allocation6 + $0xe8] sm:$0xff] }
  0xef   :  { %v500_v47 = vmul.f32 0.5, %v496_v43  ;;  %v504_v48 = vmul.f32 0.5, %v497_v44  ;;  %v3755_v44 = vld [vmem:[#allocation6 + $0x1f8] sm:$0xff] }
  0xf1   :  { %2966 = vtanh.f32 %v500_v47 }
  0xf2   :  { %2968 = vtanh.f32 %v504_v48 }
  0xf3   :  { %v473_v51 = vpop.f32.mrf.mxu2  ;;  %v493_v53 = vpop.f32.mrf.mxu3 }
  0xf4   :  { %v498_v54 = vadd.f32 %v473_v51, %v252_v49  ;;  %v499_v55 = vadd.f32 %v493_v53, %v293_v50  ;;  %v255_v49 = vadd.f32 %v3670_v7, %v3731_v45  ;;  %v296_v50 = vadd.f32 %v3672_v8, %v3733_v46 }
  0xf6   :  { %2970 = vtanh.f32 %v498_v54  ;;  %v509_v56 = vmul.f32 0.5, %v499_v55 }
  0xf7   :  { %v2967_v57 = vpop.eup %2966 }
  0xf8   :  { %v2969_v58 = vpop.eup %2968  ;;  %v502_v59 = vadd.f32 1.0, %v2967_v57  ;;  %2972 = vtanh.f32 %v509_v56 }
  0xf9   :  { %v506_v60 = vadd.f32 1.0, %v2969_v58 }
  0xfa   :  { %v503_v61 = vmul.f32 0.5, %v502_v59 }
  0xfb   :  { %v507_v62 = vmul.f32 0.5, %v506_v60 }
  0xfc   :  { %v2971_v63 = vpop.eup %2970 }
  0xfd   :  { %v513_v26 = vmul.f32 0.0, %v507_v62  ;;  %v514_v39 = vmul.f32 %v2971_v63, %v503_v61 }
  0xfe   :  { %v2973_v52 = vpop.eup %2972 }
  0xff   :  { %v515_v0 = vadd.f32 %v514_v39, %v513_v26  ;;  %v511_v13 = vadd.f32 1.0, %v2973_v52 }
 0x101   :  { %2974 = vtanh.f32 %v515_v0  ;;  %v512_v1 = vmul.f32 0.5, %v511_v13 }
 0x107   :  { %v2975_v2 = vpop.eup %2974 }
 0x108   :  { %v3737_v3 = vmul.f32 %v2975_v2, %v512_v1 }
 0x10a   :  { %5410 = vst [vmem:[#allocation35_spill] sm:$0xff] %v3737_v3  ;;  %603 = vmatmul.f32.vlgmr.msra.gmra.mxu0 %v3737_v3  ;;  %623 = vmatmul.f32.vlgmr.msra.gmra.mxu1 %v3737_v3 }
 0x10b   :  { %643 = vmatmul.f32.vlgmr.msra.gmra.mxu2 %v3737_v3  ;;  %663 = vmatmul.f32.vlgmr.msra.gmra.mxu3 %v3737_v3  ;;  %v3872_v3 = vld [vmem:[#allocation6 + $0xd0] sm:$0xff] }
 0x10c   :  { %929 = vmatpush.msra.mxu0 %v3747_v36  ;;  %949 = vmatpush.msra.mxu1 %v3749_v37 }
 0x10d   :  { %969 = vmatpush.msra.mxu2 %v3751_v41  ;;  %989 = vmatpush.msra.mxu3 %v3755_v44 }
 0x187   :  { %v604_v42 = vpop.f32.mrf.mxu0  ;;  %v624_v43 = vpop.f32.mrf.mxu1 }
 0x188   :  { %v667_v47 = vadd.f32 %v604_v42, %v173_v4  ;;  %v668_v48 = vadd.f32 %v624_v43, %v214_v31  ;;  %v3774_v4 = vld [vmem:[#allocation6 + $0x1c8] sm:$0xff]  ;;  %v3776_v31 = vld [vmem:[#allocation6 + $0x1d0] sm:$0xff]  ;;  %v3780_v42 = vld [vmem:[#allocation6 + $0x1d8] sm:$0xff] }
 0x189   :  { %950 = vmatpush.msra.mxu1 %v3774_v4  ;;  %970 = vmatpush.msra.mxu2 %v3776_v31  ;;  %v3784_v43 = vld [vmem:[#allocation6 + $0x1a0] sm:$0xff] }
 0x18a   :  { %v671_v5 = vmul.f32 0.5, %v667_v47  ;;  %v675_v6 = vmul.f32 0.5, %v668_v48  ;;  %990 = vmatpush.msra.mxu3 %v3780_v42  ;;  %v3786_v47 = vld [vmem:[#allocation6 + $0x1a8] sm:$0xff]  ;;  %v3788_v48 = vld [vmem:[#allocation6 + $0x1b0] sm:$0xff] }
 0x18b   :  { %951 = vmatpush.msra.mxu1 %v3786_v47  ;;  %971 = vmatpush.msra.mxu2 %v3788_v48 }
 0x18c   :  { %2976 = vtanh.f32 %v671_v5  ;;  %v3792_v5 = vld [vmem:[#allocation6 + $0x1b8] sm:$0xff] }
 0x18d   :  { %2978 = vtanh.f32 %v675_v6  ;;  %991 = vmatpush.msra.mxu3 %v3792_v5  ;;  %v3796_v6 = vld [vmem:[#allocation6 + $0x180] sm:$0xff] }
 0x18e   :  { %v644_v51 = vpop.f32.mrf.mxu2  ;;  %v664_v53 = vpop.f32.mrf.mxu3 }
 0x18f   :  { %v669_v54 = vadd.f32 %v644_v51, %v255_v49  ;;  %v670_v55 = vadd.f32 %v664_v53, %v296_v50  ;;  %v3798_v49 = vld [vmem:[#allocation6 + $0x188] sm:$0xff]  ;;  %v3800_v50 = vld [vmem:[#allocation6 + $0x190] sm:$0xff]  ;;  %v3804_v51 = vld [vmem:[#allocation6 + $0x198] sm:$0xff] }
 0x190   :  { %952 = vmatpush.msra.mxu1 %v3798_v49  ;;  %972 = vmatpush.msra.mxu2 %v3800_v50  ;;  %v3808_v53 = vld [vmem:[#allocation6 + $0x160] sm:$0xff] }
 0x191   :  { %2980 = vtanh.f32 %v669_v54  ;;  %v680_v56 = vmul.f32 0.5, %v670_v55  ;;  %992 = vmatpush.msra.mxu3 %v3804_v51  ;;  %v3810_v54 = vld [vmem:[#allocation6 + $0x168] sm:$0xff]  ;;  %v3812_v55 = vld [vmem:[#allocation6 + $0x170] sm:$0xff] }
 0x192   :  { %v2977_v57 = vpop.eup %2976  ;;  %953 = vmatpush.msra.mxu1 %v3810_v54  ;;  %973 = vmatpush.msra.mxu2 %v3812_v55 }
 0x193   :  { %v2979_v58 = vpop.eup %2978  ;;  %v673_v59 = vadd.f32 1.0, %v2977_v57  ;;  %2982 = vtanh.f32 %v680_v56  ;;  %v3816_v56 = vld [vmem:[#allocation6 + $0x178] sm:$0xff]  ;;  %v3820_v57 = vld [vmem:[#allocation6 + $0x140] sm:$0xff] }
 0x194   :  { %v677_v60 = vadd.f32 1.0, %v2979_v58  ;;  %993 = vmatpush.msra.mxu3 %v3816_v56  ;;  %v3822_v58 = vld [vmem:[#allocation6 + $0x148] sm:$0xff] }
 0x195   :  { %v674_v61 = vmul.f32 0.5, %v673_v59  ;;  %v3824_v59 = vld [vmem:[#allocation6 + $0x150] sm:$0xff]  ;;  %954 = vmatpush.msra.mxu1 %v3822_v58 }
 0x196   :  { %v678_v62 = vmul.f32 0.5, %v677_v60  ;;  %v3828_v60 = vld [vmem:[#allocation6 + $0x158] sm:$0xff]  ;;  %974 = vmatpush.msra.mxu2 %v3824_v59 }
 0x197   :  { %v2981_v63 = vpop.eup %2980  ;;  %994 = vmatpush.msra.mxu3 %v3828_v60 }
 0x198   :  { %v684_v26 = vmul.f32 %v678_v62, %v515_v0  ;;  %v685_v7 = vmul.f32 %v2981_v63, %v674_v61  ;;  %v3772_v0 = vld [vmem:[#allocation6 + $0x1c0] sm:$0xff]  ;;  %v3834_v62 = vld [vmem:[#allocation6 + $0x128] sm:$0xff]  ;;  %v3836_v63 = vld [vmem:[#allocation6 + $0x130] sm:$0xff] }
 0x199   :  { %v2983_v39 = vpop.eup %2982  ;;  %930 = vmatpush.msra.mxu0 %v3772_v0  ;;  %v3832_v61 = vld [vmem:[#allocation6 + $0x120] sm:$0xff]  ;;  %955 = vmatpush.msra.mxu1 %v3834_v62 }
 0x19a   :  { %v3763_v52 = vadd.f32 %v685_v7, %v684_v26  ;;  %v682_v8 = vadd.f32 1.0, %v2983_v39  ;;  %v3840_v26 = vld [vmem:[#allocation6 + $0x138] sm:$0xff]  ;;  %975 = vmatpush.msra.mxu2 %v3836_v63  ;;  %v3844_v7 = vld [vmem:[#allocation6 + $0x100] sm:$0xff]  ;;  %v3846_v39 = vld [vmem:[#allocation6 + $0x108] sm:$0xff] }
 0x19b   :  { %931 = vmatpush.msra.mxu0 %v3784_v43  ;;  %995 = vmatpush.msra.mxu3 %v3840_v26 }
 0x19c   :  { %2984 = vtanh.f32 %v3763_v52  ;;  %v683_v13 = vmul.f32 0.5, %v682_v8  ;;  %v3848_v8 = vld [vmem:[#allocation6 + $0x110] sm:$0xff]  ;;  %956 = vmatpush.msra.mxu1 %v3846_v39 }
 0x19d   :  { %932 = vmatpush.msra.mxu0 %v3796_v6  ;;  %976 = vmatpush.msra.mxu2 %v3848_v8 }
 0x19e   :  { %957 = vmatpush.msra.mxu1 %v3858_v40 }
 0x19f   :  { %933 = vmatpush.msra.mxu0 %v3808_v53  ;;  %977 = vmatpush.msra.mxu2 %v3860_v38 }
 0x1a1   :  { %934 = vmatpush.msra.mxu0 %v3820_v57  ;;  %978 = vmatpush.msra.mxu2 %v3872_v3 }
 0x1a2   :  { %v2985_v1 = vpop.eup %2984 }
 0x1a3   :  { %v3766_v2 = vmul.f32 %v2985_v1, %v683_v13  ;;  %935 = vmatpush.msra.mxu0 %v3832_v61  ;;  %v3852_v13 = vld [vmem:[#allocation6 + $0x118] sm:$0xff]  ;;  %v3856_v1 = vld [vmem:[#allocation6 + $0xe0] sm:$0xff]  ;;  %979 = vmatpush.msra.mxu2 %v3884_v27 }
 0x1a4   :  { %996 = vmatpush.msra.mxu3 %v3852_v13 }
 0x1a5   :  { %5411 = vst [vmem:[#allocation36_spill] sm:$0xff] %v3766_v2  ;;  %774 = vmatmul.f32.vlgmr.msrb.gmra.mxu0 %v3766_v2  ;;  %794 = vmatmul.f32.vlgmr.msrb.gmra.mxu1 %v3766_v2 }
 0x1a6   :  { %814 = vmatmul.f32.vlgmr.msrb.gmra.mxu2 %v3766_v2  ;;  %834 = vmatmul.f32.vlgmr.msrb.gmra.mxu3 %v3766_v2  ;;  %v3870_v2 = vld [vmem:[#allocation6 + $0xc8] sm:$0xff] }
 0x1a7   :  { %936 = vmatpush.msra.mxu0 %v3844_v7  ;;  %997 = vmatpush.msra.mxu3 %v3864_v33 }
 0x1a8   :  { %958 = vmatpush.msra.mxu1 %v3870_v2  ;;  %980 = vmatpush.msra.mxu2 %v3896_v22 }
 0x1a9   :  { %937 = vmatpush.msra.mxu0 %v3856_v1  ;;  %998 = vmatpush.msra.mxu3 %v3876_v30 }
 0x1aa   :  { %959 = vmatpush.msra.mxu1 %v3882_v28  ;;  %981 = vmatpush.msra.mxu2 %v3908_v18  ;;  %v3930_v18 = vld [vmem:[#allocation6 + $0x28] sm:$0xff] }
 0x1ab   :  { %938 = vmatpush.msra.mxu0 %v3868_v32  ;;  %999 = vmatpush.msra.mxu3 %v3888_v25  ;;  %5426 = vst [vmem:[#allocation51_spill] sm:$0xff] %v3930_v18 }
 0x1ac   :  { %960 = vmatpush.msra.mxu1 %v3894_v23  ;;  %982 = vmatpush.msra.mxu2 %v3920_v14  ;;  %v3942_v14 = vld [vmem:[#allocation6 + $0x8] sm:$0xff] }
 0x1ad   :  { %939 = vmatpush.msra.mxu0 %v3880_v29  ;;  %1000 = vmatpush.msra.mxu3 %v3900_v21  ;;  %v3924_v21 = vld [vmem:[#allocation6 + $0x58] sm:$0xff]  ;;  %5430 = vst [vmem:[#allocation55_spill] sm:$0xff] %v3942_v14 }
 0x1ae   :  { %961 = vmatpush.msra.mxu1 %v3906_v19  ;;  %5424 = vst [vmem:[#allocation49_spill] sm:$0xff] %v3924_v21  ;;  %v3928_v19 = vld [vmem:[#allocation6 + $0x20] sm:$0xff] }
 0x1af   :  { %940 = vmatpush.msra.mxu0 %v3892_v24  ;;  %1001 = vmatpush.msra.mxu3 %v3912_v17  ;;  %5425 = vst [vmem:[#allocation50_spill] sm:$0xff] %v3928_v19  ;;  %v3932_v17 = vld [vmem:[#allocation6 + $0x30] sm:$0xff] }
 0x1b0   :  { %962 = vmatpush.msra.mxu1 %v3918_v15  ;;  %5427 = vst [vmem:[#allocation52_spill] sm:$0xff] %v3932_v17  ;;  %983 = vmatpush.msra.mxu2 %v3932_v17  ;;  %v3940_v15 = vld [vmem:[#allocation6] sm:$0xff]  ;;  %v176_v17 = vadd.f32 %v3674_v9, %v3721_v34 }
 0x1b1   :  { %941 = vmatpush.msra.mxu0 %v3904_v20  ;;  %1002 = vmatpush.msra.mxu3 %v3924_v21  ;;  %v3936_v20 = vld [vmem:[#allocation6 + $0x38] sm:$0xff]  ;;  %5429 = vst [vmem:[#allocation54_spill] sm:$0xff] %v3940_v15  ;;  %v3944_v21 = vld [vmem:[#allocation6 + $0x10] sm:$0xff] }
 0x1b2   :  { %963 = vmatpush.msra.mxu1 %v3930_v18  ;;  %5428 = vst [vmem:[#allocation53_spill] sm:$0xff] %v3936_v20  ;;  %984 = vmatpush.msra.mxu2 %v3944_v21 }
 0x1b3   :  { %942 = vmatpush.msra.mxu0 %v3916_v16  ;;  %1003 = vmatpush.msra.mxu3 %v3936_v20  ;;  %5431 = vst [vmem:[#allocation56_spill] sm:$0xff] %v3944_v21  ;;  %v3948_v16 = vld [vmem:[#allocation6 + $0x18] sm:$0xff]  ;;  %v217_v20 = vadd.f32 %v3676_v10, %v3723_v35 }
 0x1b4   :  { %964 = vmatpush.msra.mxu1 %v3942_v14  ;;  %5432 = vst [vmem:[#allocation57_spill] sm:$0xff] %v3948_v16  ;;  %1140 = vmatpush.msrb.mxu2 %v3751_v41 }
 0x1b5   :  { %943 = vmatpush.msra.mxu0 %v3928_v19  ;;  %1004 = vmatpush.msra.mxu3 %v3948_v16 }
 0x1b6   :  { %1120 = vmatpush.msrb.mxu1 %v3749_v37  ;;  %1141 = vmatpush.msrb.mxu2 %v3776_v31 }
 0x1b7   :  { %944 = vmatpush.msra.mxu0 %v3940_v15  ;;  %1160 = vmatpush.msrb.mxu3 %v3755_v44  ;;  %v5445_v34 = vld [vmem:[#allocation52_spill] sm:$0xff] }
 0x1b8   :  { %1121 = vmatpush.msrb.mxu1 %v3774_v4  ;;  %1142 = vmatpush.msrb.mxu2 %v3788_v48 }
 0x1b9   :  { %1100 = vmatpush.msrb.mxu0 %v3747_v36  ;;  %1161 = vmatpush.msrb.mxu3 %v3780_v42 }
 0x1ba   :  { %1122 = vmatpush.msrb.mxu1 %v3786_v47  ;;  %1143 = vmatpush.msrb.mxu2 %v3800_v50 }
 0x1bb   :  { %1101 = vmatpush.msrb.mxu0 %v3772_v0  ;;  %1162 = vmatpush.msrb.mxu3 %v3792_v5 }
 0x1bc   :  { %1123 = vmatpush.msrb.mxu1 %v3798_v49  ;;  %1144 = vmatpush.msrb.mxu2 %v3812_v55 }
 0x1bd   :  { %1102 = vmatpush.msrb.mxu0 %v3784_v43  ;;  %1163 = vmatpush.msrb.mxu3 %v3804_v51 }
 0x1be   :  { %1124 = vmatpush.msrb.mxu1 %v3810_v54  ;;  %1145 = vmatpush.msrb.mxu2 %v3824_v59 }
 0x1bf   :  { %1103 = vmatpush.msrb.mxu0 %v3796_v6  ;;  %1164 = vmatpush.msrb.mxu3 %v3816_v56 }
 0x1c0   :  { %1125 = vmatpush.msrb.mxu1 %v3822_v58  ;;  %1146 = vmatpush.msrb.mxu2 %v3836_v63 }
 0x1c1   :  { %1104 = vmatpush.msrb.mxu0 %v3808_v53  ;;  %1165 = vmatpush.msrb.mxu3 %v3828_v60 }
 0x1c2   :  { %1126 = vmatpush.msrb.mxu1 %v3834_v62  ;;  %1147 = vmatpush.msrb.mxu2 %v3848_v8 }
 0x1c3   :  { %1105 = vmatpush.msrb.mxu0 %v3820_v57  ;;  %1166 = vmatpush.msrb.mxu3 %v3840_v26 }
 0x1c4   :  { %1127 = vmatpush.msrb.mxu1 %v3846_v39  ;;  %1148 = vmatpush.msrb.mxu2 %v3860_v38 }
 0x1c5   :  { %1106 = vmatpush.msrb.mxu0 %v3832_v61  ;;  %1167 = vmatpush.msrb.mxu3 %v3852_v13 }
 0x1c6   :  { %1128 = vmatpush.msrb.mxu1 %v3858_v40  ;;  %1149 = vmatpush.msrb.mxu2 %v3872_v3 }
 0x1c7   :  { %1107 = vmatpush.msrb.mxu0 %v3844_v7  ;;  %1168 = vmatpush.msrb.mxu3 %v3864_v33 }
 0x1c8   :  { %1129 = vmatpush.msrb.mxu1 %v3870_v2  ;;  %1150 = vmatpush.msrb.mxu2 %v3884_v27 }
 0x1c9   :  { %1108 = vmatpush.msrb.mxu0 %v3856_v1  ;;  %1169 = vmatpush.msrb.mxu3 %v3876_v30 }
 0x1ca   :  { %1130 = vmatpush.msrb.mxu1 %v3882_v28  ;;  %1151 = vmatpush.msrb.mxu2 %v3896_v22 }
 0x1cb   :  { %1109 = vmatpush.msrb.mxu0 %v3868_v32  ;;  %1170 = vmatpush.msrb.mxu3 %v3888_v25 }
 0x1cc   :  { %1131 = vmatpush.msrb.mxu1 %v3894_v23 }
 0x1cd   :  { %1110 = vmatpush.msrb.mxu0 %v3880_v29 }
 0x1cf   :  { %1111 = vmatpush.msrb.mxu0 %v3892_v24 }
 0x222   :  { %v775_v18 = vpop.f32.mrf.mxu0  ;;  %v795_v15 = vpop.f32.mrf.mxu1 }
 0x223   :  { %v838_v14 = vadd.f32 %v775_v18, %v176_v17  ;;  %v839_v21 = vadd.f32 %v795_v15, %v217_v20  ;;  %v258_v15 = vadd.f32 %v3678_v11, %v3731_v45  ;;  %v5443_v45 = vld [vmem:[#allocation51_spill] sm:$0xff] }
 0x225   :  { %v842_v9 = vmul.f32 0.5, %v838_v14  ;;  %v846_v10 = vmul.f32 0.5, %v839_v21  ;;  %v299_v14 = vadd.f32 %v3680_v12, %v3733_v46 }
 0x227   :  { %2986 = vtanh.f32 %v842_v9 }
 0x228   :  { %2988 = vtanh.f32 %v846_v10 }
 0x229   :  { %v815_v17 = vpop.f32.mrf.mxu2  ;;  %v835_v18 = vpop.f32.mrf.mxu3 }
 0x22a   :  { %v840_v20 = vadd.f32 %v815_v17, %v258_v15  ;;  %v841_v21 = vadd.f32 %v835_v18, %v299_v14 }
 0x22c   :  { %2990 = vtanh.f32 %v840_v20  ;;  %v851_v11 = vmul.f32 0.5, %v841_v21 }
 0x22d   :  { %v2987_v12 = vpop.eup %2986 }
 0x22e   :  { %v2989_v9 = vpop.eup %2988  ;;  %v844_v10 = vadd.f32 1.0, %v2987_v12  ;;  %2992 = vtanh.f32 %v851_v11 }
 0x22f   :  { %v848_v15 = vadd.f32 1.0, %v2989_v9  ;;  %v5434_v9 = vld [vmem:[#allocation41_spill] sm:$0xff] }
 0x230   :  { %v845_v14 = vmul.f32 0.5, %v844_v10  ;;  %1171 = vmatpush.msrb.mxu3 %v5434_v9  ;;  %v5435_v10 = vld [vmem:[#allocation42_spill] sm:$0xff] }
 0x231   :  { %v849_v17 = vmul.f32 0.5, %v848_v15  ;;  %1112 = vmatpush.msrb.mxu0 %v5435_v10  ;;  %v5436_v15 = vld [vmem:[#allocation43_spill] sm:$0xff] }
 0x232   :  { %v2991_v18 = vpop.eup %2990  ;;  %1132 = vmatpush.msrb.mxu1 %v5436_v15 }
 0x233   :  { %v855_v20 = vmul.f32 %v849_v17, %v3763_v52  ;;  %v856_v21 = vmul.f32 %v2991_v18, %v845_v14  ;;  %v5437_v14 = vld [vmem:[#allocation44_spill] sm:$0xff]  ;;  %v5438_v17 = vld [vmem:[#allocation45_spill] sm:$0xff]  ;;  %v5439_v18 = vld [vmem:[#allocation46_spill] sm:$0xff] }
 0x234   :  { %v2993_v11 = vpop.eup %2992  ;;  %1152 = vmatpush.msrb.mxu2 %v5437_v14  ;;  %1172 = vmatpush.msrb.mxu3 %v5438_v17  ;;  %v5446_v14 = vld [vmem:[#allocation53_spill] sm:$0xff]  ;;  %v5447_v17 = vld [vmem:[#allocation54_spill] sm:$0xff] }
 0x235   :  { %v4001_v12 = vadd.f32 %v856_v21, %v855_v20  ;;  %v853_v52 = vadd.f32 1.0, %v2993_v11  ;;  %1113 = vmatpush.msrb.mxu0 %v5439_v18  ;;  %v5440_v20 = vld [vmem:[#allocation47_spill] sm:$0xff]  ;;  %v5442_v11 = vld [vmem:[#allocation49_spill] sm:$0xff] }
 0x236   :  { %1133 = vmatpush.msrb.mxu1 %v5440_v20  ;;  %1173 = vmatpush.msrb.mxu3 %v5442_v11  ;;  %v5448_v18 = vld [vmem:[#allocation55_spill] sm:$0xff] }
 0x237   :  { %5433 = vst [vmem:[#allocation58_spill] sm:$0xff] %v4001_v12  ;;  %2994 = vtanh.f32 %v4001_v12  ;;  %v854_v21 = vmul.f32 0.5, %v853_v52  ;;  %v5441_v12 = vld [vmem:[#allocation48_spill] sm:$0xff]  ;;  %1114 = vmatpush.msrb.mxu0 %v3928_v19 }
 0x238   :  { %1153 = vmatpush.msrb.mxu2 %v5441_v12  ;;  %1134 = vmatpush.msrb.mxu1 %v5443_v45  ;;  %v5449_v52 = vld [vmem:[#allocation56_spill] sm:$0xff] }
 0x239   :  { %1174 = vmatpush.msrb.mxu3 %v5446_v14  ;;  %1115 = vmatpush.msrb.mxu0 %v5447_v17 }
 0x23a   :  { %1154 = vmatpush.msrb.mxu2 %v5445_v34  ;;  %1135 = vmatpush.msrb.mxu1 %v5448_v18 }
 0x23b   :  { %1175 = vmatpush.msrb.mxu3 %v3948_v16 }
 0x23c   :  { %1155 = vmatpush.msrb.mxu2 %v5449_v52 }
 0x23d   :  { %v2995_v46 = vpop.eup %2994 }
 0x23e   :  { %v4022_v35 = vmul.f32 %v2995_v46, %v854_v21  ;;  %v5450_v46 = vld [vmem:[#allocation44_spill] sm:$0xff]  ;;  %v5451_v21 = vld [vmem:[#allocation45_spill] sm:$0xff] }
 0x240   :  { %5444 = vst [vmem:[#allocation59_spill] sm:$0xff] %v4022_v35  ;;  %945 = vmatmul.f32.vlgmr.msra.gmra.mxu0 %v4022_v35  ;;  %965 = vmatmul.f32.vlgmr.msra.gmra.mxu1 %v4022_v35 }
 0x241   :  { %985 = vmatmul.f32.vlgmr.msra.gmra.mxu2 %v4022_v35  ;;  %1005 = vmatmul.f32.vlgmr.msra.gmra.mxu3 %v4022_v35  ;;  %v5452_v35 = vld [vmem:[#allocation46_spill] sm:$0xff] }
 0x242   :  { %1271 = vmatpush.msra.mxu0 %v3747_v36  ;;  %1291 = vmatpush.msra.mxu1 %v3749_v37 }
 0x243   :  { %1311 = vmatpush.msra.mxu2 %v3751_v41  ;;  %1331 = vmatpush.msra.mxu3 %v3755_v44 }
 0x244   :  { %1272 = vmatpush.msra.mxu0 %v3772_v0  ;;  %1292 = vmatpush.msra.mxu1 %v3774_v4 }
 0x245   :  { %1312 = vmatpush.msra.mxu2 %v3776_v31  ;;  %1332 = vmatpush.msra.mxu3 %v3780_v42 }
 0x246   :  { %1273 = vmatpush.msra.mxu0 %v3784_v43  ;;  %1293 = vmatpush.msra.mxu1 %v3786_v47 }
 0x247   :  { %1313 = vmatpush.msra.mxu2 %v3788_v48  ;;  %1333 = vmatpush.msra.mxu3 %v3792_v5 }
 0x248   :  { %1274 = vmatpush.msra.mxu0 %v3796_v6  ;;  %1294 = vmatpush.msra.mxu1 %v3798_v49 }
 0x249   :  { %1314 = vmatpush.msra.mxu2 %v3800_v50  ;;  %1334 = vmatpush.msra.mxu3 %v3804_v51 }
 0x24a   :  { %1275 = vmatpush.msra.mxu0 %v3808_v53  ;;  %1295 = vmatpush.msra.mxu1 %v3810_v54 }
 0x24b   :  { %1315 = vmatpush.msra.mxu2 %v3812_v55  ;;  %1335 = vmatpush.msra.mxu3 %v3816_v56 }
 0x24c   :  { %1276 = vmatpush.msra.mxu0 %v3820_v57  ;;  %1296 = vmatpush.msra.mxu1 %v3822_v58 }
 0x24d   :  { %1316 = vmatpush.msra.mxu2 %v3824_v59  ;;  %1336 = vmatpush.msra.mxu3 %v3828_v60 }
 0x24e   :  { %1277 = vmatpush.msra.mxu0 %v3832_v61  ;;  %1297 = vmatpush.msra.mxu1 %v3834_v62 }
 0x24f   :  { %1317 = vmatpush.msra.mxu2 %v3836_v63  ;;  %1337 = vmatpush.msra.mxu3 %v3840_v26 }
 0x250   :  { %1278 = vmatpush.msra.mxu0 %v3844_v7  ;;  %1298 = vmatpush.msra.mxu1 %v3846_v39 }
 0x251   :  { %1318 = vmatpush.msra.mxu2 %v3848_v8  ;;  %1338 = vmatpush.msra.mxu3 %v3852_v13 }
 0x252   :  { %1279 = vmatpush.msra.mxu0 %v3856_v1  ;;  %1299 = vmatpush.msra.mxu1 %v3858_v40 }
 0x253   :  { %1319 = vmatpush.msra.mxu2 %v3860_v38  ;;  %1339 = vmatpush.msra.mxu3 %v3864_v33 }
 0x254   :  { %1280 = vmatpush.msra.mxu0 %v3868_v32  ;;  %1300 = vmatpush.msra.mxu1 %v3870_v2 }
 0x255   :  { %1320 = vmatpush.msra.mxu2 %v3872_v3  ;;  %1340 = vmatpush.msra.mxu3 %v3876_v30 }
 0x256   :  { %1281 = vmatpush.msra.mxu0 %v3880_v29  ;;  %1301 = vmatpush.msra.mxu1 %v3882_v28 }
 0x257   :  { %1321 = vmatpush.msra.mxu2 %v3884_v27  ;;  %1341 = vmatpush.msra.mxu3 %v3888_v25 }
 0x258   :  { %1282 = vmatpush.msra.mxu0 %v3892_v24  ;;  %1302 = vmatpush.msra.mxu1 %v3894_v23 }
 0x259   :  { %1322 = vmatpush.msra.mxu2 %v3896_v22  ;;  %1342 = vmatpush.msra.mxu3 %v5434_v9  ;;  %v5458_v9 = vld [vmem:[#allocation13_spill] sm:$0xff]  ;;  %v5459_v22 = vld [vmem:[#allocation34_spill] sm:$0xff] }
 0x25a   :  { %1283 = vmatpush.msra.mxu0 %v5435_v10  ;;  %1303 = vmatpush.msra.mxu1 %v5436_v15 }
 0x25b   :  { %1323 = vmatpush.msra.mxu2 %v5450_v46  ;;  %1343 = vmatpush.msra.mxu3 %v5451_v21  ;;  %v5456_v21 = vld [vmem:[#allocation12_spill] sm:$0xff] }
 0x25c   :  { %1284 = vmatpush.msra.mxu0 %v5452_v35  ;;  %1304 = vmatpush.msra.mxu1 %v5440_v20  ;;  %v5453_v20 = vld [vmem:[#allocation29_spill] sm:$0xff] }
 0x25d   :  { %1324 = vmatpush.msra.mxu2 %v5441_v12  ;;  %1344 = vmatpush.msra.mxu3 %v5442_v11  ;;  %v5454_v12 = vld [vmem:[#allocation11_spill] sm:$0xff]  ;;  %v5455_v11 = vld [vmem:[#allocation30_spill] sm:$0xff] }
 0x25e   :  { %1285 = vmatpush.msra.mxu0 %v3928_v19  ;;  %1305 = vmatpush.msra.mxu1 %v5443_v45  ;;  %v179_v35 = vadd.f32 %v5454_v12, %v5453_v20  ;;  %v220_v19 = vadd.f32 %v5456_v21, %v5455_v11 }
 0x25f   :  { %1325 = vmatpush.msra.mxu2 %v5445_v34  ;;  %1345 = vmatpush.msra.mxu3 %v5446_v14 }
 0x260   :  { %1286 = vmatpush.msra.mxu0 %v5447_v17  ;;  %1306 = vmatpush.msra.mxu1 %v5448_v18  ;;  %v5457_v17 = vld [vmem:[#allocation33_spill] sm:$0xff] }
 0x261   :  { %1326 = vmatpush.msra.mxu2 %v5449_v52  ;;  %1346 = vmatpush.msra.mxu3 %v3948_v16  ;;  %v261_v18 = vadd.f32 %v5458_v9, %v5457_v17  ;;  %v5460_v52 = vld [vmem:[#allocation14_spill] sm:$0xff] }
 0x262   :  { %v302_v23 = vadd.f32 %v5460_v52, %v5459_v22 }
 0x2bd   :  { %v946_v46 = vpop.f32.mrf.mxu0  ;;  %v966_v45 = vpop.f32.mrf.mxu1 }
 0x2be   :  { %v1009_v15 = vadd.f32 %v946_v46, %v179_v35  ;;  %v1010_v34 = vadd.f32 %v966_v45, %v220_v19 }
 0x2c0   :  { %v1013_v10 = vmul.f32 0.5, %v1009_v15  ;;  %v1017_v14 = vmul.f32 0.5, %v1010_v34  ;;  %v5461_v15 = vld [vmem:[#allocation58_spill] sm:$0xff] }
 0x2c2   :  { %2996 = vtanh.f32 %v1013_v10 }
 0x2c3   :  { %2998 = vtanh.f32 %v1017_v14 }
 0x2c4   :  { %v986_v16 = vpop.f32.mrf.mxu2  ;;  %v1006_v24 = vpop.f32.mrf.mxu3 }
 0x2c5   :  { %v1011_v12 = vadd.f32 %v986_v16, %v261_v18  ;;  %v1012_v20 = vadd.f32 %v1006_v24, %v302_v23 }
 0x2c7   :  { %3000 = vtanh.f32 %v1011_v12  ;;  %v1022_v21 = vmul.f32 0.5, %v1012_v20 }
 0x2c8   :  { %v2997_v11 = vpop.eup %2996 }
 0x2c9   :  { %v2999_v25 = vpop.eup %2998  ;;  %v1015_v35 = vadd.f32 1.0, %v2997_v11  ;;  %3002 = vtanh.f32 %v1022_v21 }
 0x2ca   :  { %v1019_v19 = vadd.f32 1.0, %v2999_v25  ;;  %v5462_v25 = vld [vmem:[#allocation37_spill] sm:$0xff] }
 0x2cb   :  { %v1016_v34 = vmul.f32 0.5, %v1015_v35 }
 0x2cc   :  { %v1020_v45 = vmul.f32 0.5, %v1019_v19 }
 0x2cd   :  { %v3001_v10 = vpop.eup %3000 }
 0x2ce   :  { %v1026_v9 = vmul.f32 %v1020_v45, %v5461_v15  ;;  %v1027_v46 = vmul.f32 %v3001_v10, %v1016_v34 }
 0x2cf   :  { %v3003_v17 = vpop.eup %3002 }
 0x2d0   :  { %v4107_v52 = vadd.f32 %v1027_v46, %v1026_v9  ;;  %v1024_v16 = vadd.f32 1.0, %v3003_v17 }
 0x2d2   :  { %3004 = vtanh.f32 %v4107_v52  ;;  %v1025_v23 = vmul.f32 0.5, %v1024_v16 }
 0x2d8   :  { %v3005_v24 = vpop.eup %3004 }
 0x2d9   :  { %v4110_v14 = vmul.f32 %v3005_v24, %v1025_v23  ;;  %v5491_v23 = vld [vmem:[#allocation20_spill] sm:$0xff] }
 0x2db   :  { %1116 = vmatmul.f32.vlgmr.msrb.gmra.mxu0 %v4110_v14  ;;  %1136 = vmatmul.f32.vlgmr.msrb.gmra.mxu1 %v4110_v14 }
 0x2dc   :  { %1156 = vmatmul.f32.vlgmr.msrb.gmra.mxu2 %v4110_v14  ;;  %1176 = vmatmul.f32.vlgmr.msrb.gmra.mxu3 %v4110_v14 }
 0x2dd   :  { %1442 = vmatpush.msrb.mxu0 %v3747_v36  ;;  %1462 = vmatpush.msrb.mxu1 %v3749_v37  ;;  %v5467_v36 = vld [vmem:[#allocation42_spill] sm:$0xff]  ;;  %v5473_v37 = vld [vmem:[#allocation48_spill] sm:$0xff] }
 0x2de   :  { %1482 = vmatpush.msrb.mxu2 %v3751_v41  ;;  %1502 = vmatpush.msrb.mxu3 %v3755_v44  ;;  %v5474_v41 = vld [vmem:[#allocation49_spill] sm:$0xff]  ;;  %v5475_v44 = vld [vmem:[#allocation50_spill] sm:$0xff] }
 0x2df   :  { %1443 = vmatpush.msrb.mxu0 %v3772_v0  ;;  %1463 = vmatpush.msrb.mxu1 %v3774_v4  ;;  %v5477_v0 = vld [vmem:[#allocation52_spill] sm:$0xff]  ;;  %v5478_v4 = vld [vmem:[#allocation53_spill] sm:$0xff] }
 0x2e0   :  { %1483 = vmatpush.msrb.mxu2 %v3776_v31  ;;  %1503 = vmatpush.msrb.mxu3 %v3780_v42  ;;  %v5479_v31 = vld [vmem:[#allocation54_spill] sm:$0xff]  ;;  %v5480_v42 = vld [vmem:[#allocation55_spill] sm:$0xff] }
 0x2e1   :  { %1444 = vmatpush.msrb.mxu0 %v3784_v43  ;;  %1464 = vmatpush.msrb.mxu1 %v3786_v47  ;;  %v5481_v43 = vld [vmem:[#allocation56_spill] sm:$0xff]  ;;  %v5482_v47 = vld [vmem:[#allocation57_spill] sm:$0xff] }
 0x2e2   :  { %1484 = vmatpush.msrb.mxu2 %v3788_v48  ;;  %1504 = vmatpush.msrb.mxu3 %v3792_v5  ;;  %v5483_v48 = vld [vmem:[#allocation29_spill] sm:$0xff]  ;;  %v5484_v5 = vld [vmem:[#allocation15_spill] sm:$0xff] }
 0x2e3   :  { %1445 = vmatpush.msrb.mxu0 %v3796_v6  ;;  %1465 = vmatpush.msrb.mxu1 %v3798_v49  ;;  %v182_v6 = vadd.f32 %v5484_v5, %v5483_v48  ;;  %v5485_v49 = vld [vmem:[#allocation30_spill] sm:$0xff] }
 0x2e4   :  { %1485 = vmatpush.msrb.mxu2 %v3800_v50  ;;  %1505 = vmatpush.msrb.mxu3 %v3804_v51  ;;  %v5486_v50 = vld [vmem:[#allocation16_spill] sm:$0xff]  ;;  %v226_v24 = vadd.f32 %v5491_v23, %v5485_v49  ;;  %v1600_v5 = vld [vmem:[#allocation6 + $0x198] sm:$0xff] }
 0x2e5   :  { %1446 = vmatpush.msrb.mxu0 %v3808_v53  ;;  %1466 = vmatpush.msrb.mxu1 %v3810_v54  ;;  %v223_v51 = vadd.f32 %v5486_v50, %v5485_v49  ;;  %v1594_v50 = vld [vmem:[#allocation6 + $0x168] sm:$0xff]  ;;  %v1580_v23 = vld [vmem:[#allocation6 + $0xf8] sm:$0xff] }
 0x2e6   :  { %1486 = vmatpush.msrb.mxu2 %v3812_v55  ;;  %1506 = vmatpush.msrb.mxu3 %v3816_v56 }
 0x2e7   :  { %1447 = vmatpush.msrb.mxu0 %v3820_v57  ;;  %1467 = vmatpush.msrb.mxu1 %v3822_v58 }
 0x2e8   :  { %1487 = vmatpush.msrb.mxu2 %v3824_v59  ;;  %1507 = vmatpush.msrb.mxu3 %v3828_v60  ;;  %v5487_v59 = vld [vmem:[#allocation33_spill] sm:$0xff] }
 0x2e9   :  { %1448 = vmatpush.msrb.mxu0 %v3832_v61  ;;  %1468 = vmatpush.msrb.mxu1 %v3834_v62  ;;  %v5488_v60 = vld [vmem:[#allocation17_spill] sm:$0xff]  ;;  %v5489_v62 = vld [vmem:[#allocation18_spill] sm:$0xff] }
 0x2ea   :  { %1488 = vmatpush.msrb.mxu2 %v3836_v63  ;;  %1508 = vmatpush.msrb.mxu3 %v3840_v26  ;;  %v264_v61 = vadd.f32 %v5488_v60, %v5487_v59  ;;  %v305_v63 = vadd.f32 %v5489_v62, %v5459_v22  ;;  %v1590_v62 = vld [vmem:[#allocation6 + $0x148] sm:$0xff] }
 0x2eb   :  { %1449 = vmatpush.msrb.mxu0 %v3844_v7  ;;  %1469 = vmatpush.msrb.mxu1 %v3846_v39 }
 0x2ec   :  { %1489 = vmatpush.msrb.mxu2 %v3848_v8  ;;  %1509 = vmatpush.msrb.mxu3 %v3852_v13 }
 0x2ed   :  { %1450 = vmatpush.msrb.mxu0 %v3856_v1  ;;  %1470 = vmatpush.msrb.mxu1 %v3858_v40  ;;  %v5463_v40 = vld [vmem:[#allocation38_spill] sm:$0xff] }
 0x2ee   :  { %1490 = vmatpush.msrb.mxu2 %v3860_v38  ;;  %1510 = vmatpush.msrb.mxu3 %v3864_v33  ;;  %v5464_v38 = vld [vmem:[#allocation39_spill] sm:$0xff]  ;;  %v5465_v33 = vld [vmem:[#allocation40_spill] sm:$0xff] }
 0x2ef   :  { %1451 = vmatpush.msrb.mxu0 %v3868_v32  ;;  %1471 = vmatpush.msrb.mxu1 %v3870_v2  ;;  %v5466_v32 = vld [vmem:[#allocation41_spill] sm:$0xff]  ;;  %v5476_v2 = vld [vmem:[#allocation51_spill] sm:$0xff] }
 0x2f0   :  { %1491 = vmatpush.msrb.mxu2 %v3872_v3  ;;  %1511 = vmatpush.msrb.mxu3 %v3876_v30  ;;  %v5468_v3 = vld [vmem:[#allocation43_spill] sm:$0xff]  ;;  %v5469_v30 = vld [vmem:[#allocation44_spill] sm:$0xff] }
 0x2f1   :  { %1452 = vmatpush.msrb.mxu0 %v3880_v29  ;;  %1472 = vmatpush.msrb.mxu1 %v3882_v28  ;;  %v5470_v29 = vld [vmem:[#allocation45_spill] sm:$0xff]  ;;  %v5471_v28 = vld [vmem:[#allocation46_spill] sm:$0xff] }
 0x2f2   :  { %1492 = vmatpush.msrb.mxu2 %v3884_v27  ;;  %1512 = vmatpush.msrb.mxu3 %v5462_v25  ;;  %v5472_v27 = vld [vmem:[#allocation47_spill] sm:$0xff] }
 0x2f3   :  { %1453 = vmatpush.msrb.mxu0 %v5463_v40  ;;  %1473 = vmatpush.msrb.mxu1 %v5464_v38  ;;  %v1609_v25 = vld [vmem:[#allocation6 + $0x1e0] sm:$0xff]  ;;  %v1610_v40 = vld [vmem:[#allocation6 + $0x1e8] sm:$0xff]  ;;  %v1611_v38 = vld [vmem:[#allocation6 + $0x1f0] sm:$0xff] }
 0x2f4   :  { %1493 = vmatpush.msrb.mxu2 %v5465_v33  ;;  %1513 = vmatpush.msrb.mxu3 %v5466_v32 }
 0x2f5   :  { %1454 = vmatpush.msrb.mxu0 %v5467_v36  ;;  %1474 = vmatpush.msrb.mxu1 %v5468_v3  ;;  %v1612_v36 = vld [vmem:[#allocation6 + $0x1f8] sm:$0xff]  ;;  %v1605_v3 = vld [vmem:[#allocation6 + $0x1c0] sm:$0xff] }
 0x2f6   :  { %1494 = vmatpush.msrb.mxu2 %v5469_v30  ;;  %1514 = vmatpush.msrb.mxu3 %v5470_v29  ;;  %v1606_v30 = vld [vmem:[#allocation6 + $0x1c8] sm:$0xff] }
 0x2f7   :  { %1455 = vmatpush.msrb.mxu0 %v5471_v28  ;;  %1475 = vmatpush.msrb.mxu1 %v5472_v27  ;;  %v1607_v27 = vld [vmem:[#allocation6 + $0x1d0] sm:$0xff] }
 0x2f8   :  { %1495 = vmatpush.msrb.mxu2 %v5473_v37  ;;  %1515 = vmatpush.msrb.mxu3 %v5474_v41  ;;  %v1608_v37 = vld [vmem:[#allocation6 + $0x1d8] sm:$0xff]  ;;  %v1601_v41 = vld [vmem:[#allocation6 + $0x1a0] sm:$0xff] }
 0x2f9   :  { %1456 = vmatpush.msrb.mxu0 %v5475_v44  ;;  %1476 = vmatpush.msrb.mxu1 %v5476_v2  ;;  %v1602_v44 = vld [vmem:[#allocation6 + $0x1a8] sm:$0xff]  ;;  %v1603_v2 = vld [vmem:[#allocation6 + $0x1b0] sm:$0xff] }
 0x2fa   :  { %1496 = vmatpush.msrb.mxu2 %v5477_v0  ;;  %1516 = vmatpush.msrb.mxu3 %v5478_v4  ;;  %v1604_v0 = vld [vmem:[#allocation6 + $0x1b8] sm:$0xff] }
 0x2fb   :  { %1457 = vmatpush.msrb.mxu0 %v5479_v31  ;;  %1477 = vmatpush.msrb.mxu1 %v5480_v42  ;;  %v1597_v42 = vld [vmem:[#allocation6 + $0x180] sm:$0xff] }
 0x2fc   :  { %1497 = vmatpush.msrb.mxu2 %v5481_v43  ;;  %1517 = vmatpush.msrb.mxu3 %v5482_v47  ;;  %v1598_v43 = vld [vmem:[#allocation6 + $0x188] sm:$0xff]  ;;  %v1599_v47 = vld [vmem:[#allocation6 + $0x190] sm:$0xff] }
 0x358   :  { %v1117_v53 = vpop.f32.mrf.mxu0  ;;  %v1137_v54 = vpop.f32.mrf.mxu1 }
 0x359   :  { %v1180_v55 = vadd.f32 %v1117_v53, %v182_v6  ;;  %v1181_v56 = vadd.f32 %v1137_v54, %v223_v51  ;;  %v1593_v6 = vld [vmem:[#allocation6 + $0x160] sm:$0xff]  ;;  %v5492_v51 = vld [vmem:[#allocation21_spill] sm:$0xff]  ;;  %v5493_v54 = vld [vmem:[#allocation22_spill] sm:$0xff] }
 0x35a   :  { %v267_v53 = vadd.f32 %v5492_v51, %v5487_v59  ;;  %v1557_v51 = vld [vmem:[#allocation6 + $0x40] sm:$0xff] }
 0x35b   :  { %v1184_v57 = vmul.f32 0.5, %v1180_v55  ;;  %v1188_v58 = vmul.f32 0.5, %v1181_v56  ;;  %v308_v55 = vadd.f32 %v5493_v54, %v5459_v22  ;;  %v1595_v56 = vld [vmem:[#allocation6 + $0x170] sm:$0xff] }
 0x35c   :  { %v1559_v54 = vld [vmem:[#allocation6 + $0x50] sm:$0xff] }
 0x35d   :  { %3006 = vtanh.f32 %v1184_v57  ;;  %v1596_v57 = vld [vmem:[#allocation6 + $0x178] sm:$0xff] }
 0x35e   :  { %3008 = vtanh.f32 %v1188_v58 }
 0x35f   :  { %v1157_v26 = vpop.f32.mrf.mxu2  ;;  %v1177_v7 = vpop.f32.mrf.mxu3 }
 0x360   :  { %v1182_v39 = vadd.f32 %v1157_v26, %v264_v61  ;;  %v1183_v8 = vadd.f32 %v1177_v7, %v305_v63  ;;  %v1589_v61 = vld [vmem:[#allocation6 + $0x140] sm:$0xff]  ;;  %v1591_v7 = vld [vmem:[#allocation6 + $0x150] sm:$0xff] }
 0x362   :  { %3010 = vtanh.f32 %v1182_v39  ;;  %v1193_v13 = vmul.f32 0.5, %v1183_v8  ;;  %v1592_v39 = vld [vmem:[#allocation6 + $0x158] sm:$0xff]  ;;  %v1585_v8 = vld [vmem:[#allocation6 + $0x120] sm:$0xff] }
 0x363   :  { %v3007_v1 = vpop.eup %3006 }
 0x364   :  { %v3009_v17 = vpop.eup %3008  ;;  %v1186_v18 = vadd.f32 1.0, %v3007_v1  ;;  %3012 = vtanh.f32 %v1193_v13  ;;  %v1586_v13 = vld [vmem:[#allocation6 + $0x128] sm:$0xff] }
 0x365   :  { %v1190_v20 = vadd.f32 1.0, %v3009_v17  ;;  %v1587_v17 = vld [vmem:[#allocation6 + $0x130] sm:$0xff] }
 0x366   :  { %v1187_v11 = vmul.f32 0.5, %v1186_v18  ;;  %v1588_v18 = vld [vmem:[#allocation6 + $0x138] sm:$0xff] }
 0x367   :  { %v1191_v12 = vmul.f32 0.5, %v1190_v20 }
 0x368   :  { %v3011_v21 = vpop.eup %3010 }
 0x369   :  { %v1197_v35 = vmul.f32 %v1191_v12, %v4107_v52  ;;  %v1198_v19 = vmul.f32 %v3011_v21, %v1187_v11  ;;  %v5490_v52 = vld [vmem:[#allocation19_spill] sm:$0xff]  ;;  %v1582_v12 = vld [vmem:[#allocation6 + $0x108] sm:$0xff] }
 0x36a   :  { %v3013_v34 = vpop.eup %3012  ;;  %v185_v16 = vadd.f32 %v5490_v52, %v5483_v48  ;;  %v1581_v11 = vld [vmem:[#allocation6 + $0x100] sm:$0xff] }
 0x36b   :  { %v4189_v45 = vadd.f32 %v1198_v19, %v1197_v35  ;;  %v1195_v10 = vadd.f32 1.0, %v3013_v34  ;;  %v1583_v19 = vld [vmem:[#allocation6 + $0x110] sm:$0xff]  ;;  %v1584_v34 = vld [vmem:[#allocation6 + $0x118] sm:$0xff] }
 0x36d   :  { %3014 = vtanh.f32 %v4189_v45  ;;  %v1196_v15 = vmul.f32 0.5, %v1195_v10 }
 0x373   :  { %v3015_v9 = vpop.eup %3014 }
 0x374   :  { %v4192_v46 = vmul.f32 %v3015_v9, %v1196_v15  ;;  %v1577_v15 = vld [vmem:[#allocation6 + $0xe0] sm:$0xff]  ;;  %v1578_v9 = vld [vmem:[#allocation6 + $0xe8] sm:$0xff] }
 0x376   :  { %1287 = vmatmul.f32.vlgmr.msra.gmra.mxu0 %v4192_v46  ;;  %1307 = vmatmul.f32.vlgmr.msra.gmra.mxu1 %v4192_v46 }
 0x377   :  { %1327 = vmatmul.f32.vlgmr.msra.gmra.mxu2 %v4192_v46  ;;  %1347 = vmatmul.f32.vlgmr.msra.gmra.mxu3 %v4192_v46 }
 0x378   :  { %1613 = vmatpush.msra.mxu0 %v1609_v25  ;;  %1633 = vmatpush.msra.mxu1 %v1610_v40  ;;  %v1573_v25 = vld [vmem:[#allocation6 + $0xc0] sm:$0xff]  ;;  %v1574_v40 = vld [vmem:[#allocation6 + $0xc8] sm:$0xff] }
 0x379   :  { %1653 = vmatpush.msra.mxu2 %v1611_v38  ;;  %1673 = vmatpush.msra.mxu3 %v1612_v36 }
 0x37a   :  { %1614 = vmatpush.msra.mxu0 %v1605_v3  ;;  %1634 = vmatpush.msra.mxu1 %v1606_v30  ;;  %v1569_v30 = vld [vmem:[#allocation6 + $0xa0] sm:$0xff] }
 0x37b   :  { %1654 = vmatpush.msra.mxu2 %v1607_v27  ;;  %1674 = vmatpush.msra.mxu3 %v1608_v37  ;;  %v1572_v27 = vld [vmem:[#allocation6 + $0xb8] sm:$0xff] }
 0x37c   :  { %1615 = vmatpush.msra.mxu0 %v1601_v41  ;;  %1635 = vmatpush.msra.mxu1 %v1602_v44  ;;  %v1565_v44 = vld [vmem:[#allocation6 + $0x80] sm:$0xff] }
 0x37d   :  { %1655 = vmatpush.msra.mxu2 %v1603_v2  ;;  %1675 = vmatpush.msra.mxu3 %v1604_v0  ;;  %v1566_v2 = vld [vmem:[#allocation6 + $0x88] sm:$0xff]  ;;  %v1567_v0 = vld [vmem:[#allocation6 + $0x90] sm:$0xff] }
 0x37e   :  { %1616 = vmatpush.msra.mxu0 %v1597_v42  ;;  %1636 = vmatpush.msra.mxu1 %v1598_v43  ;;  %v1563_v43 = vld [vmem:[#allocation6 + $0x70] sm:$0xff] }
 0x37f   :  { %1656 = vmatpush.msra.mxu2 %v1599_v47  ;;  %1676 = vmatpush.msra.mxu3 %v1600_v5  ;;  %v1564_v47 = vld [vmem:[#allocation6 + $0x78] sm:$0xff] }
 0x380   :  { %1617 = vmatpush.msra.mxu0 %v1593_v6  ;;  %1637 = vmatpush.msra.mxu1 %v1594_v50 }
 0x381   :  { %1657 = vmatpush.msra.mxu2 %v1595_v56  ;;  %1677 = vmatpush.msra.mxu3 %v1596_v57  ;;  %v1553_v56 = vld [vmem:[#allocation6 + $0x20] sm:$0xff]  ;;  %v1554_v57 = vld [vmem:[#allocation6 + $0x28] sm:$0xff] }
 0x382   :  { %1618 = vmatpush.msra.mxu0 %v1589_v61  ;;  %1638 = vmatpush.msra.mxu1 %v1590_v62  ;;  %v1549_v61 = vld [vmem:[#allocation6] sm:$0xff]  ;;  %v1550_v62 = vld [vmem:[#allocation6 + $0x8] sm:$0xff] }
 0x383   :  { %1658 = vmatpush.msra.mxu2 %v1591_v7  ;;  %1678 = vmatpush.msra.mxu3 %v1592_v39  ;;  %v1785_v7 = vld [vmem:[#allocation4 + $0x3e0] sm:$0xff]  ;;  %v1786_v39 = vld [vmem:[#allocation4 + $0x3e8] sm:$0xff] }
 0x384   :  { %1619 = vmatpush.msra.mxu0 %v1585_v8  ;;  %1639 = vmatpush.msra.mxu1 %v1586_v13  ;;  %v1787_v8 = vld [vmem:[#allocation4 + $0x3f0] sm:$0xff]  ;;  %v1788_v13 = vld [vmem:[#allocation4 + $0x3f8] sm:$0xff] }
 0x385   :  { %1659 = vmatpush.msra.mxu2 %v1587_v17  ;;  %1679 = vmatpush.msra.mxu3 %v1588_v18  ;;  %v1782_v17 = vld [vmem:[#allocation4 + $0x3c8] sm:$0xff]  ;;  %v1783_v18 = vld [vmem:[#allocation4 + $0x3d0] sm:$0xff] }
 0x386   :  { %1620 = vmatpush.msra.mxu0 %v1581_v11  ;;  %1640 = vmatpush.msra.mxu1 %v1582_v12  ;;  %v1777_v11 = vld [vmem:[#allocation4 + $0x3a0] sm:$0xff]  ;;  %v1778_v12 = vld [vmem:[#allocation4 + $0x3a8] sm:$0xff] }
 0x387   :  { %1660 = vmatpush.msra.mxu2 %v1583_v19  ;;  %1680 = vmatpush.msra.mxu3 %v1584_v34  ;;  %v1773_v19 = vld [vmem:[#allocation4 + $0x380] sm:$0xff]  ;;  %v1774_v34 = vld [vmem:[#allocation4 + $0x388] sm:$0xff] }
 0x388   :  { %1621 = vmatpush.msra.mxu0 %v1577_v15  ;;  %1641 = vmatpush.msra.mxu1 %v1578_v9  ;;  %v1776_v15 = vld [vmem:[#allocation4 + $0x398] sm:$0xff]  ;;  %v1769_v9 = vld [vmem:[#allocation4 + $0x360] sm:$0xff] }
 0x389   :  { %1681 = vmatpush.msra.mxu3 %v1580_v23  ;;  %v1772_v23 = vld [vmem:[#allocation4 + $0x378] sm:$0xff] }
 0x38a   :  { %1622 = vmatpush.msra.mxu0 %v1573_v25  ;;  %1642 = vmatpush.msra.mxu1 %v1574_v40  ;;  %v1766_v25 = vld [vmem:[#allocation4 + $0x348] sm:$0xff]  ;;  %v1767_v40 = vld [vmem:[#allocation4 + $0x350] sm:$0xff] }
 0x38c   :  { %1623 = vmatpush.msra.mxu0 %v1569_v30  ;;  %v1757_v30 = vld [vmem:[#allocation4 + $0x300] sm:$0xff] }
 0x38e   :  { %1624 = vmatpush.msra.mxu0 %v1565_v44  ;;  %v1754_v44 = vld [vmem:[#allocation4 + $0x2e8] sm:$0xff] }
 0x3f3   :  { %v1288_v33 = vpop.f32.mrf.mxu0  ;;  %v1308_v32 = vpop.f32.mrf.mxu1 }
 0x3f4   :  { %v1351_v29 = vadd.f32 %v1288_v33, %v185_v16  ;;  %v1352_v28 = vadd.f32 %v1308_v32, %v226_v24  ;;  %v1579_v16 = vld [vmem:[#allocation6 + $0xf0] sm:$0xff]  ;;  %v1576_v32 = vld [vmem:[#allocation6 + $0xd8] sm:$0xff] }
 0x3f5   :  { %v1575_v33 = vld [vmem:[#allocation6 + $0xd0] sm:$0xff]  ;;  %1661 = vmatpush.msra.mxu2 %v1579_v16  ;;  %1682 = vmatpush.msra.mxu3 %v1576_v32  ;;  %v1762_v32 = vld [vmem:[#allocation4 + $0x328] sm:$0xff] }
 0x3f6   :  { %v1355_v4 = vmul.f32 0.5, %v1351_v29  ;;  %v1359_v31 = vmul.f32 0.5, %v1352_v28  ;;  %v1570_v29 = vld [vmem:[#allocation6 + $0xa8] sm:$0xff]  ;;  %v1571_v28 = vld [vmem:[#allocation6 + $0xb0] sm:$0xff] }
 0x3f7   :  { %1662 = vmatpush.msra.mxu2 %v1575_v33  ;;  %1643 = vmatpush.msra.mxu1 %v1570_v29  ;;  %v1771_v16 = vld [vmem:[#allocation4 + $0x370] sm:$0xff]  ;;  %v1761_v33 = vld [vmem:[#allocation4 + $0x320] sm:$0xff]  ;;  %v1758_v29 = vld [vmem:[#allocation4 + $0x308] sm:$0xff] }
 0x3f8   :  { %3016 = vtanh.f32 %v1355_v4  ;;  %1683 = vmatpush.msra.mxu3 %v1572_v27  ;;  %v1561_v4 = vld [vmem:[#allocation6 + $0x60] sm:$0xff]  ;;  %v1760_v27 = vld [vmem:[#allocation4 + $0x318] sm:$0xff] }
 0x3f9   :  { %3018 = vtanh.f32 %v1359_v31  ;;  %1663 = vmatpush.msra.mxu2 %v1571_v28  ;;  %v1562_v31 = vld [vmem:[#allocation6 + $0x68] sm:$0xff]  ;;  %1644 = vmatpush.msra.mxu1 %v1566_v2  ;;  %v1759_v28 = vld [vmem:[#allocation4 + $0x310] sm:$0xff] }
 0x3fa   :  { %v1328_v58 = vpop.f32.mrf.mxu2  ;;  %v1348_v60 = vpop.f32.mrf.mxu3  ;;  %1625 = vmatpush.msra.mxu0 %v1561_v4  ;;  %v1755_v2 = vld [vmem:[#allocation4 + $0x2f0] sm:$0xff]  ;;  %v1750_v4 = vld [vmem:[#allocation4 + $0x2c8] sm:$0xff] }
 0x3fb   :  { %v1353_v63 = vadd.f32 %v1328_v58, %v267_v53  ;;  %v1354_v26 = vadd.f32 %v1348_v60, %v308_v55  ;;  %1664 = vmatpush.msra.mxu2 %v1567_v0  ;;  %1645 = vmatpush.msra.mxu1 %v1562_v31  ;;  %v1558_v53 = vld [vmem:[#allocation6 + $0x48] sm:$0xff]  ;;  %v1560_v55 = vld [vmem:[#allocation6 + $0x58] sm:$0xff]  ;;  %v1555_v58 = vld [vmem:[#allocation6 + $0x30] sm:$0xff] }
 0x3fc   :  { %1626 = vmatpush.msra.mxu0 %v1557_v51  ;;  %v1556_v60 = vld [vmem:[#allocation6 + $0x38] sm:$0xff]  ;;  %v1751_v31 = vld [vmem:[#allocation4 + $0x2d0] sm:$0xff]  ;;  %v1741_v51 = vld [vmem:[#allocation4 + $0x280] sm:$0xff] }
 0x3fd   :  { %3020 = vtanh.f32 %v1353_v63  ;;  %v1364_v1 = vmul.f32 0.5, %v1354_v26  ;;  %1665 = vmatpush.msra.mxu2 %v1563_v43  ;;  %1646 = vmatpush.msra.mxu1 %v1558_v53  ;;  %v1551_v63 = vld [vmem:[#allocation6 + $0x10] sm:$0xff]  ;;  %v1552_v26 = vld [vmem:[#allocation6 + $0x18] sm:$0xff]  ;;  %v1745_v43 = vld [vmem:[#allocation4 + $0x2a0] sm:$0xff] }
 0x3fe   :  { %v3017_v20 = vpop.eup %3016  ;;  %1627 = vmatpush.msra.mxu0 %v1553_v56  ;;  %v1756_v0 = vld [vmem:[#allocation4 + $0x2f8] sm:$0xff]  ;;  %v1742_v53 = vld [vmem:[#allocation4 + $0x288] sm:$0xff]  ;;  %v5494_v56 = vld [vmem:[#allocation23_spill] sm:$0xff] }
 0x3ff   :  { %v3019_v21 = vpop.eup %3018  ;;  %v1357_v35 = vadd.f32 1.0, %v3017_v20  ;;  %3022 = vtanh.f32 %v1364_v1  ;;  %1666 = vmatpush.msra.mxu2 %v1559_v54  ;;  %1647 = vmatpush.msra.mxu1 %v1554_v57  ;;  %v1781_v1 = vld [vmem:[#allocation4 + $0x3c0] sm:$0xff]  ;;  %v1784_v20 = vld [vmem:[#allocation4 + $0x3d8] sm:$0xff]  ;;  %v1743_v54 = vld [vmem:[#allocation4 + $0x290] sm:$0xff]  ;;  %v188_v57 = vadd.f32 %v5494_v56, %v5483_v48 }
 0x400   :  { %v1361_v10 = vadd.f32 1.0, %v3019_v21  ;;  %1628 = vmatpush.msra.mxu0 %v1549_v61  ;;  %v1779_v21 = vld [vmem:[#allocation4 + $0x3b0] sm:$0xff]  ;;  %v1737_v61 = vld [vmem:[#allocation4 + $0x260] sm:$0xff]  ;;  %v4256_v56 = vld [vmem:[#allocation6 + $0x3c8] sm:$0xff] }
 0x401   :  { %v1358_v52 = vmul.f32 0.5, %v1357_v35  ;;  %1667 = vmatpush.msra.mxu2 %v1555_v58  ;;  %1648 = vmatpush.msra.mxu1 %v1550_v62  ;;  %v1780_v35 = vld [vmem:[#allocation4 + $0x3b8] sm:$0xff]  ;;  %v5495_v58 = vld [vmem:[#allocation24_spill] sm:$0xff] }
 0x402   :  { %v1362_v24 = vmul.f32 0.5, %v1361_v10  ;;  %v1775_v10 = vld [vmem:[#allocation4 + $0x390] sm:$0xff]  ;;  %v1738_v62 = vld [vmem:[#allocation4 + $0x268] sm:$0xff] }
 0x403   :  { %v3021_v38 = vpop.eup %3020  ;;  %1668 = vmatpush.msra.mxu2 %v1551_v63  ;;  %v1739_v63 = vld [vmem:[#allocation4 + $0x270] sm:$0xff] }
 0x404   :  { %v1368_v36 = vmul.f32 %v1362_v24, %v4189_v45  ;;  %v1369_v3 = vmul.f32 %v3021_v38, %v1358_v52  ;;  %v1568_v45 = vld [vmem:[#allocation6 + $0x98] sm:$0xff]  ;;  %v1770_v52 = vld [vmem:[#allocation4 + $0x368] sm:$0xff]  ;;  %v1765_v24 = vld [vmem:[#allocation4 + $0x340] sm:$0xff] }
 0x405   :  { %v3023_v37 = vpop.eup %3022  ;;  %1684 = vmatpush.msra.mxu3 %v1568_v45  ;;  %v1768_v38 = vld [vmem:[#allocation4 + $0x358] sm:$0xff]  ;;  %v1749_v45 = vld [vmem:[#allocation4 + $0x2c0] sm:$0xff] }
 0x406   :  { %v4207_v41 = vadd.f32 %v1369_v3, %v1368_v36  ;;  %v1366_v42 = vadd.f32 1.0, %v3023_v37  ;;  %v1763_v36 = vld [vmem:[#allocation4 + $0x330] sm:$0xff]  ;;  %v1764_v3 = vld [vmem:[#allocation4 + $0x338] sm:$0xff]  ;;  %v1753_v37 = vld [vmem:[#allocation4 + $0x2e0] sm:$0xff] }
 0x407   :  { %1685 = vmatpush.msra.mxu3 %v1564_v47  ;;  %v1746_v47 = vld [vmem:[#allocation4 + $0x2a8] sm:$0xff] }
 0x408   :  { %3024 = vtanh.f32 %v4207_v41  ;;  %v1367_v5 = vmul.f32 0.5, %v1366_v42  ;;  %v1752_v42 = vld [vmem:[#allocation4 + $0x2d8] sm:$0xff] }
 0x409   :  { %1686 = vmatpush.msra.mxu3 %v1560_v55  ;;  %v1744_v55 = vld [vmem:[#allocation4 + $0x298] sm:$0xff] }
 0x40b   :  { %1687 = vmatpush.msra.mxu3 %v1556_v60  ;;  %v229_v60 = vadd.f32 %v5495_v58, %v5485_v49  ;;  %v4261_v58 = vld [vmem:[#allocation6 + $0x3f8] sm:$0xff] }
 0x40d   :  { %1688 = vmatpush.msra.mxu3 %v1552_v26 }
 0x40e   :  { %v3025_v6 = vpop.eup %3024 }
 0x40f   :  { %v4210_v50 = vmul.f32 %v3025_v6, %v1367_v5  ;;  %v1747_v5 = vld [vmem:[#allocation4 + $0x2b0] sm:$0xff]  ;;  %v1748_v6 = vld [vmem:[#allocation4 + $0x2b8] sm:$0xff] }
 0x411   :  { %1458 = vmatmul.f32.vlgmr.msrb.gmra.mxu0 %v4210_v50  ;;  %1478 = vmatmul.f32.vlgmr.msrb.gmra.mxu1 %v4210_v50 }
 0x412   :  { %1498 = vmatmul.f32.vlgmr.msrb.gmra.mxu2 %v4210_v50  ;;  %1518 = vmatmul.f32.vlgmr.msrb.gmra.mxu3 %v4210_v50 }
 0x413   :  { %1800 = vmatpush.msrb.mxu0 %v1785_v7  ;;  %1841 = vmatpush.msrb.mxu1 %v1786_v39  ;;  %v1740_v39 = vld [vmem:[#allocation4 + $0x278] sm:$0xff] }
 0x414   :  { %1882 = vmatpush.msrb.mxu2 %v1787_v8  ;;  %1923 = vmatpush.msrb.mxu3 %v1788_v13  ;;  %v1733_v8 = vld [vmem:[#allocation4 + $0x240] sm:$0xff]  ;;  %v1734_v13 = vld [vmem:[#allocation4 + $0x248] sm:$0xff] }
 0x415   :  { %1801 = vmatpush.msrb.mxu0 %v1781_v1  ;;  %1842 = vmatpush.msrb.mxu1 %v1782_v17 }
 0x416   :  { %1883 = vmatpush.msrb.mxu2 %v1783_v18  ;;  %1924 = vmatpush.msrb.mxu3 %v1784_v20  ;;  %v1735_v18 = vld [vmem:[#allocation4 + $0x250] sm:$0xff]  ;;  %v1736_v20 = vld [vmem:[#allocation4 + $0x258] sm:$0xff] }
 0x417   :  { %1802 = vmatpush.msrb.mxu0 %v1777_v11  ;;  %1843 = vmatpush.msrb.mxu1 %v1778_v12  ;;  %v1729_v11 = vld [vmem:[#allocation4 + $0x220] sm:$0xff]  ;;  %v1730_v12 = vld [vmem:[#allocation4 + $0x228] sm:$0xff] }
 0x418   :  { %1884 = vmatpush.msrb.mxu2 %v1779_v21  ;;  %1925 = vmatpush.msrb.mxu3 %v1780_v35  ;;  %v1731_v21 = vld [vmem:[#allocation4 + $0x230] sm:$0xff]  ;;  %v1732_v35 = vld [vmem:[#allocation4 + $0x238] sm:$0xff] }
 0x419   :  { %1803 = vmatpush.msrb.mxu0 %v1773_v19  ;;  %1844 = vmatpush.msrb.mxu1 %v1774_v34 }
 0x41a   :  { %1885 = vmatpush.msrb.mxu2 %v1775_v10  ;;  %1926 = vmatpush.msrb.mxu3 %v1776_v15  ;;  %v1725_v10 = vld [vmem:[#allocation4 + $0x200] sm:$0xff]  ;;  %v1726_v15 = vld [vmem:[#allocation4 + $0x208] sm:$0xff] }
 0x41b   :  { %1804 = vmatpush.msrb.mxu0 %v1769_v9  ;;  %1845 = vmatpush.msrb.mxu1 %v1770_v52  ;;  %v1727_v9 = vld [vmem:[#allocation4 + $0x210] sm:$0xff]  ;;  %v1728_v52 = vld [vmem:[#allocation4 + $0x218] sm:$0xff] }
 0x41c   :  { %1886 = vmatpush.msrb.mxu2 %v1771_v16  ;;  %1927 = vmatpush.msrb.mxu3 %v1772_v23  ;;  %v5496_v16 = vld [vmem:[#allocation25_spill] sm:$0xff] }
 0x41d   :  { %1805 = vmatpush.msrb.mxu0 %v1765_v24  ;;  %1846 = vmatpush.msrb.mxu1 %v1766_v25  ;;  %v270_v23 = vadd.f32 %v5496_v16, %v5487_v59  ;;  %v5497_v24 = vld [vmem:[#allocation26_spill] sm:$0xff]  ;;  %v4359_v16 = vld [vmem:[#allocation6 + $0x2f0] sm:$0xff] }
 0x41e   :  { %1887 = vmatpush.msrb.mxu2 %v1767_v40  ;;  %1928 = vmatpush.msrb.mxu3 %v1768_v38  ;;  %v311_v25 = vadd.f32 %v5497_v24, %v5459_v22  ;;  %v4367_v24 = vld [vmem:[#allocation6 + $0x2f8] sm:$0xff] }
 0x41f   :  { %1806 = vmatpush.msrb.mxu0 %v1761_v33  ;;  %1847 = vmatpush.msrb.mxu1 %v1762_v32 }
 0x420   :  { %1888 = vmatpush.msrb.mxu2 %v1763_v36  ;;  %1929 = vmatpush.msrb.mxu3 %v1764_v3 }
 0x421   :  { %1807 = vmatpush.msrb.mxu0 %v1757_v30  ;;  %1848 = vmatpush.msrb.mxu1 %v1758_v29 }
 0x422   :  { %1889 = vmatpush.msrb.mxu2 %v1759_v28  ;;  %1930 = vmatpush.msrb.mxu3 %v1760_v27 }
 0x423   :  { %1808 = vmatpush.msrb.mxu0 %v1753_v37  ;;  %1849 = vmatpush.msrb.mxu1 %v1754_v44 }
 0x424   :  { %1890 = vmatpush.msrb.mxu2 %v1755_v2  ;;  %1931 = vmatpush.msrb.mxu3 %v1756_v0 }
 0x425   :  { %1809 = vmatpush.msrb.mxu0 %v1749_v45  ;;  %1850 = vmatpush.msrb.mxu1 %v1750_v4 }
 0x426   :  { %1891 = vmatpush.msrb.mxu2 %v1751_v31  ;;  %1932 = vmatpush.msrb.mxu3 %v1752_v42 }
 0x427   :  { %1810 = vmatpush.msrb.mxu0 %v1745_v43  ;;  %1851 = vmatpush.msrb.mxu1 %v1746_v47 }
 0x428   :  { %1892 = vmatpush.msrb.mxu2 %v1747_v5  ;;  %1933 = vmatpush.msrb.mxu3 %v1748_v6  ;;  %v5499_v5 = vld [vmem:[#allocation36_spill] sm:$0xff]  ;;  %v5500_v6 = vld [vmem:[#allocation59_spill] sm:$0xff] }
 0x429   :  { %1811 = vmatpush.msrb.mxu0 %v1741_v51  ;;  %1852 = vmatpush.msrb.mxu1 %v1742_v53  ;;  %v4246_v51 = vld [vmem:[#allocation6 + $0x3e0] sm:$0xff]  ;;  %v4248_v53 = vld [vmem:[#allocation6 + $0x3e8] sm:$0xff] }
 0x42a   :  { %1893 = vmatpush.msrb.mxu2 %v1743_v54  ;;  %1934 = vmatpush.msrb.mxu3 %v1744_v55  ;;  %v4250_v54 = vld [vmem:[#allocation6 + $0x3f0] sm:$0xff]  ;;  %v4254_v55 = vld [vmem:[#allocation6 + $0x3c0] sm:$0xff] }
 0x42b   :  { %1812 = vmatpush.msrb.mxu0 %v1737_v61  ;;  %1853 = vmatpush.msrb.mxu1 %v1738_v62  ;;  %v4265_v61 = vld [vmem:[#allocation6 + $0x3a8] sm:$0xff]  ;;  %v4269_v62 = vld [vmem:[#allocation6 + $0x3b0] sm:$0xff] }
 0x42c   :  { %1894 = vmatpush.msrb.mxu2 %v1739_v63  ;;  %1935 = vmatpush.msrb.mxu3 %v1740_v39  ;;  %v4271_v63 = vld [vmem:[#allocation6 + $0x3d8] sm:$0xff]  ;;  %v4285_v39 = vld [vmem:[#allocation6 + $0x390] sm:$0xff] }
 0x42d   :  { %1813 = vmatpush.msrb.mxu0 %v1733_v8  ;;  %1854 = vmatpush.msrb.mxu1 %v1734_v13  ;;  %v4287_v8 = vld [vmem:[#allocation6 + $0x3b8] sm:$0xff]  ;;  %v4291_v13 = vld [vmem:[#allocation6 + $0x360] sm:$0xff] }
 0x42e   :  { %1895 = vmatpush.msrb.mxu2 %v1735_v18  ;;  %1936 = vmatpush.msrb.mxu3 %v1736_v20  ;;  %v4299_v18 = vld [vmem:[#allocation6 + $0x398] sm:$0xff]  ;;  %v4303_v20 = vld [vmem:[#allocation6 + $0x340] sm:$0xff] }
 0x42f   :  { %1814 = vmatpush.msrb.mxu0 %v1729_v11  ;;  %1855 = vmatpush.msrb.mxu1 %v1730_v12  ;;  %v4305_v11 = vld [vmem:[#allocation6 + $0x348] sm:$0xff]  ;;  %v4311_v12 = vld [vmem:[#allocation6 + $0x378] sm:$0xff] }
 0x430   :  { %1896 = vmatpush.msrb.mxu2 %v1731_v21  ;;  %1937 = vmatpush.msrb.mxu3 %v1732_v35  ;;  %v4319_v21 = vld [vmem:[#allocation6 + $0x320] sm:$0xff]  ;;  %v4321_v35 = vld [vmem:[#allocation6 + $0x328] sm:$0xff] }
 0x431   :  { %1815 = vmatpush.msrb.mxu0 %v1725_v10  ;;  %1856 = vmatpush.msrb.mxu1 %v1726_v15  ;;  %v4345_v10 = vld [vmem:[#allocation6 + $0x308] sm:$0xff]  ;;  %v4347_v15 = vld [vmem:[#allocation6 + $0x310] sm:$0xff] }
 0x432   :  { %1897 = vmatpush.msrb.mxu2 %v1727_v9  ;;  %1938 = vmatpush.msrb.mxu3 %v1728_v52  ;;  %v4351_v9 = vld [vmem:[#allocation6 + $0x338] sm:$0xff]  ;;  %v4355_v52 = vld [vmem:[#allocation6 + $0x2e8] sm:$0xff] }
 0x48e   :  { %v1459_v26 = vpop.f32.mrf.mxu0  ;;  %v1479_v7 = vpop.f32.mrf.mxu1 }
 0x48f   :  { %v1522_v1 = vadd.f32 %v1459_v26, %v188_v57  ;;  %v1523_v17 = vadd.f32 %v1479_v7, %v229_v60  ;;  %v4258_v57 = vld [vmem:[#allocation6 + $0x3d0] sm:$0xff]  ;;  %v4263_v60 = vld [vmem:[#allocation6 + $0x3a0] sm:$0xff]  ;;  %v4281_v7 = vld [vmem:[#allocation6 + $0x388] sm:$0xff] }
 0x490   :  { %v4279_v26 = vld [vmem:[#allocation6 + $0x380] sm:$0xff] }
 0x491   :  { %v1526_v19 = vmul.f32 0.5, %v1522_v1  ;;  %v1530_v34 = vmul.f32 0.5, %v1523_v17  ;;  %v4293_v1 = vld [vmem:[#allocation6 + $0x368] sm:$0xff]  ;;  %v4297_v17 = vld [vmem:[#allocation6 + $0x370] sm:$0xff] }
 0x493   :  { %3026 = vtanh.f32 %v1526_v19  ;;  %v4325_v19 = vld [vmem:[#allocation6 + $0x330] sm:$0xff] }
 0x494   :  { %3028 = vtanh.f32 %v1530_v34  ;;  %v4327_v34 = vld [vmem:[#allocation6 + $0x358] sm:$0xff] }
 0x495   :  { %v1499_v40 = vpop.f32.mrf.mxu2  ;;  %v1519_v38 = vpop.f32.mrf.mxu3 }
 0x496   :  { %v1524_v33 = vadd.f32 %v1499_v40, %v270_v23  ;;  %v1525_v32 = vadd.f32 %v1519_v38, %v311_v25  ;;  %v4363_v23 = vld [vmem:[#allocation6 + $0x318] sm:$0xff]  ;;  %v4370_v25 = vld [vmem:[#allocation6 + $0x2c0] sm:$0xff]  ;;  %v4372_v40 = vld [vmem:[#allocation6 + $0x2c8] sm:$0xff] }
 0x497   :  { %v4374_v38 = vld [vmem:[#allocation6 + $0x2d0] sm:$0xff] }
 0x498   :  { %3030 = vtanh.f32 %v1524_v33  ;;  %v1535_v36 = vmul.f32 0.5, %v1525_v32  ;;  %v4378_v33 = vld [vmem:[#allocation6 + $0x2d8] sm:$0xff]  ;;  %v4381_v32 = vld [vmem:[#allocation6 + $0x2a0] sm:$0xff] }
 0x499   :  { %v3027_v3 = vpop.eup %3026 }
 0x49a   :  { %v3029_v30 = vpop.eup %3028  ;;  %v1528_v29 = vadd.f32 1.0, %v3027_v3  ;;  %3032 = vtanh.f32 %v1535_v36  ;;  %v4383_v36 = vld [vmem:[#allocation6 + $0x2a8] sm:$0xff]  ;;  %v4385_v3 = vld [vmem:[#allocation6 + $0x2b0] sm:$0xff] }
 0x49b   :  { %v1532_v28 = vadd.f32 1.0, %v3029_v30  ;;  %5501 = vst [vmem:[#allocation11_spill] sm:$0xff] %v4385_v3  ;;  %v4390_v30 = vld [vmem:[#allocation6 + $0x2b8] sm:$0xff] }
 0x49c   :  { %v1529_v27 = vmul.f32 0.5, %v1528_v29  ;;  %5502 = vst [vmem:[#allocation12_spill] sm:$0xff] %v4390_v30  ;;  %v4393_v29 = vld [vmem:[#allocation6 + $0x280] sm:$0xff] }
 0x49d   :  { %v1533_v37 = vmul.f32 0.5, %v1532_v28  ;;  %5503 = vst [vmem:[#allocation13_spill] sm:$0xff] %v4393_v29  ;;  %v4395_v28 = vld [vmem:[#allocation6 + $0x288] sm:$0xff] }
 0x49e   :  { %v3031_v44 = vpop.eup %3030  ;;  %5504 = vst [vmem:[#allocation34_spill] sm:$0xff] %v4395_v28 }
 0x49f   :  { %v1539_v2 = vmul.f32 %v1533_v37, %v4207_v41  ;;  %v1540_v0 = vmul.f32 %v3031_v44, %v1529_v27  ;;  %v5498_v41 = vld [vmem:[#allocation35_spill] sm:$0xff]  ;;  %v4397_v27 = vld [vmem:[#allocation6 + $0x290] sm:$0xff]  ;;  %v4404_v44 = vld [vmem:[#allocation6 + $0x268] sm:$0xff] }
 0x4a0   :  { %v3033_v45 = vpop.eup %3032  ;;  %5505 = vst [vmem:[#allocation14_spill] sm:$0xff] %v4397_v27  ;;  %v4402_v37 = vld [vmem:[#allocation6 + $0x260] sm:$0xff] }
 0x4a1   :  { %v4225_v4 = vadd.f32 %v1540_v0, %v1539_v2  ;;  %v1537_v31 = vadd.f32 1.0, %v3033_v45  ;;  %5506 = vst [vmem:[#allocation58_spill] sm:$0xff] %v4402_v37  ;;  %v4406_v2 = vld [vmem:[#allocation6 + $0x270] sm:$0xff]  ;;  %v4409_v0 = vld [vmem:[#allocation6 + $0x298] sm:$0xff]  ;;  %v4411_v45 = vld [vmem:[#allocation6 + $0x240] sm:$0xff] }
 0x4a2   :  { %5507 = vst [vmem:[#allocation37_spill] sm:$0xff] %v4404_v44 }
 0x4a3   :  { %3034 = vtanh.f32 %v4225_v4  ;;  %v1538_v42 = vmul.f32 0.5, %v1537_v31  ;;  %5508 = vst [vmem:[#allocation38_spill] sm:$0xff] %v4406_v2  ;;  %v4413_v31 = vld [vmem:[#allocation6 + $0x248] sm:$0xff] }
 0x4a4   :  { %5509 = vst [vmem:[#allocation39_spill] sm:$0xff] %v4409_v0 }
 0x4a5   :  { %5510 = vst [vmem:[#allocation40_spill] sm:$0xff] %v4411_v45 }
 0x4a6   :  { %5511 = vst [vmem:[#allocation41_spill] sm:$0xff] %v4413_v31 }
 0x4a9   :  { %v3035_v43 = vpop.eup %3034 }
 0x4aa   :  { %v4228_v47 = vmul.f32 %v3035_v43, %v1538_v42  ;;  %v5512_v42 = vld [vmem:[#allocation27_spill] sm:$0xff] }
 0x4ab   :  { %v191_v43 = vadd.f32 %v5512_v42, %v5483_v48  ;;  %v4429_v48 = vld [vmem:[#allocation6 + $0x228] sm:$0xff] }
 0x4ac   :  { %1629 = vmatmul.f32.vlgmr.msra.gmra.mxu0 %v4228_v47  ;;  %1649 = vmatmul.f32.vlgmr.msra.gmra.mxu1 %v4228_v47  ;;  %5517 = vst [vmem:[#allocation45_spill] sm:$0xff] %v4429_v48 }
 0x4ad   :  { %1669 = vmatmul.f32.vlgmr.msra.gmra.mxu2 %v4228_v47  ;;  %1689 = vmatmul.f32.vlgmr.msra.gmra.mxu3 %v4228_v47 }
 0x4ae   :  { %2065 = vmatpush.msra.mxu0 %v4246_v51  ;;  %2085 = vmatpush.msra.mxu1 %v4248_v53 }
 0x4af   :  { %2105 = vmatpush.msra.mxu2 %v4250_v54  ;;  %2125 = vmatpush.msra.mxu3 %v4261_v58 }
 0x4b0   :  { %2066 = vmatpush.msra.mxu0 %v4254_v55  ;;  %2086 = vmatpush.msra.mxu1 %v4256_v56 }
 0x4b1   :  { %2106 = vmatpush.msra.mxu2 %v4258_v57  ;;  %2126 = vmatpush.msra.mxu3 %v4271_v63 }
 0x4b2   :  { %2067 = vmatpush.msra.mxu0 %v4263_v60  ;;  %2087 = vmatpush.msra.mxu1 %v4265_v61 }
 0x4b3   :  { %2107 = vmatpush.msra.mxu2 %v4269_v62  ;;  %2127 = vmatpush.msra.mxu3 %v4287_v8 }
 0x4b4   :  { %1816 = vmatmul.f32.vlgmr.msrb.gmra.mxu0 %v5498_v41  ;;  %1857 = vmatmul.f32.vlgmr.msrb.gmra.mxu1 %v5498_v41 }
 0x4b5   :  { %1898 = vmatmul.f32.vlgmr.msrb.gmra.mxu2 %v5498_v41  ;;  %1939 = vmatmul.f32.vlgmr.msrb.gmra.mxu3 %v5498_v41 }
 0x4b6   :  { %2068 = vmatpush.msra.mxu0 %v4279_v26  ;;  %2088 = vmatpush.msra.mxu1 %v4281_v7 }
 0x4b7   :  { %2108 = vmatpush.msra.mxu2 %v4285_v39  ;;  %2128 = vmatpush.msra.mxu3 %v4299_v18 }
 0x4b8   :  { %2069 = vmatpush.msra.mxu0 %v4291_v13  ;;  %2089 = vmatpush.msra.mxu1 %v4293_v1 }
 0x4b9   :  { %2109 = vmatpush.msra.mxu2 %v4297_v17  ;;  %2129 = vmatpush.msra.mxu3 %v4311_v12 }
 0x4ba   :  { %2070 = vmatpush.msra.mxu0 %v4303_v20  ;;  %2090 = vmatpush.msra.mxu1 %v4305_v11 }
 0x4bb   :  { %2130 = vmatpush.msra.mxu3 %v4327_v34 }
 0x4bc   :  { %1819 = vmatmul.f32.gmra.mxu0 %v5499_v5  ;;  %1860 = vmatmul.f32.gmra.mxu1 %v5499_v5 }
 0x4bd   :  { %1901 = vmatmul.f32.gmra.mxu2 %v5499_v5  ;;  %1942 = vmatmul.f32.gmra.mxu3 %v5499_v5  ;;  %v4421_v5 = vld [vmem:[#allocation6 + $0x250] sm:$0xff] }
 0x4be   :  { %2071 = vmatpush.msra.mxu0 %v4319_v21  ;;  %2091 = vmatpush.msra.mxu1 %v4321_v35  ;;  %5514 = vst [vmem:[#allocation42_spill] sm:$0xff] %v4421_v5 }
 0x4bf   :  { %2131 = vmatpush.msra.mxu3 %v4351_v9 }
 0x4c0   :  { %2092 = vmatpush.msra.mxu1 %v4345_v10 }
 0x4c1   :  { %2132 = vmatpush.msra.mxu3 %v4363_v23 }
 0x4c2   :  { %2093 = vmatpush.msra.mxu1 %v4355_v52 }
 0x4c3   :  { %2133 = vmatpush.msra.mxu3 %v4367_v24 }
 0x4c4   :  { %1822 = vmatmul.f32.gmra.mxu0 %v5500_v6  ;;  %1863 = vmatmul.f32.gmra.mxu1 %v5500_v6 }
 0x4c5   :  { %1904 = vmatmul.f32.gmra.mxu2 %v5500_v6  ;;  %1945 = vmatmul.f32.gmra.mxu3 %v5500_v6  ;;  %v4423_v6 = vld [vmem:[#allocation6 + $0x278] sm:$0xff] }
 0x4c6   :  { %2094 = vmatpush.msra.mxu1 %v4372_v40  ;;  %2134 = vmatpush.msra.mxu3 %v4378_v33  ;;  %5515 = vst [vmem:[#allocation43_spill] sm:$0xff] %v4423_v6 }
 0x4c8   :  { %2095 = vmatpush.msra.mxu1 %v4383_v36  ;;  %2135 = vmatpush.msra.mxu3 %v4390_v30 }
 0x4ca   :  { %2096 = vmatpush.msra.mxu1 %v4395_v28  ;;  %2136 = vmatpush.msra.mxu3 %v4409_v0 }
 0x4cc   :  { %1825 = vmatmul.f32.gmra.mxu0 %v4110_v14  ;;  %1866 = vmatmul.f32.gmra.mxu1 %v4110_v14 }
 0x4cd   :  { %1907 = vmatmul.f32.gmra.mxu2 %v4110_v14  ;;  %1948 = vmatmul.f32.gmra.mxu3 %v4110_v14  ;;  %v4309_v14 = vld [vmem:[#allocation6 + $0x350] sm:$0xff] }
 0x4ce   :  { %2110 = vmatpush.msra.mxu2 %v4309_v14  ;;  %2097 = vmatpush.msra.mxu1 %v4404_v44  ;;  %v4435_v44 = vld [vmem:[#allocation6 + $0x258] sm:$0xff] }
 0x4cf   :  { %5519 = vst [vmem:[#allocation47_spill] sm:$0xff] %v4435_v44  ;;  %2137 = vmatpush.msra.mxu3 %v4423_v6 }
 0x4d0   :  { %2111 = vmatpush.msra.mxu2 %v4325_v19  ;;  %2098 = vmatpush.msra.mxu1 %v4413_v31 }
 0x4d1   :  { %2138 = vmatpush.msra.mxu3 %v4435_v44 }
 0x4d2   :  { %2112 = vmatpush.msra.mxu2 %v4347_v15  ;;  %2099 = vmatpush.msra.mxu1 %v4429_v48 }
 0x4d4   :  { %1828 = vmatmul.f32.gmra.mxu0 %v4192_v46  ;;  %1869 = vmatmul.f32.gmra.mxu1 %v4192_v46 }
 0x4d5   :  { %1910 = vmatmul.f32.gmra.mxu2 %v4192_v46  ;;  %1951 = vmatmul.f32.gmra.mxu3 %v4192_v46  ;;  %v4343_v46 = vld [vmem:[#allocation6 + $0x300] sm:$0xff] }
 0x4d6   :  { %2072 = vmatpush.msra.mxu0 %v4343_v46  ;;  %2113 = vmatpush.msra.mxu2 %v4359_v16 }
 0x4d8   :  { %2114 = vmatpush.msra.mxu2 %v4374_v38 }
 0x4da   :  { %2115 = vmatpush.msra.mxu2 %v4385_v3 }
 0x4dc   :  { %1831 = vmatmul.f32.gmra.mxu0 %v4210_v50  ;;  %1872 = vmatmul.f32.gmra.mxu1 %v4210_v50 }
 0x4dd   :  { %1913 = vmatmul.f32.gmra.mxu2 %v4210_v50  ;;  %1954 = vmatmul.f32.gmra.mxu3 %v4210_v50  ;;  %v4353_v50 = vld [vmem:[#allocation6 + $0x2e0] sm:$0xff] }
 0x4de   :  { %2073 = vmatpush.msra.mxu0 %v4353_v50  ;;  %2116 = vmatpush.msra.mxu2 %v4397_v27 }
 0x4e0   :  { %2074 = vmatpush.msra.mxu0 %v4370_v25  ;;  %2117 = vmatpush.msra.mxu2 %v4406_v2  ;;  %v4439_v2 = vld [vmem:[#allocation6 + $0x200] sm:$0xff] }
 0x4e1   :  { %5520 = vst [vmem:[#allocation48_spill] sm:$0xff] %v4439_v2 }
 0x4e2   :  { %2075 = vmatpush.msra.mxu0 %v4381_v32  ;;  %2118 = vmatpush.msra.mxu2 %v4421_v5 }
 0x4e4   :  { %1834 = vmatmul.f32.gmra.mxu0 %v4228_v47  ;;  %1875 = vmatmul.f32.gmra.mxu1 %v4228_v47 }
 0x4e5   :  { %1916 = vmatmul.f32.gmra.mxu2 %v4228_v47  ;;  %1957 = vmatmul.f32.gmra.mxu3 %v4228_v47  ;;  %v5513_v47 = vld [vmem:[#allocation28_spill] sm:$0xff] }
 0x4e6   :  { %2076 = vmatpush.msra.mxu0 %v4393_v29  ;;  %v232_v41 = vadd.f32 %v5513_v47, %v5485_v49  ;;  %v4427_v29 = vld [vmem:[#allocation6 + $0x220] sm:$0xff]  ;;  %v4433_v47 = vld [vmem:[#allocation6 + $0x230] sm:$0xff] }
 0x4e7   :  { %5516 = vst [vmem:[#allocation44_spill] sm:$0xff] %v4427_v29  ;;  %2119 = vmatpush.msra.mxu2 %v4433_v47 }
 0x4e8   :  { %2077 = vmatpush.msra.mxu0 %v4402_v37  ;;  %5518 = vst [vmem:[#allocation46_spill] sm:$0xff] %v4433_v47  ;;  %v4441_v37 = vld [vmem:[#allocation6 + $0x208] sm:$0xff] }
 0x4e9   :  { %5521 = vst [vmem:[#allocation49_spill] sm:$0xff] %v4441_v37  ;;  %2100 = vmatpush.msra.mxu1 %v4441_v37 }
 0x4ea   :  { %2078 = vmatpush.msra.mxu0 %v4411_v45 }
 0x4eb   :  { %2191 = vmatpush.msrb.mxu1 %v4248_v53 }
 0x4ec   :  { %2079 = vmatpush.msra.mxu0 %v4427_v29 }
 0x4ed   :  { %2192 = vmatpush.msrb.mxu1 %v4256_v56 }
 0x4ee   :  { %2080 = vmatpush.msra.mxu0 %v4439_v2 }
 0x4ef   :  { %2193 = vmatpush.msrb.mxu1 %v4265_v61 }
 0x4f0   :  { %2171 = vmatpush.msrb.mxu0 %v4246_v51 }
 0x4f1   :  { %2194 = vmatpush.msrb.mxu1 %v4281_v7 }
 0x4f2   :  { %2172 = vmatpush.msrb.mxu0 %v4254_v55 }
 0x4f3   :  { %2195 = vmatpush.msrb.mxu1 %v4293_v1 }
 0x4f4   :  { %2173 = vmatpush.msrb.mxu0 %v4263_v60 }
 0x4f5   :  { %2196 = vmatpush.msrb.mxu1 %v4305_v11 }
 0x4f6   :  { %2174 = vmatpush.msrb.mxu0 %v4279_v26 }
 0x4f7   :  { %2197 = vmatpush.msrb.mxu1 %v4321_v35 }
 0x4f8   :  { %2175 = vmatpush.msrb.mxu0 %v4291_v13 }
 0x4f9   :  { %2198 = vmatpush.msrb.mxu1 %v4345_v10 }
 0x4fa   :  { %2176 = vmatpush.msrb.mxu0 %v4303_v20 }
 0x4fb   :  { %2199 = vmatpush.msrb.mxu1 %v4355_v52 }
 0x4fc   :  { %2177 = vmatpush.msrb.mxu0 %v4319_v21 }
 0x4fd   :  { %2200 = vmatpush.msrb.mxu1 %v4372_v40 }
 0x4fe   :  { %2178 = vmatpush.msrb.mxu0 %v4343_v46 }
 0x4ff   :  { %2201 = vmatpush.msrb.mxu1 %v4383_v36 }
 0x500   :  { %2179 = vmatpush.msrb.mxu0 %v4353_v50 }
 0x502   :  { %2180 = vmatpush.msrb.mxu0 %v4370_v25 }
 0x504   :  { %2181 = vmatpush.msrb.mxu0 %v4381_v32 }
 0x529   :  { %v1630_v27 = vpop.f32.mrf.mxu0  ;;  %v1650_v28 = vpop.f32.mrf.mxu1 }
 0x52a   :  { %v1693_v42 = vadd.f32 %v1630_v27, %v191_v43  ;;  %v1694_v49 = vadd.f32 %v1650_v28, %v232_v41  ;;  %v4445_v28 = vld [vmem:[#allocation6 + $0x210] sm:$0xff]  ;;  %v4447_v27 = vld [vmem:[#allocation6 + $0x238] sm:$0xff]  ;;  %v5525_v41 = vld [vmem:[#allocation31_spill] sm:$0xff] }
 0x52b   :  { %5522 = vst [vmem:[#allocation50_spill] sm:$0xff] %v4445_v28  ;;  %v4453_v43 = vld [vmem:[#allocation6 + $0x218] sm:$0xff]  ;;  %2120 = vmatpush.msra.mxu2 %v4445_v28  ;;  %2139 = vmatpush.msra.mxu3 %v4447_v27 }
 0x52c   :  { %v1697_v0 = vmul.f32 0.5, %v1693_v42  ;;  %v1701_v30 = vmul.f32 0.5, %v1694_v49  ;;  %5523 = vst [vmem:[#allocation51_spill] sm:$0xff] %v4447_v27  ;;  %v273_v42 = vadd.f32 %v5525_v41, %v5487_v59  ;;  %v5526_v49 = vld [vmem:[#allocation32_spill] sm:$0xff] }
 0x52d   :  { %5524 = vst [vmem:[#allocation52_spill] sm:$0xff] %v4453_v43  ;;  %v314_v48 = vadd.f32 %v5526_v49, %v5459_v22  ;;  %2140 = vmatpush.msra.mxu3 %v4453_v43  ;;  %2211 = vmatpush.msrb.mxu2 %v4250_v54 }
 0x52e   :  { %3036 = vtanh.f32 %v1697_v0 }
 0x52f   :  { %3038 = vtanh.f32 %v1701_v30  ;;  %2231 = vmatpush.msrb.mxu3 %v4261_v58  ;;  %2212 = vmatpush.msrb.mxu2 %v4258_v57 }
 0x530   :  { %v1670_v47 = vpop.f32.mrf.mxu2  ;;  %v1690_v29 = vpop.f32.mrf.mxu3 }
 0x531   :  { %v1695_v0 = vadd.f32 %v1670_v47, %v273_v42  ;;  %v1696_v37 = vadd.f32 %v1690_v29, %v314_v48  ;;  %2232 = vmatpush.msrb.mxu3 %v4271_v63  ;;  %2213 = vmatpush.msrb.mxu2 %v4269_v62 }
 0x533   :  { %3040 = vtanh.f32 %v1695_v0  ;;  %v1706_v22 = vmul.f32 0.5, %v1696_v37  ;;  %2233 = vmatpush.msrb.mxu3 %v4287_v8  ;;  %2214 = vmatpush.msrb.mxu2 %v4285_v39 }
 0x534   :  { %v3037_v59 = vpop.eup %3036 }
 0x535   :  { %v3039_v30 = vpop.eup %3038  ;;  %v1699_v29 = vadd.f32 1.0, %v3037_v59  ;;  %3042 = vtanh.f32 %v1706_v22  ;;  %2234 = vmatpush.msrb.mxu3 %v4299_v18  ;;  %2215 = vmatpush.msrb.mxu2 %v4297_v17 }
 0x536   :  { %v1703_v48 = vadd.f32 1.0, %v3039_v30 }
 0x537   :  { %v1700_v37 = vmul.f32 0.5, %v1699_v29  ;;  %2235 = vmatpush.msrb.mxu3 %v4311_v12  ;;  %2216 = vmatpush.msrb.mxu2 %v4309_v14 }
 0x538   :  { %v1704_v47 = vmul.f32 0.5, %v1703_v48  ;;  %v5527_v48 = vld [vmem:[#allocation12_spill] sm:$0xff] }
 0x539   :  { %v3041_v41 = vpop.eup %3040  ;;  %2236 = vmatpush.msrb.mxu3 %v4327_v34  ;;  %2217 = vmatpush.msrb.mxu2 %v4325_v19 }
 0x53a   :  { %v1710_v42 = vmul.f32 %v1704_v47, %v4225_v4  ;;  %v1711_v49 = vmul.f32 %v3041_v41, %v1700_v37  ;;  %v5528_v37 = vld [vmem:[#allocation13_spill] sm:$0xff]  ;;  %v5529_v47 = vld [vmem:[#allocation34_spill] sm:$0xff] }
 0x53b   :  { %v3043_v0 = vpop.eup %3042  ;;  %2237 = vmatpush.msrb.mxu3 %v4351_v9  ;;  %2218 = vmatpush.msrb.mxu2 %v4347_v15  ;;  %v5530_v41 = vld [vmem:[#allocation14_spill] sm:$0xff] }
 0x53c   :  { %v1712_v22 = vadd.f32 %v1711_v49, %v1710_v42  ;;  %v1708_v4 = vadd.f32 1.0, %v3043_v0  ;;  %2182 = vmatpush.msrb.mxu0 %v5528_v37  ;;  %2202 = vmatpush.msrb.mxu1 %v5529_v47  ;;  %v5531_v42 = vld [vmem:[#allocation39_spill] sm:$0xff]  ;;  %v5532_v49 = vld [vmem:[#allocation58_spill] sm:$0xff]  ;;  %v5533_v0 = vld [vmem:[#allocation37_spill] sm:$0xff] }
 0x53d   :  { %2238 = vmatpush.msrb.mxu3 %v4363_v23  ;;  %2219 = vmatpush.msrb.mxu2 %v4359_v16 }
 0x53e   :  { %3044 = vtanh.f32 %v1712_v22  ;;  %v1709_v59 = vmul.f32 0.5, %v1708_v4  ;;  %2183 = vmatpush.msrb.mxu0 %v5532_v49  ;;  %2203 = vmatpush.msrb.mxu1 %v5533_v0  ;;  %v5534_v22 = vld [vmem:[#allocation38_spill] sm:$0xff]  ;;  %v5535_v4 = vmov 0.0  }
 0x53f   :  { %2239 = vmatpush.msrb.mxu3 %v4367_v24  ;;  %2220 = vmatpush.msrb.mxu2 %v4374_v38 }
 0x540   :  { %2184 = vmatpush.msrb.mxu0 %v4411_v45  ;;  %2204 = vmatpush.msrb.mxu1 %v4413_v31 }
 0x541   :  { %2240 = vmatpush.msrb.mxu3 %v4378_v33  ;;  %2221 = vmatpush.msrb.mxu2 %v4385_v3 }
 0x543   :  { %2241 = vmatpush.msrb.mxu3 %v5527_v48  ;;  %2222 = vmatpush.msrb.mxu2 %v5530_v41 }
 0x544   :  { %v3045_v30 = vpop.eup %3044 }
 0x545   :  { %v1714_v29 = vmul.f32 %v3045_v30, %v1709_v59  ;;  %2242 = vmatpush.msrb.mxu3 %v5531_v42  ;;  %2223 = vmatpush.msrb.mxu2 %v5534_v22  ;;  %v5536_v59 = vld [vmem:[#allocation44_spill] sm:$0xff]  ;;  %v5537_v30 = vld [vmem:[#allocation45_spill] sm:$0xff] }
 0x546   :  { %2185 = vmatpush.msrb.mxu0 %v5536_v59  ;;  %2205 = vmatpush.msrb.mxu1 %v5537_v30 }
 0x547   :  { %1837 = vmatmul.f32.gmra.mxu0 %v1714_v29  ;;  %1878 = vmatmul.f32.gmra.mxu1 %v1714_v29 }
 0x548   :  { %1919 = vmatmul.f32.gmra.mxu2 %v1714_v29  ;;  %1960 = vmatmul.f32.gmra.mxu3 %v1714_v29  ;;  %v5538_v29 = vld [vmem:[#allocation46_spill] sm:$0xff] }
 0x549   :  { %2243 = vmatpush.msrb.mxu3 %v4423_v6  ;;  %2224 = vmatpush.msrb.mxu2 %v4421_v5  ;;  %v5539_v5 = vld [vmem:[#allocation49_spill] sm:$0xff] }
 0x54a   :  { %2186 = vmatpush.msrb.mxu0 %v4439_v2  ;;  %2206 = vmatpush.msrb.mxu1 %v5539_v5 }
 0x54b   :  { %2244 = vmatpush.msrb.mxu3 %v4435_v44  ;;  %2225 = vmatpush.msrb.mxu2 %v5538_v29 }
 0x54d   :  { %2245 = vmatpush.msrb.mxu3 %v4447_v27  ;;  %2226 = vmatpush.msrb.mxu2 %v4445_v28 }
 0x54f   :  { %2081 = vmatmul.f32.vlgmr.msra.gmra.mxu0 %v5535_v4  ;;  %2101 = vmatmul.f32.vlgmr.msra.gmra.mxu1 %v5535_v4 }
 0x550   :  { %2121 = vmatmul.f32.vlgmr.msra.gmra.mxu2 %v5535_v4  ;;  %2141 = vmatmul.f32.vlgmr.msra.gmra.mxu3 %v5535_v4  ;;  %v5540_v4 = vld [vmem:[#allocation42_spill] sm:$0xff] }
 0x551   :  { %2246 = vmatpush.msrb.mxu3 %v4453_v43  ;;  %2277 = vmatpush.msra.mxu0 %v4246_v51 }
 0x552   :  { %2297 = vmatpush.msra.mxu1 %v4248_v53  ;;  %2317 = vmatpush.msra.mxu2 %v4250_v54 }
 0x553   :  { %2337 = vmatpush.msra.mxu3 %v4261_v58  ;;  %2278 = vmatpush.msra.mxu0 %v4254_v55 }
 0x554   :  { %2298 = vmatpush.msra.mxu1 %v4256_v56  ;;  %2318 = vmatpush.msra.mxu2 %v4258_v57 }
 0x555   :  { %2338 = vmatpush.msra.mxu3 %v4271_v63  ;;  %2279 = vmatpush.msra.mxu0 %v4263_v60 }
 0x556   :  { %2299 = vmatpush.msra.mxu1 %v4265_v61  ;;  %2319 = vmatpush.msra.mxu2 %v4269_v62 }
 0x557   :  { %2339 = vmatpush.msra.mxu3 %v4287_v8  ;;  %2280 = vmatpush.msra.mxu0 %v4279_v26 }
 0x558   :  { %2300 = vmatpush.msra.mxu1 %v4281_v7  ;;  %2320 = vmatpush.msra.mxu2 %v4285_v39 }
 0x559   :  { %2340 = vmatpush.msra.mxu3 %v4299_v18  ;;  %2281 = vmatpush.msra.mxu0 %v4291_v13 }
 0x55a   :  { %2301 = vmatpush.msra.mxu1 %v4293_v1  ;;  %2321 = vmatpush.msra.mxu2 %v4297_v17 }
 0x55b   :  { %2341 = vmatpush.msra.mxu3 %v4311_v12  ;;  %2282 = vmatpush.msra.mxu0 %v4303_v20 }
 0x55c   :  { %2302 = vmatpush.msra.mxu1 %v4305_v11  ;;  %2322 = vmatpush.msra.mxu2 %v4309_v14 }
 0x55d   :  { %2342 = vmatpush.msra.mxu3 %v4327_v34  ;;  %2283 = vmatpush.msra.mxu0 %v4319_v21 }
 0x55e   :  { %2303 = vmatpush.msra.mxu1 %v4321_v35  ;;  %2323 = vmatpush.msra.mxu2 %v4325_v19 }
 0x55f   :  { %2343 = vmatpush.msra.mxu3 %v4351_v9  ;;  %2284 = vmatpush.msra.mxu0 %v4343_v46 }
 0x560   :  { %2304 = vmatpush.msra.mxu1 %v4345_v10  ;;  %2324 = vmatpush.msra.mxu2 %v4347_v15 }
 0x561   :  { %2344 = vmatpush.msra.mxu3 %v4363_v23  ;;  %2285 = vmatpush.msra.mxu0 %v4353_v50 }
 0x562   :  { %2305 = vmatpush.msra.mxu1 %v4355_v52  ;;  %2325 = vmatpush.msra.mxu2 %v4359_v16 }
 0x563   :  { %2345 = vmatpush.msra.mxu3 %v4367_v24  ;;  %2286 = vmatpush.msra.mxu0 %v4370_v25 }
 0x564   :  { %2306 = vmatpush.msra.mxu1 %v4372_v40  ;;  %2326 = vmatpush.msra.mxu2 %v4374_v38 }
 0x565   :  { %2346 = vmatpush.msra.mxu3 %v4378_v33  ;;  %2287 = vmatpush.msra.mxu0 %v4381_v32 }
 0x566   :  { %2307 = vmatpush.msra.mxu1 %v4383_v36  ;;  %2327 = vmatpush.msra.mxu2 %v4385_v3 }
 0x567   :  { %2347 = vmatpush.msra.mxu3 %v5527_v48  ;;  %2288 = vmatpush.msra.mxu0 %v5528_v37 }
 0x568   :  { %2308 = vmatpush.msra.mxu1 %v5529_v47  ;;  %2328 = vmatpush.msra.mxu2 %v5530_v41 }
 0x569   :  { %2348 = vmatpush.msra.mxu3 %v5531_v42  ;;  %2289 = vmatpush.msra.mxu0 %v5532_v49 }
 0x56a   :  { %2309 = vmatpush.msra.mxu1 %v5533_v0  ;;  %2329 = vmatpush.msra.mxu2 %v5534_v22 }
 0x56b   :  { %2349 = vmatpush.msra.mxu3 %v4423_v6  ;;  %2290 = vmatpush.msra.mxu0 %v4411_v45  ;;  %v1899_v45 = vpop.f32.mrf.mxu2 }
 0x56c   :  { %2310 = vmatpush.msra.mxu1 %v4413_v31  ;;  %2330 = vmatpush.msra.mxu2 %v5540_v4  ;;  %v1817_v31 = vpop.f32.mrf.mxu0  ;;  %v1858_v4 = vpop.f32.mrf.mxu1 }
 0x56d   :  { %2350 = vmatpush.msra.mxu3 %v4435_v44  ;;  %2291 = vmatpush.msra.mxu0 %v5536_v59  ;;  %v1940_v44 = vpop.f32.mrf.mxu3 }
 0x56e   :  { %2311 = vmatpush.msra.mxu1 %v5537_v30  ;;  %2331 = vmatpush.msra.mxu2 %v5538_v29 }
 0x56f   :  { %2351 = vmatpush.msra.mxu3 %v4447_v27  ;;  %2292 = vmatpush.msra.mxu0 %v4439_v2 }
 0x570   :  { %2312 = vmatpush.msra.mxu1 %v5539_v5  ;;  %2332 = vmatpush.msra.mxu2 %v4445_v28 }
 0x571   :  { %2352 = vmatpush.msra.mxu3 %v4453_v43 }
 0x573   :  { %v4599_v30 = vpop.f32.mrf.mxu2 }
 0x574   :  { %v4595_v6 = vpop.f32.mrf.mxu0  ;;  %v4597_v59 = vpop.f32.mrf.mxu1  ;;  %5543 = vst [vmem:[#allocation55_spill] sm:$0xff] %v4599_v30 }
 0x575   :  { %5541 = vst [vmem:[#allocation53_spill] sm:$0xff] %v4595_v6  ;;  %v4601_v29 = vpop.f32.mrf.mxu3 }
 0x576   :  { %5542 = vst [vmem:[#allocation54_spill] sm:$0xff] %v4597_v59 }
 0x577   :  { %5544 = vst [vmem:[#allocation56_spill] sm:$0xff] %v4601_v29 }
 0x57b   :  { %v4607_v5 = vpop.f32.mrf.mxu2 }
 0x57c   :  { %v4603_v27 = vpop.f32.mrf.mxu0  ;;  %v4605_v2 = vpop.f32.mrf.mxu1  ;;  %5547 = vst [vmem:[#allocation15_spill] sm:$0xff] %v4607_v5 }
 0x57d   :  { %5545 = vst [vmem:[#allocation57_spill] sm:$0xff] %v4603_v27  ;;  %v4609_v28 = vpop.f32.mrf.mxu3 }
 0x57e   :  { %5546 = vst [vmem:[#allocation29_spill] sm:$0xff] %v4605_v2 }
 0x57f   :  { %5548 = vst [vmem:[#allocation30_spill] sm:$0xff] %v4609_v28 }
 0x583   :  { %v4615_v0 = vpop.f32.mrf.mxu2 }
 0x584   :  { %v4611_v43 = vpop.f32.mrf.mxu0  ;;  %v4613_v22 = vpop.f32.mrf.mxu1  ;;  %5551 = vst [vmem:[#allocation17_spill] sm:$0xff] %v4615_v0 }
 0x585   :  { %5549 = vst [vmem:[#allocation16_spill] sm:$0xff] %v4611_v43  ;;  %v4617_v6 = vpop.f32.mrf.mxu3 }
 0x586   :  { %5550 = vst [vmem:[#allocation33_spill] sm:$0xff] %v4613_v22 }
 0x587   :  { %5552 = vst [vmem:[#allocation18_spill] sm:$0xff] %v4617_v6 }
 0x58b   :  { %v4623_v29 = vpop.f32.mrf.mxu2 }
 0x58c   :  { %v4619_v59 = vpop.f32.mrf.mxu0  ;;  %v4621_v30 = vpop.f32.mrf.mxu1  ;;  %5555 = vst [vmem:[#allocation21_spill] sm:$0xff] %v4623_v29 }
 0x58d   :  { %5553 = vst [vmem:[#allocation19_spill] sm:$0xff] %v4619_v59  ;;  %v4625_v27 = vpop.f32.mrf.mxu3 }
 0x58e   :  { %5554 = vst [vmem:[#allocation20_spill] sm:$0xff] %v4621_v30 }
 0x58f   :  { %5556 = vst [vmem:[#allocation22_spill] sm:$0xff] %v4625_v27  ;;  %v2956_v27 = vld [vmem:[%s5203_s3 + $0x4] sm:$0xf] }
 0x590   :  { %v4660_v41 = vperm.slane %v2956_v27, 2 }
 0x592   :  { %5571 = vst [vmem:[#allocation63_spill] sm:$0xff] %v4660_v41  ;;  %v1900_v37 = vadd.f32 %v1899_v45, %v4660_v41 }
 0x593   :  { %v4631_v28 = vpop.f32.mrf.mxu2 }
 0x594   :  { %v4627_v2 = vpop.f32.mrf.mxu0  ;;  %v4629_v5 = vpop.f32.mrf.mxu1  ;;  %5559 = vst [vmem:[#allocation25_spill] sm:$0xff] %v4631_v28  ;;  %v4652_v28 = vperm.slane %v2956_v27, 1 }
 0x595   :  { %5557 = vst [vmem:[#allocation23_spill] sm:$0xff] %v4627_v2  ;;  %v4633_v43 = vpop.f32.mrf.mxu3 }
 0x596   :  { %5558 = vst [vmem:[#allocation24_spill] sm:$0xff] %v4629_v5  ;;  %v4650_v5 = vperm.slane %v2956_v27, 0 }
 0x597   :  { %5560 = vst [vmem:[#allocation26_spill] sm:$0xff] %v4633_v43 }
 0x598   :  { %5567 = vst [vmem:[#allocation32_spill] sm:$0xff] %v4650_v5 }
 0x599   :  { %5568 = vst [vmem:[#allocation60_spill] sm:$0xff] %v4652_v28 }
 0x59b   :  { %v4639_v6 = vpop.f32.mrf.mxu2 }
 0x59c   :  { %v4635_v22 = vpop.f32.mrf.mxu0  ;;  %v4637_v0 = vpop.f32.mrf.mxu1  ;;  %5563 = vst [vmem:[#allocation59_spill] sm:$0xff] %v4639_v6 }
 0x59d   :  { %5561 = vst [vmem:[#allocation35_spill] sm:$0xff] %v4635_v22  ;;  %v4641_v59 = vpop.f32.mrf.mxu3  ;;  %v1818_v22 = vadd.f32 %v1817_v31, %v4650_v5 }
 0x59e   :  { %5562 = vst [vmem:[#allocation36_spill] sm:$0xff] %v4637_v0  ;;  %v1859_v0 = vadd.f32 %v1858_v4, %v4652_v28 }
 0x59f   :  { %5564 = vst [vmem:[#allocation27_spill] sm:$0xff] %v4641_v59 }
 0x5c4   :  { %v4646_v29 = vpop.f32.mrf.mxu0  ;;  %v4648_v2 = vpop.f32.mrf.mxu1 }
 0x5c5   :  { %5565 = vst [vmem:[#allocation28_spill] sm:$0xff] %v4646_v29  ;;  %v4662_v29 = vperm.slane %v2956_v27, 3 }
 0x5c6   :  { %5566 = vst [vmem:[#allocation31_spill] sm:$0xff] %v4648_v2 }
 0x5c7   :  { %v1941_v31 = vadd.f32 %v1940_v44, %v4662_v29 }
 0x5cb   :  { %v4656_v43 = vpop.f32.mrf.mxu2  ;;  %v4658_v6 = vpop.f32.mrf.mxu3 }
 0x5cc   :  { %5569 = vst [vmem:[#allocation61_spill] sm:$0xff] %v4656_v43  ;;  %v2082_v59 = vpop.f32.mrf.mxu0  ;;  %v2102_v30 = vpop.f32.mrf.mxu1 }
 0x5cd   :  { %5570 = vst [vmem:[#allocation62_spill] sm:$0xff] %v4658_v6  ;;  %v2145_v49 = vadd.f32 %v2082_v59, %v1818_v22  ;;  %v2146_v42 = vadd.f32 %v2102_v30, %v1859_v0 }
 0x5cf   :  { %v2149_v2 = vmul.f32 0.5, %v2145_v49  ;;  %v2153_v47 = vmul.f32 0.5, %v2146_v42 }
 0x5d1   :  { %3046 = vtanh.f32 %v2149_v2 }
 0x5d2   :  { %3048 = vtanh.f32 %v2153_v47  ;;  %v5575_v47 = vld [vmem:[#allocation14_spill] sm:$0xff] }
 0x5d3   :  { %v2122_v4 = vpop.f32.mrf.mxu2  ;;  %v2142_v43 = vpop.f32.mrf.mxu3 }
 0x5d4   :  { %v2147_v28 = vadd.f32 %v2122_v4, %v1900_v37  ;;  %v2148_v6 = vadd.f32 %v2142_v43, %v1941_v31  ;;  %v5576_v31 = vld [vmem:[#allocation39_spill] sm:$0xff]  ;;  %v5577_v4 = vld [vmem:[#allocation58_spill] sm:$0xff] }
 0x5d6   :  { %3050 = vtanh.f32 %v2147_v28  ;;  %v2158_v5 = vmul.f32 0.5, %v2148_v6  ;;  %v5573_v6 = vld [vmem:[#allocation13_spill] sm:$0xff] }
 0x5d7   :  { %v3047_v22 = vpop.eup %3046 }
 0x5d8   :  { %v3049_v0 = vpop.eup %3048  ;;  %v2151_v59 = vadd.f32 1.0, %v3047_v22  ;;  %3052 = vtanh.f32 %v2158_v5  ;;  %v5572_v5 = vld [vmem:[#allocation12_spill] sm:$0xff]  ;;  %v5578_v22 = vld [vmem:[#allocation37_spill] sm:$0xff] }
 0x5d9   :  { %v2155_v30 = vadd.f32 1.0, %v3049_v0  ;;  %v5579_v0 = vld [vmem:[#allocation38_spill] sm:$0xff] }
 0x5da   :  { %v2152_v27 = vmul.f32 0.5, %v2151_v59  ;;  %v5580_v59 = vld [vmem:[#allocation43_spill] sm:$0xff] }
 0x5db   :  { %v2156_v49 = vmul.f32 0.5, %v2155_v30  ;;  %v5581_v30 = vld [vmem:[#allocation40_spill] sm:$0xff] }
 0x5dc   :  { %v3051_v42 = vpop.eup %3050 }
 0x5dd   :  { %v2162_v2 = vmul.f32 0.0, %v2156_v49  ;;  %v2163_v48 = vmul.f32 %v3051_v42, %v2152_v27  ;;  %v5582_v27 = vld [vmem:[#allocation41_spill] sm:$0xff]  ;;  %v5583_v49 = vld [vmem:[#allocation42_spill] sm:$0xff]  ;;  %v5584_v42 = vld [vmem:[#allocation47_spill] sm:$0xff] }
 0x5de   :  { %v3053_v45 = vpop.eup %3052 }
 0x5df   :  { %v4666_v41 = vadd.f32 %v2163_v48, %v2162_v2  ;;  %v2160_v44 = vadd.f32 1.0, %v3053_v45  ;;  %v5574_v48 = vld [vmem:[#allocation34_spill] sm:$0xff]  ;;  %v5585_v2 = vld [vmem:[#allocation44_spill] sm:$0xff]  ;;  %v5586_v45 = vld [vmem:[#allocation45_spill] sm:$0xff] }
 0x5e1   :  { %3054 = vtanh.f32 %v4666_v41  ;;  %v2161_v37 = vmul.f32 0.5, %v2160_v44  ;;  %v5587_v44 = vld [vmem:[#allocation46_spill] sm:$0xff] }
 0x5e7   :  { %v3055_v43 = vpop.eup %3054 }
 0x5e8   :  { %v2166_v28 = vmul.f32 %v3055_v43, %v2161_v37  ;;  %v5588_v37 = vld [vmem:[#allocation51_spill] sm:$0xff]  ;;  %v5589_v43 = vld [vmem:[#allocation48_spill] sm:$0xff] }
 0x5ea   :  { %2187 = vmatmul.f32.vlgmr.msrb.gmra.mxu0 %v2166_v28  ;;  %2207 = vmatmul.f32.vlgmr.msrb.gmra.mxu1 %v2166_v28 }
 0x5eb   :  { %2227 = vmatmul.f32.vlgmr.msrb.gmra.mxu2 %v2166_v28  ;;  %2247 = vmatmul.f32.vlgmr.msrb.gmra.mxu3 %v2166_v28  ;;  %v5590_v28 = vld [vmem:[#allocation49_spill] sm:$0xff] }
 0x5ec   :  { %2383 = vmatpush.msrb.mxu0 %v4246_v51  ;;  %2403 = vmatpush.msrb.mxu1 %v4248_v53 }
 0x5ed   :  { %2423 = vmatpush.msrb.mxu2 %v4250_v54  ;;  %2443 = vmatpush.msrb.mxu3 %v4261_v58 }
 0x5ee   :  { %2384 = vmatpush.msrb.mxu0 %v4254_v55  ;;  %2404 = vmatpush.msrb.mxu1 %v4256_v56 }
 0x5ef   :  { %2424 = vmatpush.msrb.mxu2 %v4258_v57  ;;  %2444 = vmatpush.msrb.mxu3 %v4271_v63 }
 0x5f0   :  { %2385 = vmatpush.msrb.mxu0 %v4263_v60  ;;  %2405 = vmatpush.msrb.mxu1 %v4265_v61 }
 0x5f1   :  { %2425 = vmatpush.msrb.mxu2 %v4269_v62  ;;  %2445 = vmatpush.msrb.mxu3 %v4287_v8 }
 0x5f2   :  { %2386 = vmatpush.msrb.mxu0 %v4279_v26  ;;  %2406 = vmatpush.msrb.mxu1 %v4281_v7 }
 0x5f3   :  { %2426 = vmatpush.msrb.mxu2 %v4285_v39  ;;  %2446 = vmatpush.msrb.mxu3 %v4299_v18 }
 0x5f4   :  { %2387 = vmatpush.msrb.mxu0 %v4291_v13  ;;  %2407 = vmatpush.msrb.mxu1 %v4293_v1 }
 0x5f5   :  { %2427 = vmatpush.msrb.mxu2 %v4297_v17  ;;  %2447 = vmatpush.msrb.mxu3 %v4311_v12 }
 0x5f6   :  { %2388 = vmatpush.msrb.mxu0 %v4303_v20  ;;  %2408 = vmatpush.msrb.mxu1 %v4305_v11 }
 0x5f7   :  { %2428 = vmatpush.msrb.mxu2 %v4309_v14  ;;  %2448 = vmatpush.msrb.mxu3 %v4327_v34 }
 0x5f8   :  { %2389 = vmatpush.msrb.mxu0 %v4319_v21  ;;  %2409 = vmatpush.msrb.mxu1 %v4321_v35 }
 0x5f9   :  { %2429 = vmatpush.msrb.mxu2 %v4325_v19  ;;  %2449 = vmatpush.msrb.mxu3 %v4351_v9 }
 0x5fa   :  { %2390 = vmatpush.msrb.mxu0 %v4343_v46  ;;  %2410 = vmatpush.msrb.mxu1 %v4345_v10 }
 0x5fb   :  { %2430 = vmatpush.msrb.mxu2 %v4347_v15  ;;  %2450 = vmatpush.msrb.mxu3 %v4363_v23 }
 0x5fc   :  { %2391 = vmatpush.msrb.mxu0 %v4353_v50  ;;  %2411 = vmatpush.msrb.mxu1 %v4355_v52 }
 0x5fd   :  { %2431 = vmatpush.msrb.mxu2 %v4359_v16  ;;  %2451 = vmatpush.msrb.mxu3 %v4367_v24 }
 0x5fe   :  { %2392 = vmatpush.msrb.mxu0 %v4370_v25  ;;  %2412 = vmatpush.msrb.mxu1 %v4372_v40 }
 0x5ff   :  { %2432 = vmatpush.msrb.mxu2 %v4374_v38  ;;  %2452 = vmatpush.msrb.mxu3 %v4378_v33 }
 0x600   :  { %2393 = vmatpush.msrb.mxu0 %v4381_v32  ;;  %2413 = vmatpush.msrb.mxu1 %v4383_v36 }
 0x601   :  { %2433 = vmatpush.msrb.mxu2 %v4385_v3  ;;  %2453 = vmatpush.msrb.mxu3 %v5572_v5 }
 0x602   :  { %2394 = vmatpush.msrb.mxu0 %v5573_v6  ;;  %2414 = vmatpush.msrb.mxu1 %v5574_v48  ;;  %v5598_v48 = vld [vmem:[#allocation55_spill] sm:$0xff] }
 0x603   :  { %2434 = vmatpush.msrb.mxu2 %v5575_v47  ;;  %2454 = vmatpush.msrb.mxu3 %v5576_v31 }
 0x604   :  { %2395 = vmatpush.msrb.mxu0 %v5577_v4  ;;  %2415 = vmatpush.msrb.mxu1 %v5578_v22  ;;  %v5596_v22 = vld [vmem:[#allocation54_spill] sm:$0xff] }
 0x605   :  { %2435 = vmatpush.msrb.mxu2 %v5579_v0  ;;  %2455 = vmatpush.msrb.mxu3 %v5580_v59  ;;  %v5591_v59 = vld [vmem:[#allocation50_spill] sm:$0xff] }
 0x606   :  { %2396 = vmatpush.msrb.mxu0 %v5581_v30  ;;  %2416 = vmatpush.msrb.mxu1 %v5582_v27  ;;  %v5592_v30 = vld [vmem:[#allocation52_spill] sm:$0xff] }
 0x607   :  { %2436 = vmatpush.msrb.mxu2 %v5583_v49  ;;  %2456 = vmatpush.msrb.mxu3 %v5584_v42  ;;  %v5593_v27 = vld [vmem:[#allocation32_spill] sm:$0xff]  ;;  %v5594_v49 = vld [vmem:[#allocation53_spill] sm:$0xff] }
 0x608   :  { %2397 = vmatpush.msrb.mxu0 %v5585_v2  ;;  %2417 = vmatpush.msrb.mxu1 %v5586_v45  ;;  %v1821_v0 = vadd.f32 %v5594_v49, %v5593_v27  ;;  %v5595_v42 = vld [vmem:[#allocation60_spill] sm:$0xff] }
 0x609   :  { %2437 = vmatpush.msrb.mxu2 %v5587_v44  ;;  %2457 = vmatpush.msrb.mxu3 %v5588_v37  ;;  %v1862_v2 = vadd.f32 %v5596_v22, %v5595_v42 }
 0x60a   :  { %2398 = vmatpush.msrb.mxu0 %v5589_v43  ;;  %2418 = vmatpush.msrb.mxu1 %v5590_v28  ;;  %v5597_v43 = vld [vmem:[#allocation63_spill] sm:$0xff] }
 0x60b   :  { %2438 = vmatpush.msrb.mxu2 %v5591_v59  ;;  %2458 = vmatpush.msrb.mxu3 %v5592_v30  ;;  %v1903_v28 = vadd.f32 %v5598_v48, %v5597_v43  ;;  %v5599_v59 = vld [vmem:[#allocation56_spill] sm:$0xff] }
 0x60c   :  { %v1944_v6 = vadd.f32 %v5599_v59, %v4662_v29 }
 0x667   :  { %v2188_v4 = vpop.f32.mrf.mxu0  ;;  %v2208_v45 = vpop.f32.mrf.mxu1 }
 0x668   :  { %v2251_v31 = vadd.f32 %v2188_v4, %v1821_v0  ;;  %v2252_v44 = vadd.f32 %v2208_v45, %v1862_v2 }
 0x66a   :  { %v2255_v47 = vmul.f32 0.5, %v2251_v31  ;;  %v2259_v37 = vmul.f32 0.5, %v2252_v44 }
 0x66c   :  { %3056 = vtanh.f32 %v2255_v47 }
 0x66d   :  { %3058 = vtanh.f32 %v2259_v37 }
 0x66e   :  { %v2228_v30 = vpop.f32.mrf.mxu2  ;;  %v2248_v5 = vpop.f32.mrf.mxu3 }
 0x66f   :  { %v2253_v49 = vadd.f32 %v2228_v30, %v1903_v28  ;;  %v2254_v27 = vadd.f32 %v2248_v5, %v1944_v6 }
 0x671   :  { %3060 = vtanh.f32 %v2253_v49  ;;  %v2264_v22 = vmul.f32 0.5, %v2254_v27 }
 0x672   :  { %v3057_v42 = vpop.eup %3056 }
 0x673   :  { %v3059_v3 = vpop.eup %3058  ;;  %v2257_v4 = vadd.f32 1.0, %v3057_v42  ;;  %3062 = vtanh.f32 %v2264_v22 }
 0x674   :  { %v2261_v0 = vadd.f32 1.0, %v3059_v3 }
 0x675   :  { %v2258_v31 = vmul.f32 0.5, %v2257_v4 }
 0x676   :  { %v2262_v47 = vmul.f32 0.5, %v2261_v0 }
 0x677   :  { %v3061_v2 = vpop.eup %3060 }
 0x678   :  { %v2268_v48 = vmul.f32 %v2262_v47, %v4666_v41  ;;  %v2269_v45 = vmul.f32 %v3061_v2, %v2258_v31 }
 0x679   :  { %v3063_v44 = vpop.eup %3062 }
 0x67a   :  { %v4742_v59 = vadd.f32 %v2269_v45, %v2268_v48  ;;  %v2266_v30 = vadd.f32 1.0, %v3063_v44 }
 0x67c   :  { %3064 = vtanh.f32 %v4742_v59  ;;  %v2267_v5 = vmul.f32 0.5, %v2266_v30 }
 0x682   :  { %v3065_v6 = vpop.eup %3064 }
 0x683   :  { %v2272_v27 = vmul.f32 %v3065_v6, %v2267_v5  ;;  %v4821_v5 = vld [vmem:[#allocation6 + $0x3e0] sm:$0xff]  ;;  %v4824_v6 = vld [vmem:[#allocation6 + $0x3e8] sm:$0xff] }
 0x685   :  { %2293 = vmatmul.f32.vlgmr.msra.gmra.mxu0 %v2272_v27  ;;  %2313 = vmatmul.f32.vlgmr.msra.gmra.mxu1 %v2272_v27 }
 0x686   :  { %2333 = vmatmul.f32.vlgmr.msra.gmra.mxu2 %v2272_v27  ;;  %2353 = vmatmul.f32.vlgmr.msra.gmra.mxu3 %v2272_v27  ;;  %v4830_v27 = vld [vmem:[#allocation6 + $0x3f8] sm:$0xff] }
 0x687   :  { %2489 = vmatpush.msra.mxu0 %v4246_v51  ;;  %2509 = vmatpush.msra.mxu1 %v4248_v53  ;;  %v5600_v51 = vld [vmem:[#allocation11_spill] sm:$0xff]  ;;  %v5601_v53 = vld [vmem:[#allocation12_spill] sm:$0xff] }
 0x688   :  { %2529 = vmatpush.msra.mxu2 %v4250_v54  ;;  %2549 = vmatpush.msra.mxu3 %v4261_v58  ;;  %v5602_v54 = vld [vmem:[#allocation13_spill] sm:$0xff]  ;;  %v5606_v58 = vld [vmem:[#allocation58_spill] sm:$0xff] }
 0x689   :  { %2490 = vmatpush.msra.mxu0 %v4254_v55  ;;  %2510 = vmatpush.msra.mxu1 %v4256_v56  ;;  %v5603_v55 = vld [vmem:[#allocation34_spill] sm:$0xff] }
 0x68a   :  { %2530 = vmatpush.msra.mxu2 %v4258_v57  ;;  %2550 = vmatpush.msra.mxu3 %v4271_v63  ;;  %v5604_v56 = vld [vmem:[#allocation14_spill] sm:$0xff]  ;;  %v5605_v57 = vld [vmem:[#allocation39_spill] sm:$0xff]  ;;  %v5610_v63 = vld [vmem:[#allocation40_spill] sm:$0xff] }
 0x68b   :  { %2491 = vmatpush.msra.mxu0 %v4263_v60  ;;  %2511 = vmatpush.msra.mxu1 %v4265_v61  ;;  %v5607_v60 = vld [vmem:[#allocation37_spill] sm:$0xff]  ;;  %v5608_v61 = vld [vmem:[#allocation38_spill] sm:$0xff] }
 0x68c   :  { %2531 = vmatpush.msra.mxu2 %v4269_v62  ;;  %2551 = vmatpush.msra.mxu3 %v4287_v8  ;;  %v5609_v62 = vld [vmem:[#allocation43_spill] sm:$0xff]  ;;  %v5614_v8 = vld [vmem:[#allocation44_spill] sm:$0xff] }
 0x68d   :  { %2492 = vmatpush.msra.mxu0 %v4279_v26  ;;  %2512 = vmatpush.msra.mxu1 %v4281_v7  ;;  %v5611_v26 = vld [vmem:[#allocation41_spill] sm:$0xff]  ;;  %v5612_v7 = vld [vmem:[#allocation42_spill] sm:$0xff] }
 0x68e   :  { %2532 = vmatpush.msra.mxu2 %v4285_v39  ;;  %2552 = vmatpush.msra.mxu3 %v4299_v18  ;;  %v5613_v39 = vld [vmem:[#allocation47_spill] sm:$0xff]  ;;  %v5618_v18 = vld [vmem:[#allocation48_spill] sm:$0xff] }
 0x68f   :  { %2493 = vmatpush.msra.mxu0 %v4291_v13  ;;  %2513 = vmatpush.msra.mxu1 %v4293_v1  ;;  %v5615_v13 = vld [vmem:[#allocation45_spill] sm:$0xff]  ;;  %v5616_v1 = vld [vmem:[#allocation46_spill] sm:$0xff] }
 0x690   :  { %2533 = vmatpush.msra.mxu2 %v4297_v17  ;;  %2553 = vmatpush.msra.mxu3 %v4311_v12  ;;  %v5617_v17 = vld [vmem:[#allocation51_spill] sm:$0xff]  ;;  %v5622_v12 = vld [vmem:[#allocation32_spill] sm:$0xff] }
 0x691   :  { %2494 = vmatpush.msra.mxu0 %v4303_v20  ;;  %2514 = vmatpush.msra.mxu1 %v4305_v11  ;;  %v5619_v20 = vld [vmem:[#allocation49_spill] sm:$0xff]  ;;  %v5620_v11 = vld [vmem:[#allocation50_spill] sm:$0xff] }
 0x692   :  { %2534 = vmatpush.msra.mxu2 %v4309_v14  ;;  %2554 = vmatpush.msra.mxu3 %v4327_v34  ;;  %v5621_v14 = vld [vmem:[#allocation52_spill] sm:$0xff]  ;;  %v5625_v34 = vld [vmem:[#allocation29_spill] sm:$0xff] }
 0x693   :  { %2495 = vmatpush.msra.mxu0 %v4319_v21  ;;  %2515 = vmatpush.msra.mxu1 %v4321_v35  ;;  %v5623_v21 = vld [vmem:[#allocation57_spill] sm:$0xff] }
 0x694   :  { %2535 = vmatpush.msra.mxu2 %v4325_v19  ;;  %2555 = vmatpush.msra.mxu3 %v4351_v9  ;;  %v1824_v35 = vadd.f32 %v5623_v21, %v5622_v12  ;;  %v5624_v19 = vld [vmem:[#allocation60_spill] sm:$0xff] }
 0x695   :  { %2496 = vmatpush.msra.mxu0 %v4343_v46  ;;  %2516 = vmatpush.msra.mxu1 %v4345_v10  ;;  %v1865_v46 = vadd.f32 %v5625_v34, %v5624_v19  ;;  %v4896_v21 = vld [vmem:[#allocation6 + $0x328] sm:$0xff]  ;;  %v4902_v34 = vld [vmem:[#allocation6 + $0x338] sm:$0xff] }
 0x696   :  { %2536 = vmatpush.msra.mxu2 %v4347_v15  ;;  %2556 = vmatpush.msra.mxu3 %v4363_v23  ;;  %v5626_v23 = vld [vmem:[#allocation15_spill] sm:$0xff] }
 0x697   :  { %2497 = vmatpush.msra.mxu0 %v4353_v50  ;;  %2517 = vmatpush.msra.mxu1 %v4355_v52 }
 0x698   :  { %2537 = vmatpush.msra.mxu2 %v4359_v16  ;;  %2557 = vmatpush.msra.mxu3 %v4367_v24  ;;  %v1906_v24 = vadd.f32 %v5626_v23, %v5597_v43  ;;  %v4926_v23 = vld [vmem:[#allocation6 + $0x2f8] sm:$0xff] }
 0x699   :  { %2498 = vmatpush.msra.mxu0 %v4370_v25  ;;  %2518 = vmatpush.msra.mxu1 %v4372_v40  ;;  %v5627_v25 = vld [vmem:[#allocation30_spill] sm:$0xff] }
 0x69a   :  { %2538 = vmatpush.msra.mxu2 %v4374_v38  ;;  %2558 = vmatpush.msra.mxu3 %v4378_v33  ;;  %v1947_v40 = vadd.f32 %v5627_v25, %v4662_v29  ;;  %v4932_v25 = vld [vmem:[#allocation6 + $0x2c8] sm:$0xff] }
 0x69b   :  { %2499 = vmatpush.msra.mxu0 %v4381_v32  ;;  %2519 = vmatpush.msra.mxu1 %v4383_v36 }
 0x69c   :  { %2539 = vmatpush.msra.mxu2 %v5600_v51  ;;  %2559 = vmatpush.msra.mxu3 %v5601_v53  ;;  %v4833_v51 = vld [vmem:[#allocation6 + $0x3c0] sm:$0xff]  ;;  %v4836_v53 = vld [vmem:[#allocation6 + $0x3c8] sm:$0xff] }
 0x69d   :  { %2500 = vmatpush.msra.mxu0 %v5602_v54  ;;  %2520 = vmatpush.msra.mxu1 %v5603_v55  ;;  %v4839_v54 = vld [vmem:[#allocation6 + $0x3d0] sm:$0xff]  ;;  %v4842_v55 = vld [vmem:[#allocation6 + $0x3d8] sm:$0xff] }
 0x69e   :  { %2540 = vmatpush.msra.mxu2 %v5604_v56  ;;  %2560 = vmatpush.msra.mxu3 %v5605_v57  ;;  %v4845_v56 = vld [vmem:[#allocation6 + $0x3a0] sm:$0xff]  ;;  %v4848_v57 = vld [vmem:[#allocation6 + $0x3a8] sm:$0xff] }
 0x69f   :  { %2501 = vmatpush.msra.mxu0 %v5606_v58  ;;  %2521 = vmatpush.msra.mxu1 %v5607_v60  ;;  %v4851_v58 = vld [vmem:[#allocation6 + $0x3b0] sm:$0xff]  ;;  %v4854_v60 = vld [vmem:[#allocation6 + $0x3b8] sm:$0xff] }
 0x6a0   :  { %2541 = vmatpush.msra.mxu2 %v5608_v61  ;;  %2561 = vmatpush.msra.mxu3 %v5609_v62  ;;  %v4857_v61 = vld [vmem:[#allocation6 + $0x380] sm:$0xff]  ;;  %v4860_v62 = vld [vmem:[#allocation6 + $0x388] sm:$0xff] }
 0x6a1   :  { %2502 = vmatpush.msra.mxu0 %v5610_v63  ;;  %2522 = vmatpush.msra.mxu1 %v5611_v26  ;;  %v4863_v63 = vld [vmem:[#allocation6 + $0x390] sm:$0xff]  ;;  %v4866_v26 = vld [vmem:[#allocation6 + $0x398] sm:$0xff] }
 0x6a2   :  { %2542 = vmatpush.msra.mxu2 %v5612_v7  ;;  %2562 = vmatpush.msra.mxu3 %v5613_v39  ;;  %v4869_v7 = vld [vmem:[#allocation6 + $0x360] sm:$0xff]  ;;  %v4872_v39 = vld [vmem:[#allocation6 + $0x368] sm:$0xff] }
 0x6a3   :  { %2503 = vmatpush.msra.mxu0 %v5614_v8  ;;  %2523 = vmatpush.msra.mxu1 %v5615_v13  ;;  %v4875_v8 = vld [vmem:[#allocation6 + $0x370] sm:$0xff]  ;;  %v4878_v13 = vld [vmem:[#allocation6 + $0x378] sm:$0xff] }
 0x6a4   :  { %2543 = vmatpush.msra.mxu2 %v5616_v1  ;;  %2563 = vmatpush.msra.mxu3 %v5617_v17  ;;  %v4881_v1 = vld [vmem:[#allocation6 + $0x340] sm:$0xff]  ;;  %v4884_v17 = vld [vmem:[#allocation6 + $0x348] sm:$0xff] }
 0x6a5   :  { %2504 = vmatpush.msra.mxu0 %v5618_v18  ;;  %2524 = vmatpush.msra.mxu1 %v5619_v20  ;;  %v4887_v18 = vld [vmem:[#allocation6 + $0x350] sm:$0xff]  ;;  %v4890_v20 = vld [vmem:[#allocation6 + $0x358] sm:$0xff] }
 0x6a6   :  { %2544 = vmatpush.msra.mxu2 %v5620_v11  ;;  %2564 = vmatpush.msra.mxu3 %v5621_v14  ;;  %v4893_v11 = vld [vmem:[#allocation6 + $0x320] sm:$0xff] }
 0x702   :  { %v2294_v10 = vpop.f32.mrf.mxu0  ;;  %v2314_v15 = vpop.f32.mrf.mxu1 }
 0x703   :  { %v2357_v9 = vadd.f32 %v2294_v10, %v1824_v35  ;;  %v2358_v50 = vadd.f32 %v2314_v15, %v1865_v46  ;;  %v4899_v35 = vld [vmem:[#allocation6 + $0x330] sm:$0xff]  ;;  %v4905_v46 = vld [vmem:[#allocation6 + $0x300] sm:$0xff]  ;;  %v4908_v10 = vld [vmem:[#allocation6 + $0x308] sm:$0xff] }
 0x704   :  { %v4911_v15 = vld [vmem:[#allocation6 + $0x310] sm:$0xff] }
 0x705   :  { %v2361_v52 = vmul.f32 0.5, %v2357_v9  ;;  %v2365_v16 = vmul.f32 0.5, %v2358_v50  ;;  %v4914_v9 = vld [vmem:[#allocation6 + $0x318] sm:$0xff]  ;;  %v4917_v50 = vld [vmem:[#allocation6 + $0x2e0] sm:$0xff] }
 0x707   :  { %3066 = vtanh.f32 %v2361_v52  ;;  %v4920_v52 = vld [vmem:[#allocation6 + $0x2e8] sm:$0xff] }
 0x708   :  { %3068 = vtanh.f32 %v2365_v16  ;;  %v4923_v16 = vld [vmem:[#allocation6 + $0x2f0] sm:$0xff] }
 0x709   :  { %v2334_v38 = vpop.f32.mrf.mxu2  ;;  %v2354_v33 = vpop.f32.mrf.mxu3 }
 0x70a   :  { %v2359_v32 = vadd.f32 %v2334_v38, %v1906_v24  ;;  %v2360_v36 = vadd.f32 %v2354_v33, %v1947_v40  ;;  %v4929_v24 = vld [vmem:[#allocation6 + $0x2c0] sm:$0xff]  ;;  %v4935_v40 = vld [vmem:[#allocation6 + $0x2d0] sm:$0xff]  ;;  %v4938_v38 = vld [vmem:[#allocation6 + $0x2d8] sm:$0xff] }
 0x70b   :  { %v4941_v33 = vld [vmem:[#allocation6 + $0x2a0] sm:$0xff] }
 0x70c   :  { %3070 = vtanh.f32 %v2359_v32  ;;  %v2370_v3 = vmul.f32 0.5, %v2360_v36  ;;  %v4944_v32 = vld [vmem:[#allocation6 + $0x2a8] sm:$0xff]  ;;  %v4947_v36 = vld [vmem:[#allocation6 + $0x2b0] sm:$0xff] }
 0x70d   :  { %v3067_v41 = vpop.eup %3066  ;;  %5628 = vst [vmem:[#allocation53_spill] sm:$0xff] %v4947_v36 }
 0x70e   :  { %v3069_v42 = vpop.eup %3068  ;;  %v2363_v37 = vadd.f32 1.0, %v3067_v41  ;;  %3072 = vtanh.f32 %v2370_v3  ;;  %v4950_v3 = vld [vmem:[#allocation6 + $0x2b8] sm:$0xff]  ;;  %v4953_v41 = vld [vmem:[#allocation6 + $0x280] sm:$0xff] }
 0x70f   :  { %v2367_v28 = vadd.f32 1.0, %v3069_v42  ;;  %5629 = vst [vmem:[#allocation54_spill] sm:$0xff] %v4950_v3  ;;  %v4956_v42 = vld [vmem:[#allocation6 + $0x288] sm:$0xff] }
 0x710   :  { %v2364_v49 = vmul.f32 0.5, %v2363_v37  ;;  %5630 = vst [vmem:[#allocation63_spill] sm:$0xff] %v4953_v41  ;;  %v4959_v37 = vld [vmem:[#allocation6 + $0x290] sm:$0xff] }
 0x711   :  { %v2368_v22 = vmul.f32 0.5, %v2367_v28  ;;  %5631 = vst [vmem:[#allocation55_spill] sm:$0xff] %v4956_v42  ;;  %v4962_v28 = vld [vmem:[#allocation6 + $0x298] sm:$0xff] }
 0x712   :  { %v3071_v4 = vpop.eup %3070  ;;  %5632 = vst [vmem:[#allocation56_spill] sm:$0xff] %v4959_v37 }
 0x713   :  { %v2374_v0 = vmul.f32 %v2368_v22, %v4742_v59  ;;  %v2375_v31 = vmul.f32 %v3071_v4, %v2364_v49  ;;  %v4827_v59 = vld [vmem:[#allocation6 + $0x3f0] sm:$0xff]  ;;  %5633 = vst [vmem:[#allocation11_spill] sm:$0xff] %v4962_v28  ;;  %v4965_v49 = vld [vmem:[#allocation6 + $0x260] sm:$0xff]  ;;  %v4968_v22 = vld [vmem:[#allocation6 + $0x268] sm:$0xff] }
 0x714   :  { %v3073_v47 = vpop.eup %3072  ;;  %5634 = vst [vmem:[#allocation12_spill] sm:$0xff] %v4965_v49  ;;  %v4971_v4 = vld [vmem:[#allocation6 + $0x270] sm:$0xff] }
 0x715   :  { %v4818_v2 = vadd.f32 %v2375_v31, %v2374_v0  ;;  %v2372_v48 = vadd.f32 1.0, %v3073_v47  ;;  %5635 = vst [vmem:[#allocation13_spill] sm:$0xff] %v4968_v22  ;;  %v4974_v0 = vld [vmem:[#allocation6 + $0x278] sm:$0xff]  ;;  %v4977_v31 = vld [vmem:[#allocation6 + $0x240] sm:$0xff]  ;;  %v4980_v47 = vld [vmem:[#allocation6 + $0x248] sm:$0xff] }
 0x716   :  { %5636 = vst [vmem:[#allocation34_spill] sm:$0xff] %v4971_v4 }
 0x717   :  { %3074 = vtanh.f32 %v4818_v2  ;;  %v2373_v45 = vmul.f32 0.5, %v2372_v48  ;;  %5637 = vst [vmem:[#allocation14_spill] sm:$0xff] %v4974_v0  ;;  %v4983_v48 = vld [vmem:[#allocation6 + $0x250] sm:$0xff] }
 0x718   :  { %5638 = vst [vmem:[#allocation39_spill] sm:$0xff] %v4977_v31 }
 0x719   :  { %5639 = vst [vmem:[#allocation58_spill] sm:$0xff] %v4980_v47 }
 0x71a   :  { %5640 = vst [vmem:[#allocation37_spill] sm:$0xff] %v4983_v48 }
 0x71d   :  { %v3075_v44 = vpop.eup %3074 }
 0x71e   :  { %v2378_v30 = vmul.f32 %v3075_v44, %v2373_v45  ;;  %v4986_v45 = vld [vmem:[#allocation6 + $0x258] sm:$0xff]  ;;  %v4989_v44 = vld [vmem:[#allocation6 + $0x220] sm:$0xff] }
 0x71f   :  { %5641 = vst [vmem:[#allocation38_spill] sm:$0xff] %v4986_v45 }
 0x720   :  { %2399 = vmatmul.f32.vlgmr.msrb.gmra.mxu0 %v2378_v30  ;;  %2419 = vmatmul.f32.vlgmr.msrb.gmra.mxu1 %v2378_v30  ;;  %5642 = vst [vmem:[#allocation43_spill] sm:$0xff] %v4989_v44 }
 0x721   :  { %2439 = vmatmul.f32.vlgmr.msrb.gmra.mxu2 %v2378_v30  ;;  %2459 = vmatmul.f32.vlgmr.msrb.gmra.mxu3 %v2378_v30  ;;  %v4992_v30 = vld [vmem:[#allocation6 + $0x228] sm:$0xff] }
 0x722   :  { %2595 = vmatpush.msrb.mxu0 %v4821_v5  ;;  %2615 = vmatpush.msrb.mxu1 %v4824_v6  ;;  %5643 = vst [vmem:[#allocation40_spill] sm:$0xff] %v4992_v30 }
 0x723   :  { %2635 = vmatpush.msrb.mxu2 %v4827_v59  ;;  %2655 = vmatpush.msrb.mxu3 %v4830_v27 }
 0x724   :  { %2596 = vmatpush.msrb.mxu0 %v4833_v51  ;;  %2616 = vmatpush.msrb.mxu1 %v4836_v53 }
 0x725   :  { %2636 = vmatpush.msrb.mxu2 %v4839_v54  ;;  %2656 = vmatpush.msrb.mxu3 %v4842_v55 }
 0x726   :  { %2597 = vmatpush.msrb.mxu0 %v4845_v56  ;;  %2617 = vmatpush.msrb.mxu1 %v4848_v57 }
 0x727   :  { %2637 = vmatpush.msrb.mxu2 %v4851_v58  ;;  %2657 = vmatpush.msrb.mxu3 %v4854_v60 }
 0x728   :  { %2598 = vmatpush.msrb.mxu0 %v4857_v61  ;;  %2618 = vmatpush.msrb.mxu1 %v4860_v62 }
 0x729   :  { %2638 = vmatpush.msrb.mxu2 %v4863_v63  ;;  %2658 = vmatpush.msrb.mxu3 %v4866_v26 }
 0x72a   :  { %2599 = vmatpush.msrb.mxu0 %v4869_v7  ;;  %2619 = vmatpush.msrb.mxu1 %v4872_v39 }
 0x72b   :  { %2639 = vmatpush.msrb.mxu2 %v4875_v8  ;;  %2659 = vmatpush.msrb.mxu3 %v4878_v13 }
 0x72c   :  { %2600 = vmatpush.msrb.mxu0 %v4881_v1  ;;  %2620 = vmatpush.msrb.mxu1 %v4884_v17 }
 0x72d   :  { %2640 = vmatpush.msrb.mxu2 %v4887_v18  ;;  %2660 = vmatpush.msrb.mxu3 %v4890_v20 }
 0x72e   :  { %2601 = vmatpush.msrb.mxu0 %v4893_v11  ;;  %2621 = vmatpush.msrb.mxu1 %v4896_v21 }
 0x72f   :  { %2641 = vmatpush.msrb.mxu2 %v4899_v35  ;;  %2661 = vmatpush.msrb.mxu3 %v4902_v34 }
 0x730   :  { %2602 = vmatpush.msrb.mxu0 %v4905_v46  ;;  %2622 = vmatpush.msrb.mxu1 %v4908_v10 }
 0x731   :  { %2642 = vmatpush.msrb.mxu2 %v4911_v15  ;;  %2662 = vmatpush.msrb.mxu3 %v4914_v9 }
 0x732   :  { %2603 = vmatpush.msrb.mxu0 %v4917_v50  ;;  %2623 = vmatpush.msrb.mxu1 %v4920_v52 }
 0x733   :  { %2643 = vmatpush.msrb.mxu2 %v4923_v16  ;;  %2663 = vmatpush.msrb.mxu3 %v4926_v23 }
 0x734   :  { %2604 = vmatpush.msrb.mxu0 %v4929_v24  ;;  %2624 = vmatpush.msrb.mxu1 %v4932_v25 }
 0x735   :  { %2644 = vmatpush.msrb.mxu2 %v4935_v40  ;;  %2664 = vmatpush.msrb.mxu3 %v4938_v38 }
 0x736   :  { %2605 = vmatpush.msrb.mxu0 %v4941_v33  ;;  %2625 = vmatpush.msrb.mxu1 %v4944_v32 }
 0x737   :  { %2645 = vmatpush.msrb.mxu2 %v4947_v36  ;;  %2665 = vmatpush.msrb.mxu3 %v4950_v3 }
 0x738   :  { %2606 = vmatpush.msrb.mxu0 %v4953_v41  ;;  %2626 = vmatpush.msrb.mxu1 %v4956_v42 }
 0x739   :  { %2646 = vmatpush.msrb.mxu2 %v4959_v37  ;;  %2666 = vmatpush.msrb.mxu3 %v4962_v28 }
 0x73a   :  { %2607 = vmatpush.msrb.mxu0 %v4965_v49  ;;  %2627 = vmatpush.msrb.mxu1 %v4968_v22 }
 0x73b   :  { %2647 = vmatpush.msrb.mxu2 %v4971_v4  ;;  %2667 = vmatpush.msrb.mxu3 %v4974_v0  ;;  %v5650_v0 = vld [vmem:[#allocation33_spill] sm:$0xff] }
 0x73c   :  { %2608 = vmatpush.msrb.mxu0 %v4977_v31  ;;  %2628 = vmatpush.msrb.mxu1 %v4980_v47  ;;  %v4995_v31 = vld [vmem:[#allocation6 + $0x230] sm:$0xff]  ;;  %v4998_v47 = vld [vmem:[#allocation6 + $0x238] sm:$0xff] }
 0x73d   :  { %2648 = vmatpush.msrb.mxu2 %v4983_v48  ;;  %2668 = vmatpush.msrb.mxu3 %v4986_v45  ;;  %5644 = vst [vmem:[#allocation41_spill] sm:$0xff] %v4995_v31  ;;  %v5001_v48 = vld [vmem:[#allocation6 + $0x200] sm:$0xff]  ;;  %v5004_v45 = vld [vmem:[#allocation6 + $0x208] sm:$0xff] }
 0x73e   :  { %2609 = vmatpush.msrb.mxu0 %v4989_v44  ;;  %2629 = vmatpush.msrb.mxu1 %v4992_v30  ;;  %5645 = vst [vmem:[#allocation42_spill] sm:$0xff] %v4998_v47  ;;  %v5007_v44 = vld [vmem:[#allocation6 + $0x210] sm:$0xff] }
 0x73f   :  { %2649 = vmatpush.msrb.mxu2 %v4995_v31  ;;  %2669 = vmatpush.msrb.mxu3 %v4998_v47  ;;  %5646 = vst [vmem:[#allocation47_spill] sm:$0xff] %v5001_v48  ;;  %v5649_v31 = vld [vmem:[#allocation16_spill] sm:$0xff]  ;;  %v1868_v47 = vadd.f32 %v5650_v0, %v5624_v19 }
 0x740   :  { %2610 = vmatpush.msrb.mxu0 %v5001_v48  ;;  %5647 = vst [vmem:[#allocation44_spill] sm:$0xff] %v5004_v45  ;;  %2630 = vmatpush.msrb.mxu1 %v5004_v45  ;;  %v1827_v30 = vadd.f32 %v5649_v31, %v5622_v12  ;;  %v5651_v45 = vld [vmem:[#allocation17_spill] sm:$0xff] }
 0x741   :  { %5648 = vst [vmem:[#allocation45_spill] sm:$0xff] %v5007_v44  ;;  %2650 = vmatpush.msrb.mxu2 %v5007_v44  ;;  %2670 = vmatpush.msrb.mxu3 %v5621_v14  ;;  %v1909_v42 = vadd.f32 %v5651_v45, %v5597_v43  ;;  %v5652_v44 = vld [vmem:[#allocation18_spill] sm:$0xff] }
 0x742   :  { %v1950_v41 = vadd.f32 %v5652_v44, %v4662_v29 }
 0x79d   :  { %v2400_v4 = vpop.f32.mrf.mxu0  ;;  %v2420_v22 = vpop.f32.mrf.mxu1 }
 0x79e   :  { %v2463_v49 = vadd.f32 %v2400_v4, %v1827_v30  ;;  %v2464_v48 = vadd.f32 %v2420_v22, %v1868_v47 }
 0x7a0   :  { %v2467_v28 = vmul.f32 0.5, %v2463_v49  ;;  %v2471_v37 = vmul.f32 0.5, %v2464_v48 }
 0x7a2   :  { %3076 = vtanh.f32 %v2467_v28 }
 0x7a3   :  { %3078 = vtanh.f32 %v2471_v37  ;;  %v5656_v37 = vld [vmem:[#allocation55_spill] sm:$0xff] }
 0x7a4   :  { %v2440_v14 = vpop.f32.mrf.mxu2  ;;  %v2460_v3 = vpop.f32.mrf.mxu3 }
 0x7a5   :  { %v2465_v31 = vadd.f32 %v2440_v14, %v1909_v42  ;;  %v2466_v12 = vadd.f32 %v2460_v3, %v1950_v41  ;;  %v5657_v14 = vld [vmem:[#allocation56_spill] sm:$0xff] }
 0x7a7   :  { %3080 = vtanh.f32 %v2465_v31  ;;  %v2476_v0 = vmul.f32 0.5, %v2466_v12  ;;  %v5658_v31 = vld [vmem:[#allocation11_spill] sm:$0xff] }
 0x7a8   :  { %v3077_v19 = vpop.eup %3076 }
 0x7a9   :  { %v3079_v36 = vpop.eup %3078  ;;  %v2469_v4 = vadd.f32 1.0, %v3077_v19  ;;  %3082 = vtanh.f32 %v2476_v0  ;;  %v5653_v19 = vld [vmem:[#allocation53_spill] sm:$0xff]  ;;  %v5659_v0 = vld [vmem:[#allocation12_spill] sm:$0xff] }
 0x7aa   :  { %v2473_v22 = vadd.f32 1.0, %v3079_v36  ;;  %v5655_v36 = vld [vmem:[#allocation63_spill] sm:$0xff] }
 0x7ab   :  { %v2470_v49 = vmul.f32 0.5, %v2469_v4  ;;  %v5660_v4 = vld [vmem:[#allocation13_spill] sm:$0xff] }
 0x7ac   :  { %v2474_v28 = vmul.f32 0.5, %v2473_v22  ;;  %v5661_v22 = vld [vmem:[#allocation34_spill] sm:$0xff] }
 0x7ad   :  { %v3081_v47 = vpop.eup %3080 }
 0x7ae   :  { %v2480_v48 = vmul.f32 %v2474_v28, %v4818_v2  ;;  %v2481_v45 = vmul.f32 %v3081_v47, %v2470_v49  ;;  %v5654_v2 = vld [vmem:[#allocation54_spill] sm:$0xff]  ;;  %v5663_v28 = vld [vmem:[#allocation39_spill] sm:$0xff] }
 0x7af   :  { %v3083_v30 = vpop.eup %3082  ;;  %v5662_v49 = vld [vmem:[#allocation14_spill] sm:$0xff] }
 0x7b0   :  { %v5020_v44 = vadd.f32 %v2481_v45, %v2480_v48  ;;  %v2478_v42 = vadd.f32 1.0, %v3083_v30  ;;  %v5664_v47 = vld [vmem:[#allocation58_spill] sm:$0xff]  ;;  %v5665_v48 = vld [vmem:[#allocation37_spill] sm:$0xff]  ;;  %v5667_v30 = vld [vmem:[#allocation43_spill] sm:$0xff] }
 0x7b1   :  { %v5666_v45 = vld [vmem:[#allocation38_spill] sm:$0xff] }
 0x7b2   :  { %3084 = vtanh.f32 %v5020_v44  ;;  %v2479_v3 = vmul.f32 0.5, %v2478_v42  ;;  %v5668_v42 = vld [vmem:[#allocation40_spill] sm:$0xff] }
 0x7b8   :  { %v3085_v41 = vpop.eup %3084 }
 0x7b9   :  { %v2484_v12 = vmul.f32 %v3085_v41, %v2479_v3  ;;  %v5669_v3 = vld [vmem:[#allocation41_spill] sm:$0xff]  ;;  %v5670_v41 = vld [vmem:[#allocation42_spill] sm:$0xff] }
 0x7bb   :  { %2505 = vmatmul.f32.vlgmr.msra.gmra.mxu0 %v2484_v12  ;;  %2525 = vmatmul.f32.vlgmr.msra.gmra.mxu1 %v2484_v12 }
 0x7bc   :  { %2545 = vmatmul.f32.vlgmr.msra.gmra.mxu2 %v2484_v12  ;;  %2565 = vmatmul.f32.vlgmr.msra.gmra.mxu3 %v2484_v12  ;;  %v5671_v12 = vld [vmem:[#allocation47_spill] sm:$0xff] }
 0x7bd   :  { %2701 = vmatpush.msra.mxu0 %v4821_v5  ;;  %2721 = vmatpush.msra.mxu1 %v4824_v6 }
 0x7be   :  { %2741 = vmatpush.msra.mxu2 %v4827_v59  ;;  %2761 = vmatpush.msra.mxu3 %v4830_v27 }
 0x7bf   :  { %2702 = vmatpush.msra.mxu0 %v4833_v51  ;;  %2722 = vmatpush.msra.mxu1 %v4836_v53 }
 0x7c0   :  { %2742 = vmatpush.msra.mxu2 %v4839_v54  ;;  %2762 = vmatpush.msra.mxu3 %v4842_v55 }
 0x7c1   :  { %2703 = vmatpush.msra.mxu0 %v4845_v56  ;;  %2723 = vmatpush.msra.mxu1 %v4848_v57 }
 0x7c2   :  { %2743 = vmatpush.msra.mxu2 %v4851_v58  ;;  %2763 = vmatpush.msra.mxu3 %v4854_v60 }
 0x7c3   :  { %2704 = vmatpush.msra.mxu0 %v4857_v61  ;;  %2724 = vmatpush.msra.mxu1 %v4860_v62 }
 0x7c4   :  { %2744 = vmatpush.msra.mxu2 %v4863_v63  ;;  %2764 = vmatpush.msra.mxu3 %v4866_v26 }
 0x7c5   :  { %2705 = vmatpush.msra.mxu0 %v4869_v7  ;;  %2725 = vmatpush.msra.mxu1 %v4872_v39 }
 0x7c6   :  { %2745 = vmatpush.msra.mxu2 %v4875_v8  ;;  %2765 = vmatpush.msra.mxu3 %v4878_v13 }
 0x7c7   :  { %2706 = vmatpush.msra.mxu0 %v4881_v1  ;;  %2726 = vmatpush.msra.mxu1 %v4884_v17 }
 0x7c8   :  { %2746 = vmatpush.msra.mxu2 %v4887_v18  ;;  %2766 = vmatpush.msra.mxu3 %v4890_v20 }
 0x7c9   :  { %2707 = vmatpush.msra.mxu0 %v4893_v11  ;;  %2727 = vmatpush.msra.mxu1 %v4896_v21 }
 0x7ca   :  { %2747 = vmatpush.msra.mxu2 %v4899_v35  ;;  %2767 = vmatpush.msra.mxu3 %v4902_v34 }
 0x7cb   :  { %2708 = vmatpush.msra.mxu0 %v4905_v46  ;;  %2728 = vmatpush.msra.mxu1 %v4908_v10 }
 0x7cc   :  { %2748 = vmatpush.msra.mxu2 %v4911_v15  ;;  %2768 = vmatpush.msra.mxu3 %v4914_v9 }
 0x7cd   :  { %2709 = vmatpush.msra.mxu0 %v4917_v50  ;;  %2729 = vmatpush.msra.mxu1 %v4920_v52 }
 0x7ce   :  { %2749 = vmatpush.msra.mxu2 %v4923_v16  ;;  %2769 = vmatpush.msra.mxu3 %v4926_v23 }
 0x7cf   :  { %2710 = vmatpush.msra.mxu0 %v4929_v24  ;;  %2730 = vmatpush.msra.mxu1 %v4932_v25 }
 0x7d0   :  { %2750 = vmatpush.msra.mxu2 %v4935_v40  ;;  %2770 = vmatpush.msra.mxu3 %v4938_v38 }
 0x7d1   :  { %2711 = vmatpush.msra.mxu0 %v4941_v33  ;;  %2731 = vmatpush.msra.mxu1 %v4944_v32 }
 0x7d2   :  { %2751 = vmatpush.msra.mxu2 %v5653_v19  ;;  %2771 = vmatpush.msra.mxu3 %v5654_v2 }
 0x7d3   :  { %2712 = vmatpush.msra.mxu0 %v5655_v36  ;;  %2732 = vmatpush.msra.mxu1 %v5656_v37  ;;  %v5680_v37 = vld [vmem:[#allocation22_spill] sm:$0xff] }
 0x7d4   :  { %2752 = vmatpush.msra.mxu2 %v5657_v14  ;;  %2772 = vmatpush.msra.mxu3 %v5658_v31  ;;  %v1953_v36 = vadd.f32 %v5680_v37, %v4662_v29 }
 0x7d5   :  { %2713 = vmatpush.msra.mxu0 %v5659_v0  ;;  %2733 = vmatpush.msra.mxu1 %v5660_v4  ;;  %v5678_v4 = vld [vmem:[#allocation20_spill] sm:$0xff] }
 0x7d6   :  { %2753 = vmatpush.msra.mxu2 %v5661_v22  ;;  %2773 = vmatpush.msra.mxu3 %v5662_v49  ;;  %v5672_v22 = vld [vmem:[#allocation44_spill] sm:$0xff]  ;;  %v5673_v49 = vld [vmem:[#allocation45_spill] sm:$0xff] }
 0x7d7   :  { %2714 = vmatpush.msra.mxu0 %v5663_v28  ;;  %2734 = vmatpush.msra.mxu1 %v5664_v47  ;;  %v5086_v28 = vld [vmem:[#allocation6 + $0x218] sm:$0xff] }
 0x7d8   :  { %2754 = vmatpush.msra.mxu2 %v5665_v48  ;;  %2774 = vmatpush.msra.mxu3 %v5666_v45  ;;  %5674 = vst [vmem:[#allocation46_spill] sm:$0xff] %v5086_v28  ;;  %v5675_v48 = vld [vmem:[#allocation32_spill] sm:$0xff]  ;;  %v5676_v45 = vld [vmem:[#allocation19_spill] sm:$0xff] }
 0x7d9   :  { %2715 = vmatpush.msra.mxu0 %v5667_v30  ;;  %2735 = vmatpush.msra.mxu1 %v5668_v42  ;;  %v1830_v47 = vadd.f32 %v5676_v45, %v5675_v48  ;;  %v5677_v30 = vld [vmem:[#allocation60_spill] sm:$0xff] }
 0x7da   :  { %2755 = vmatpush.msra.mxu2 %v5669_v3  ;;  %2775 = vmatpush.msra.mxu3 %v5670_v41  ;;  %v1871_v42 = vadd.f32 %v5678_v4, %v5677_v30 }
 0x7db   :  { %2716 = vmatpush.msra.mxu0 %v5671_v12  ;;  %2736 = vmatpush.msra.mxu1 %v5672_v22  ;;  %v5679_v22 = vld [vmem:[#allocation21_spill] sm:$0xff] }
 0x7dc   :  { %2756 = vmatpush.msra.mxu2 %v5673_v49  ;;  %2776 = vmatpush.msra.mxu3 %v5086_v28  ;;  %v1912_v49 = vadd.f32 %v5679_v22, %v5597_v43 }
 0x838   :  { %v2506_v0 = vpop.f32.mrf.mxu0  ;;  %v2526_v3 = vpop.f32.mrf.mxu1 }
 0x839   :  { %v2569_v31 = vadd.f32 %v2506_v0, %v1830_v47  ;;  %v2570_v41 = vadd.f32 %v2526_v3, %v1871_v42 }
 0x83b   :  { %v2573_v14 = vmul.f32 0.5, %v2569_v31  ;;  %v2577_v12 = vmul.f32 0.5, %v2570_v41 }
 0x83d   :  { %3086 = vtanh.f32 %v2573_v14 }
 0x83e   :  { %3088 = vtanh.f32 %v2577_v12 }
 0x83f   :  { %v2546_v28 = vpop.f32.mrf.mxu2  ;;  %v2566_v2 = vpop.f32.mrf.mxu3 }
 0x840   :  { %v2571_v45 = vadd.f32 %v2546_v28, %v1912_v49  ;;  %v2572_v48 = vadd.f32 %v2566_v2, %v1953_v36 }
 0x842   :  { %3090 = vtanh.f32 %v2571_v45  ;;  %v2582_v4 = vmul.f32 0.5, %v2572_v48 }
 0x843   :  { %v3087_v30 = vpop.eup %3086 }
 0x844   :  { %v3089_v19 = vpop.eup %3088  ;;  %v2575_v0 = vadd.f32 1.0, %v3087_v30  ;;  %3092 = vtanh.f32 %v2582_v4 }
 0x845   :  { %v2579_v47 = vadd.f32 1.0, %v3089_v19 }
 0x846   :  { %v2576_v31 = vmul.f32 0.5, %v2575_v0 }
 0x847   :  { %v2580_v14 = vmul.f32 0.5, %v2579_v47 }
 0x848   :  { %v3091_v42 = vpop.eup %3090 }
 0x849   :  { %v2586_v22 = vmul.f32 %v2580_v14, %v5020_v44  ;;  %v2587_v3 = vmul.f32 %v3091_v42, %v2576_v31 }
 0x84a   :  { %v3093_v41 = vpop.eup %3092 }
 0x84b   :  { %v5098_v37 = vadd.f32 %v2587_v3, %v2586_v22  ;;  %v2584_v49 = vadd.f32 1.0, %v3093_v41 }
 0x84d   :  { %3094 = vtanh.f32 %v5098_v37  ;;  %v2585_v2 = vmul.f32 0.5, %v2584_v49 }
 0x853   :  { %v3095_v36 = vpop.eup %3094 }
 0x854   :  { %v2590_v28 = vmul.f32 %v3095_v36, %v2585_v2  ;;  %v5709_v2 = vld [vmem:[#allocation35_spill] sm:$0xff] }
 0x856   :  { %2611 = vmatmul.f32.vlgmr.msrb.gmra.mxu0 %v2590_v28  ;;  %2631 = vmatmul.f32.vlgmr.msrb.gmra.mxu1 %v2590_v28 }
 0x857   :  { %2651 = vmatmul.f32.vlgmr.msrb.gmra.mxu2 %v2590_v28  ;;  %2671 = vmatmul.f32.vlgmr.msrb.gmra.mxu3 %v2590_v28  ;;  %v5710_v28 = vld [vmem:[#allocation36_spill] sm:$0xff] }
 0x858   :  { %2807 = vmatpush.msrb.mxu0 %v4821_v5  ;;  %2827 = vmatpush.msrb.mxu1 %v4824_v6  ;;  %v5681_v5 = vld [vmem:[#allocation53_spill] sm:$0xff]  ;;  %v5682_v6 = vld [vmem:[#allocation54_spill] sm:$0xff] }
 0x859   :  { %2847 = vmatpush.msrb.mxu2 %v4827_v59  ;;  %2867 = vmatpush.msrb.mxu3 %v4830_v27  ;;  %v5683_v59 = vld [vmem:[#allocation63_spill] sm:$0xff] }
 0x85a   :  { %2808 = vmatpush.msrb.mxu0 %v4833_v51  ;;  %2828 = vmatpush.msrb.mxu1 %v4836_v53  ;;  %v5684_v27 = vld [vmem:[#allocation55_spill] sm:$0xff]  ;;  %v5685_v51 = vld [vmem:[#allocation56_spill] sm:$0xff] }
 0x85b   :  { %2848 = vmatpush.msrb.mxu2 %v4839_v54  ;;  %2868 = vmatpush.msrb.mxu3 %v4842_v55  ;;  %v5686_v53 = vld [vmem:[#allocation11_spill] sm:$0xff]  ;;  %v5687_v54 = vld [vmem:[#allocation12_spill] sm:$0xff]  ;;  %v5688_v55 = vld [vmem:[#allocation13_spill] sm:$0xff] }
 0x85c   :  { %2809 = vmatpush.msrb.mxu0 %v4845_v56  ;;  %2829 = vmatpush.msrb.mxu1 %v4848_v57  ;;  %v5689_v56 = vld [vmem:[#allocation34_spill] sm:$0xff] }
 0x85d   :  { %2849 = vmatpush.msrb.mxu2 %v4851_v58  ;;  %2869 = vmatpush.msrb.mxu3 %v4854_v60  ;;  %v5690_v57 = vld [vmem:[#allocation14_spill] sm:$0xff]  ;;  %v5691_v58 = vld [vmem:[#allocation39_spill] sm:$0xff] }
 0x85e   :  { %2810 = vmatpush.msrb.mxu0 %v4857_v61  ;;  %2830 = vmatpush.msrb.mxu1 %v4860_v62  ;;  %v5692_v60 = vld [vmem:[#allocation58_spill] sm:$0xff]  ;;  %v5693_v61 = vld [vmem:[#allocation37_spill] sm:$0xff] }
 0x85f   :  { %2850 = vmatpush.msrb.mxu2 %v4863_v63  ;;  %2870 = vmatpush.msrb.mxu3 %v4866_v26  ;;  %v5694_v62 = vld [vmem:[#allocation38_spill] sm:$0xff]  ;;  %v5695_v63 = vld [vmem:[#allocation43_spill] sm:$0xff]  ;;  %v5696_v26 = vld [vmem:[#allocation40_spill] sm:$0xff] }
 0x860   :  { %2811 = vmatpush.msrb.mxu0 %v4869_v7  ;;  %2831 = vmatpush.msrb.mxu1 %v4872_v39  ;;  %v5697_v7 = vld [vmem:[#allocation41_spill] sm:$0xff]  ;;  %v5698_v39 = vld [vmem:[#allocation42_spill] sm:$0xff] }
 0x861   :  { %2851 = vmatpush.msrb.mxu2 %v4875_v8  ;;  %2871 = vmatpush.msrb.mxu3 %v4878_v13  ;;  %v5699_v8 = vld [vmem:[#allocation47_spill] sm:$0xff]  ;;  %v5700_v13 = vld [vmem:[#allocation44_spill] sm:$0xff] }
 0x862   :  { %2812 = vmatpush.msrb.mxu0 %v4881_v1  ;;  %2832 = vmatpush.msrb.mxu1 %v4884_v17  ;;  %v5701_v1 = vld [vmem:[#allocation45_spill] sm:$0xff]  ;;  %v5702_v17 = vld [vmem:[#allocation46_spill] sm:$0xff] }
 0x863   :  { %2852 = vmatpush.msrb.mxu2 %v4887_v18  ;;  %2872 = vmatpush.msrb.mxu3 %v4890_v20  ;;  %v5703_v18 = vld [vmem:[#allocation32_spill] sm:$0xff]  ;;  %v5704_v20 = vld [vmem:[#allocation23_spill] sm:$0xff] }
 0x864   :  { %2813 = vmatpush.msrb.mxu0 %v4893_v11  ;;  %2833 = vmatpush.msrb.mxu1 %v4896_v21  ;;  %v1833_v11 = vadd.f32 %v5704_v20, %v5703_v18  ;;  %v5705_v21 = vld [vmem:[#allocation60_spill] sm:$0xff]  ;;  %v1836_v36 = vadd.f32 %v5709_v2, %v5703_v18  ;;  %v5715_v2 = vld [vmem:[#allocation61_spill] sm:$0xff] }
 0x865   :  { %2853 = vmatpush.msrb.mxu2 %v4899_v35  ;;  %2873 = vmatpush.msrb.mxu3 %v4902_v34  ;;  %v5706_v35 = vld [vmem:[#allocation24_spill] sm:$0xff] }
 0x866   :  { %2814 = vmatpush.msrb.mxu0 %v4905_v46  ;;  %2834 = vmatpush.msrb.mxu1 %v4908_v10  ;;  %v1874_v34 = vadd.f32 %v5706_v35, %v5705_v21 }
 0x867   :  { %2854 = vmatpush.msrb.mxu2 %v4911_v15  ;;  %2874 = vmatpush.msrb.mxu3 %v4914_v9 }
 0x868   :  { %2815 = vmatpush.msrb.mxu0 %v4917_v50  ;;  %2835 = vmatpush.msrb.mxu1 %v4920_v52 }
 0x869   :  { %2855 = vmatpush.msrb.mxu2 %v4923_v16  ;;  %2875 = vmatpush.msrb.mxu3 %v4926_v23  ;;  %v5707_v16 = vld [vmem:[#allocation25_spill] sm:$0xff] }
 0x86a   :  { %2816 = vmatpush.msrb.mxu0 %v4929_v24  ;;  %2836 = vmatpush.msrb.mxu1 %v4932_v25  ;;  %v1915_v23 = vadd.f32 %v5707_v16, %v5597_v43  ;;  %v5708_v24 = vld [vmem:[#allocation26_spill] sm:$0xff]  ;;  %v2922_v16 = vld [vmem:[#allocation8 + $0x68] sm:$0xff] }
 0x86b   :  { %2856 = vmatpush.msrb.mxu2 %v4935_v40  ;;  %2876 = vmatpush.msrb.mxu3 %v4938_v38  ;;  %v1956_v25 = vadd.f32 %v5708_v24, %v4662_v29  ;;  %v2920_v24 = vld [vmem:[#allocation8 + $0x58] sm:$0xff] }
 0x86c   :  { %2817 = vmatpush.msrb.mxu0 %v4941_v33  ;;  %2837 = vmatpush.msrb.mxu1 %v4944_v32 }
 0x86d   :  { %2857 = vmatpush.msrb.mxu2 %v5681_v5  ;;  %2877 = vmatpush.msrb.mxu3 %v5682_v6  ;;  %v1877_v5 = vadd.f32 %v5710_v28, %v5705_v21  ;;  %v2924_v6 = vld [vmem:[#allocation8 + $0x78] sm:$0xff] }
 0x86e   :  { %2818 = vmatpush.msrb.mxu0 %v5683_v59  ;;  %2838 = vmatpush.msrb.mxu1 %v5684_v27  ;;  %v5716_v28 = vld [vmem:[#allocation62_spill] sm:$0xff] }
 0x86f   :  { %2858 = vmatpush.msrb.mxu2 %v5685_v51  ;;  %2878 = vmatpush.msrb.mxu3 %v5686_v53 }
 0x870   :  { %2819 = vmatpush.msrb.mxu0 %v5687_v54  ;;  %2839 = vmatpush.msrb.mxu1 %v5688_v55  ;;  %v5711_v55 = vld [vmem:[#allocation59_spill] sm:$0xff] }
 0x871   :  { %2859 = vmatpush.msrb.mxu2 %v5689_v56  ;;  %2879 = vmatpush.msrb.mxu3 %v5690_v57  ;;  %v1918_v56 = vadd.f32 %v5711_v55, %v5597_v43  ;;  %v5712_v57 = vld [vmem:[#allocation27_spill] sm:$0xff] }
 0x872   :  { %2820 = vmatpush.msrb.mxu0 %v5691_v58  ;;  %2840 = vmatpush.msrb.mxu1 %v5692_v60  ;;  %v1959_v58 = vadd.f32 %v5712_v57, %v4662_v29 }
 0x873   :  { %2860 = vmatpush.msrb.mxu2 %v5693_v61  ;;  %2880 = vmatpush.msrb.mxu3 %v5694_v62 }
 0x874   :  { %2821 = vmatpush.msrb.mxu0 %v5695_v63  ;;  %2841 = vmatpush.msrb.mxu1 %v5696_v26 }
 0x875   :  { %2861 = vmatpush.msrb.mxu2 %v5697_v7  ;;  %2881 = vmatpush.msrb.mxu3 %v5698_v39 }
 0x876   :  { %2822 = vmatpush.msrb.mxu0 %v5699_v8  ;;  %2842 = vmatpush.msrb.mxu1 %v5700_v13 }
 0x877   :  { %2862 = vmatpush.msrb.mxu2 %v5701_v1  ;;  %2882 = vmatpush.msrb.mxu3 %v5702_v17 }
 0x8d3   :  { %v2612_v46 = vpop.f32.mrf.mxu0  ;;  %v2632_v10 = vpop.f32.mrf.mxu1 }
 0x8d4   :  { %v2675_v15 = vadd.f32 %v2612_v46, %v1833_v11  ;;  %v2676_v9 = vadd.f32 %v2632_v10, %v1874_v34 }
 0x8d6   :  { %v2679_v50 = vmul.f32 0.5, %v2675_v15  ;;  %v2683_v52 = vmul.f32 0.5, %v2676_v9 }
 0x8d8   :  { %3096 = vtanh.f32 %v2679_v50 }
 0x8d9   :  { %3098 = vtanh.f32 %v2683_v52  ;;  %v2923_v52 = vld [vmem:[#allocation8 + $0x70] sm:$0xff] }
 0x8da   :  { %v2652_v40 = vpop.f32.mrf.mxu2  ;;  %v2672_v38 = vpop.f32.mrf.mxu3 }
 0x8db   :  { %v2677_v33 = vadd.f32 %v2652_v40, %v1915_v23  ;;  %v2678_v32 = vadd.f32 %v2672_v38, %v1956_v25  ;;  %v2921_v23 = vld [vmem:[#allocation8 + $0x60] sm:$0xff]  ;;  %v2919_v25 = vld [vmem:[#allocation8 + $0x50] sm:$0xff]  ;;  %v2918_v40 = vld [vmem:[#allocation8 + $0x48] sm:$0xff] }
 0x8dc   :  { %v2917_v38 = vld [vmem:[#allocation8 + $0x40] sm:$0xff] }
 0x8dd   :  { %3100 = vtanh.f32 %v2677_v33  ;;  %v2688_v44 = vmul.f32 0.5, %v2678_v32  ;;  %v2916_v33 = vld [vmem:[#allocation8 + $0x38] sm:$0xff]  ;;  %v2915_v32 = vld [vmem:[#allocation8 + $0x30] sm:$0xff] }
 0x8de   :  { %v3097_v19 = vpop.eup %3096 }
 0x8df   :  { %v3099_v48 = vpop.eup %3098  ;;  %v2681_v30 = vadd.f32 1.0, %v3097_v19  ;;  %3102 = vtanh.f32 %v2688_v44  ;;  %v2914_v44 = vld [vmem:[#allocation8 + $0x28] sm:$0xff]  ;;  %v2913_v19 = vld [vmem:[#allocation8 + $0x20] sm:$0xff] }
 0x8e0   :  { %v2685_v12 = vadd.f32 1.0, %v3099_v48  ;;  %v2912_v48 = vld [vmem:[#allocation8 + $0x18] sm:$0xff] }
 0x8e1   :  { %v2682_v45 = vmul.f32 0.5, %v2681_v30  ;;  %v2911_v30 = vld [vmem:[#allocation8 + $0x10] sm:$0xff] }
 0x8e2   :  { %v2686_v4 = vmul.f32 0.5, %v2685_v12  ;;  %v2910_v12 = vld [vmem:[#allocation8 + $0x8] sm:$0xff] }
 0x8e3   :  { %v3101_v0 = vpop.eup %3100 }
 0x8e4   :  { %v2692_v47 = vmul.f32 %v2686_v4, %v5098_v37  ;;  %v2693_v31 = vmul.f32 %v3101_v0, %v2682_v45  ;;  %v2909_v45 = vld [vmem:[#allocation8] sm:$0xff]  ;;  %v5713_v4 = vld [vmem:[#allocation28_spill] sm:$0xff] }
 0x8e5   :  { %v3103_v14 = vpop.eup %3102  ;;  %v1839_v0 = vadd.f32 %v5713_v4, %v5703_v18 }
 0x8e6   :  { %v2694_v42 = vadd.f32 %v2693_v31, %v2692_v47  ;;  %v2690_v22 = vadd.f32 1.0, %v3103_v14  ;;  %v5714_v47 = vld [vmem:[#allocation31_spill] sm:$0xff] }
 0x8e7   :  { %v1880_v31 = vadd.f32 %v5714_v47, %v5705_v21 }
 0x8e8   :  { %3104 = vtanh.f32 %v2694_v42  ;;  %v2691_v3 = vmul.f32 0.5, %v2690_v22 }
 0x8ee   :  { %v3105_v41 = vpop.eup %3104 }
 0x8ef   :  { %v2696_v49 = vmul.f32 %v3105_v41, %v2691_v3 }
 0x8f1   :  { %2717 = vmatmul.f32.vlgmr.msra.gmra.mxu0 %v2696_v49  ;;  %2737 = vmatmul.f32.vlgmr.msra.gmra.mxu1 %v2696_v49 }
 0x8f2   :  { %2757 = vmatmul.f32.vlgmr.msra.gmra.mxu2 %v2696_v49  ;;  %2777 = vmatmul.f32.vlgmr.msra.gmra.mxu3 %v2696_v49 }
 0x8f3   :  { %2929 = vmatpush.msra.mxu0 %v2924_v6 }
 0x8f5   :  { %2930 = vmatpush.msra.mxu0 %v2923_v52 }
 0x8f7   :  { %2931 = vmatpush.msra.mxu0 %v2922_v16 }
 0x8f9   :  { %2932 = vmatpush.msra.mxu0 %v2921_v23 }
 0x8fb   :  { %2933 = vmatpush.msra.mxu0 %v2920_v24 }
 0x8fd   :  { %2934 = vmatpush.msra.mxu0 %v2919_v25 }
 0x8ff   :  { %2935 = vmatpush.msra.mxu0 %v2918_v40 }
 0x901   :  { %2936 = vmatpush.msra.mxu0 %v2917_v38 }
 0x903   :  { %2937 = vmatpush.msra.mxu0 %v2916_v33 }
 0x905   :  { %2938 = vmatpush.msra.mxu0 %v2915_v32 }
 0x907   :  { %2939 = vmatpush.msra.mxu0 %v2914_v44 }
 0x909   :  { %2940 = vmatpush.msra.mxu0 %v2913_v19 }
 0x90b   :  { %2941 = vmatpush.msra.mxu0 %v2912_v48 }
 0x90d   :  { %2942 = vmatpush.msra.mxu0 %v2911_v30 }
 0x90f   :  { %2943 = vmatpush.msra.mxu0 %v2910_v12 }
 0x911   :  { %2944 = vmatpush.msra.mxu0 %v2909_v45 }
 0x96e   :  { %v2718_v37 = vpop.f32.mrf.mxu0  ;;  %v2738_v59 = vpop.f32.mrf.mxu1 }
 0x96f   :  { %v2781_v27 = vadd.f32 %v2718_v37, %v1836_v36  ;;  %v2782_v51 = vadd.f32 %v2738_v59, %v1877_v5  ;;  %v1921_v36 = vadd.f32 %v5715_v2, %v5597_v43  ;;  %v1962_v5 = vadd.f32 %v5716_v28, %v4662_v29 }
 0x971   :  { %v2785_v53 = vmul.f32 0.5, %v2781_v27  ;;  %v2789_v54 = vmul.f32 0.5, %v2782_v51 }
 0x973   :  { %3106 = vtanh.f32 %v2785_v53 }
 0x974   :  { %3108 = vtanh.f32 %v2789_v54 }
 0x975   :  { %v2758_v60 = vpop.f32.mrf.mxu2  ;;  %v2778_v61 = vpop.f32.mrf.mxu3 }
 0x976   :  { %v2783_v62 = vadd.f32 %v2758_v60, %v1918_v56  ;;  %v2784_v63 = vadd.f32 %v2778_v61, %v1959_v58 }
 0x978   :  { %3110 = vtanh.f32 %v2783_v62  ;;  %v2794_v26 = vmul.f32 0.5, %v2784_v63 }
 0x979   :  { %v3107_v7 = vpop.eup %3106 }
 0x97a   :  { %v3109_v39 = vpop.eup %3108  ;;  %v2787_v8 = vadd.f32 1.0, %v3107_v7  ;;  %3112 = vtanh.f32 %v2794_v26  ;;  %v2965_v7 = vld [vmem:[%s5205_s5] ss:$0 sm:$0xff] }
 0x97b   :  { %v2791_v13 = vadd.f32 1.0, %v3109_v39 }
 0x97c   :  { %v2788_v1 = vmul.f32 0.5, %v2787_v8 }
 0x97d   :  { %v2792_v17 = vmul.f32 0.5, %v2791_v13 }
 0x97e   :  { %v3111_v20 = vpop.eup %3110 }
 0x97f   :  { %v2798_v11 = vmul.f32 %v2792_v17, %v2694_v42  ;;  %v2799_v35 = vmul.f32 %v3111_v20, %v2788_v1 }
 0x980   :  { %v3113_v34 = vpop.eup %3112 }
 0x981   :  { %v5182_v46 = vadd.f32 %v2799_v35, %v2798_v11  ;;  %v2796_v10 = vadd.f32 1.0, %v3113_v34 }
 0x983   :  { %3114 = vtanh.f32 %v5182_v46  ;;  %v2797_v15 = vmul.f32 0.5, %v2796_v10 }
 0x989   :  { %v3115_v9 = vpop.eup %3114 }
 0x98a   :  { %v2802_v50 = vmul.f32 %v3115_v9, %v2797_v15 }
 0x98c   :  { %2823 = vmatmul.f32.vlgmr.msrb.gmra.mxu0 %v2802_v50  ;;  %2843 = vmatmul.f32.vlgmr.msrb.gmra.mxu1 %v2802_v50 }
 0x98d   :  { %2863 = vmatmul.f32.vlgmr.msrb.gmra.mxu2 %v2802_v50  ;;  %2883 = vmatmul.f32.vlgmr.msrb.gmra.mxu3 %v2802_v50 }
 0xa09   :  { %v2824_v14 = vpop.f32.mrf.mxu0  ;;  %v2844_v42 = vpop.f32.mrf.mxu1 }
 0xa0a   :  { %v2887_v22 = vadd.f32 %v2824_v14, %v1839_v0  ;;  %v2888_v3 = vadd.f32 %v2844_v42, %v1880_v31 }
 0xa0c   :  { %v2891_v41 = vmul.f32 0.5, %v2887_v22  ;;  %v2895_v49 = vmul.f32 0.5, %v2888_v3 }
 0xa0e   :  { %3116 = vtanh.f32 %v2891_v41 }
 0xa0f   :  { %3118 = vtanh.f32 %v2895_v49 }
 0xa10   :  { %v2864_v6 = vpop.f32.mrf.mxu2  ;;  %v2884_v37 = vpop.f32.mrf.mxu3 }
 0xa11   :  { %v2889_v18 = vadd.f32 %v2864_v6, %v1921_v36  ;;  %v2890_v59 = vadd.f32 %v2884_v37, %v1962_v5 }
 0xa13   :  { %3120 = vtanh.f32 %v2889_v18  ;;  %v2900_v21 = vmul.f32 0.5, %v2890_v59 }
 0xa14   :  { %v3117_v27 = vpop.eup %3116 }
 0xa15   :  { %v3119_v51 = vpop.eup %3118  ;;  %v2893_v53 = vadd.f32 1.0, %v3117_v27  ;;  %3122 = vtanh.f32 %v2900_v21 }
 0xa16   :  { %v2897_v54 = vadd.f32 1.0, %v3119_v51 }
 0xa17   :  { %v2894_v55 = vmul.f32 0.5, %v2893_v53 }
 0xa18   :  { %v2898_v56 = vmul.f32 0.5, %v2897_v54 }
 0xa19   :  { %v3121_v57 = vpop.eup %3120 }
 0xa1a   :  { %v2904_v43 = vmul.f32 %v2898_v56, %v5182_v46  ;;  %v2905_v58 = vmul.f32 %v3121_v57, %v2894_v55 }
 0xa1b   :  { %v3123_v60 = vpop.eup %3122 }
 0xa1c   :  { %v2906_v29 = vadd.f32 %v2905_v58, %v2904_v43  ;;  %v2902_v61 = vadd.f32 1.0, %v3123_v60 }
 0xa1e   :  { %3124 = vtanh.f32 %v2906_v29  ;;  %v2903_v62 = vmul.f32 0.5, %v2902_v61 }
 0xa24   :  { %v3125_v63 = vpop.eup %3124 }
 0xa25   :  { %v2908_v26 = vmul.f32 %v3125_v63, %v2903_v62 }
 0xa27   :  { %2945 = vmatmul.f32.vlgmr.msra.gmra.mxu0 %v2908_v26 }
 0xaa4   :  { %v2946_v39 = vpop.f32.mrf.mxu0 }
 0xaa5   :  { %v2947_v8 = vadd.f32 %v2965_v7, %v2946_v39 }
 0xaa7   :  { %2949 = vst [vmem:[%s5206_s6] sm:$0xff] %v2947_v8 }
 0xaa8   :  { %2954 = vsyncpa [#allocation5], 1 }
 0xaa9   :  { %2955 = vsyncpa [#allocation7], 1 }

</bundles_post_ra>
